<compile_context>
chip_gen: v7x
topology: tpu7x:2x2x1
jax: 0.10.0
libtpu: 0.0.40
codegen_flags: <defaults>
</compile_context>

<pallas_src>
import jax
import jax.numpy as jnp
from jax.experimental import pallas as pl
from jax.experimental.pallas import tpu as pltpu

LANE = 128
SUBLANE = 8


# ------------------------- fused LSTM stack + FC kernel -----------------------------
def _make_kernel(num_layers):
    """Builds the fused kernel for a given (static) layer count.

    Ref layout (L = num_layers, Hp = per-gate lane-padded hidden size):
      x_ref    : (T*Bp, D)        bf16, time-major, batch padded to Bp, flattened
      wih0_ref : (D, 4Hp)         bf16, layer-0 input->hidden, gate order [i,f,o,g]
      wihr_ref : (L-1, Hp, 4Hp)   bf16, layers 1..L-1 input->hidden   (only if L>1)
      whh_ref  : (L, Hp, 4Hp)     bf16, hidden->hidden
      b_ref    : (L, 1, 4Hp)      f32, combined biases (b_ih + b_hh)
      wfc_ref  : (Hp, Op)         bf16, FC weight (rows >= H are zero)
      bfc_ref  : (1, Op)          f32, FC bias (lane-padded)
      out_ref  : (Bp, Op)         f32, lane-dense output slab
      gates_sc : (T*Bp, 4Hp)      f32 VMEM: hoisted input-projection gates (per layer)
      seq_sc   : (T*Bp, Hp)       f32 VMEM: inter-layer hidden sequence (only if L>1)
    """
    L = num_layers

    def kernel(*refs):
        if L > 1:
            (x_ref, wih0_ref, wihr_ref, whh_ref, b_ref, wfc_ref, bfc_ref,
             out_ref, gates_sc, seq_sc) = refs
        else:
            (x_ref, wih0_ref, whh_ref, b_ref, wfc_ref, bfc_ref,
             out_ref, gates_sc) = refs
            wihr_ref = None
            seq_sc = None

        Hp = gates_sc.shape[1] // 4
        Bp = out_ref.shape[0]
        T = x_ref.shape[0] // Bp
        unroll = T if T <= 8 else 8          # cap unroll: avoid vreg spills at large T

        def input_projection(x2d_bf16, wih_bf16, bias_f32):
            # Hoisted projection: ONE big MXU matmul covering all timesteps of a layer.
            gates_sc[...] = (
                jnp.dot(x2d_bf16, wih_bf16, preferred_element_type=jnp.float32)
                + bias_f32)

        def recurrence(whh_l_bf16, write_seq):
            h0 = jnp.zeros((Bp, Hp), jnp.float32)
            c0 = jnp.zeros((Bp, Hp), jnp.float32)

            def step(t, carry):
                h, c = carry                                   # vreg-resident carries
                row = pl.multiple_of(t * Bp, Bp)
                gates = gates_sc[pl.ds(row, Bp), :] + jnp.dot(
                    h.astype(jnp.bfloat16), whh_l_bf16,
                    preferred_element_type=jnp.float32)
                # gate layout [i | f | o | g]; each group is Hp (128-aligned) lanes.
                act_s = jax.nn.sigmoid(gates[:, :3 * Hp])      # i, f, o  (3Hp lanes)
                g_g = jnp.tanh(gates[:, 3 * Hp:])              # g        (Hp lanes)
                i_g = act_s[:, 0:Hp]
                f_g = act_s[:, Hp:2 * Hp]
                o_g = act_s[:, 2 * Hp:3 * Hp]
                c_new = f_g * c + i_g * g_g
                h_new = o_g * jnp.tanh(c_new)
                if write_seq:      # static Python bool; last layer skips the store
                    seq_sc[pl.ds(row, Bp), :] = h_new
                return (h_new, c_new)

            h_fin, _ = jax.lax.fori_loop(0, T, step, (h0, c0), unroll=unroll)
            return h_fin

        # ----- layer 0: projection over the raw input sequence -----
        input_projection(x_ref[...], wih0_ref[...], b_ref[0])
        h_last = recurrence(whh_ref[0], write_seq=(L > 1))

        # ----- layers 1..L-1: input is previous layer's VMEM-resident hidden seq -----
        for l in range(1, L):
            input_projection(seq_sc[...].astype(jnp.bfloat16), wihr_ref[l - 1], b_ref[l])
            h_last = recurrence(whh_ref[l], write_seq=(l < L - 1))

        # ----- final FC on the last timestep of the last layer -----
        out_ref[...] = (
            jnp.dot(h_last.astype(jnp.bfloat16), wfc_ref[...],
                    preferred_element_type=jnp.float32)
            + bfc_ref[...]).astype(out_ref.dtype)

    return kernel


# ------------------------------- parameter handling ---------------------------------
def init_params(key, input_size, hidden_size, num_layers, output_size):
    """PyTorch-convention shapes, uniform(-1/sqrt(H), 1/sqrt(H)) init."""
    params = {"layers": []}
    k = 1.0 / float(hidden_size) ** 0.5
    for layer in range(num_layers):
        d_in = input_size if layer == 0 else hidden_size
        key, k1, k2, k3, k4 = jax.random.split(key, 5)
        params["layers"].append({
            "w_ih": jax.random.uniform(k1, (4 * hidden_size, d_in), jnp.float32, -k, k),
            "w_hh": jax.random.uniform(k2, (4 * hidden_size, hidden_size), jnp.float32, -k, k),
            "b_ih": jax.random.uniform(k3, (4 * hidden_size,), jnp.float32, -k, k),
            "b_hh": jax.random.uniform(k4, (4 * hidden_size,), jnp.float32, -k, k),
        })
    key, k5, k6 = jax.random.split(key, 3)
    params["fc_w"] = jax.random.uniform(k5, (output_size, hidden_size), jnp.float32, -k, k)
    params["fc_b"] = jax.random.uniform(k6, (output_size,), jnp.float32, -k, k)
    return params


def pack_params(params, hidden_size, num_layers, output_size):
    """One-time repack: transpose, reorder gates to [i,f,o,g], pad each gate group to a
    128-lane multiple, stack layers, cast weights to bf16 (biases stay f32)."""
    H, L, O = hidden_size, num_layers, output_size
    layers = params["layers"]
    D = layers[0]["w_ih"].shape[1]
    Hp = ((H + LANE - 1) // LANE) * LANE
    Op = ((O + LANE - 1) // LANE) * LANE
    # PyTorch gate order along the 4H dim is (i, f, g, o); we want (i, f, o, g).
    src_slices = [(0, H), (H, 2 * H), (3 * H, 4 * H), (2 * H, 3 * H)]

    def repack_w(w, in_dim, in_pad):
        w_t = jnp.transpose(w)                               # (in_dim, 4H)
        out = jnp.zeros((in_pad, 4 * Hp), jnp.float32)
        for g, (a, b) in enumerate(src_slices):
            out = out.at[:in_dim, g * Hp:g * Hp + H].set(w_t[:, a:b])
        return out

    def repack_b(b):
        out = jnp.zeros((1, 4 * Hp), jnp.float32)
        for g, (a, c) in enumerate(src_slices):
            out = out.at[0, g * Hp:g * Hp + H].set(b[a:c])
        return out

    wih0 = repack_w(layers[0]["w_ih"], D, D).astype(jnp.bfloat16)            # (D, 4Hp)
    wih_rest = None
    if L > 1:
        wih_rest = jnp.stack(
            [repack_w(p["w_ih"], H, Hp) for p in layers[1:]]).astype(jnp.bfloat16)
    whh = jnp.stack([repack_w(p["w_hh"], H, Hp) for p in layers]).astype(jnp.bfloat16)
    b = jnp.stack([repack_b(p["b_ih"] + p["b_hh"]) for p in layers])         # (L,1,4Hp)
    wfc = (jnp.zeros((Hp, Op), jnp.float32)
           .at[:H, :O].set(jnp.transpose(params["fc_w"]))).astype(jnp.bfloat16)
    bfc = jnp.zeros((1, Op), jnp.float32).at[0, :O].set(params["fc_b"])
    return {"wih0": wih0, "wih_rest": wih_rest, "whh": whh, "b": b,
            "wfc": wfc, "bfc": bfc,
            "hidden_size": H, "hp": Hp, "num_layers": L, "output_size": O}


def _vmem_limit_bytes(T, Bp, D, Hp, Op, L):
    """Scoped-VMEM request: resident slabs + weights + headroom (clamped)."""
    f32, bf16 = 4, 2
    total = T * Bp * 4 * Hp * f32                       # gates_sc
    if L > 1:
        total += T * Bp * Hp * f32                      # seq_sc
    total += T * Bp * D * bf16                          # x
    total += D * 4 * Hp * bf16                          # wih0
    if L > 1:
        total += (L - 1) * Hp * 4 * Hp * bf16           # wih_rest
    total += L * Hp * 4 * Hp * bf16                     # whh
    total += L * 4 * Hp * f32 + Op * f32                # biases
    total += Hp * Op * bf16                             # fc weight
    total += Bp * Op * f32                              # output slab
    limit = int(total * 1.5) + (8 << 20)
    return max(32 << 20, min(limit, 100 << 20))


# ------------------------------- forward wrapper -------------------------------------
def financial_lstm_forward(packed, x):
    """x: (B, T, input_size) — PyTorch batch_first. Returns (B, output_size)."""
    B, T, D = x.shape
    Hp = packed["hp"]
    L = packed["num_layers"]
    O = packed["output_size"]
    Op = packed["wfc"].shape[1]
    Bp = ((B + SUBLANE - 1) // SUBLANE) * SUBLANE        # fill all 8 f32 sublanes

    # Tiny layout plumbing outside the kernel: time-major, batch-pad, flatten, bf16.
    x_t = jnp.transpose(x.astype(jnp.float32), (1, 0, 2))            # (T, B, D)
    x_pad = jnp.zeros((T, Bp, D), jnp.float32).at[:, :B, :].set(x_t)
    x_flat = x_pad.reshape(T * Bp, D).astype(jnp.bfloat16)           # (T*Bp, D)

    vmem = pl.BlockSpec(memory_space=pltpu.MemorySpace.VMEM)
    args = [x_flat, packed["wih0"]]
    if L > 1:
        args.append(packed["wih_rest"])
    args += [packed["whh"], packed["b"], packed["wfc"], packed["bfc"]]

    scratch = [pltpu.VMEM((T * Bp, 4 * Hp), jnp.float32)]            # gate slabs
    if L > 1:
        scratch.append(pltpu.VMEM((T * Bp, Hp), jnp.float32))        # inter-layer seq

    out_pad = pl.pallas_call(
        _make_kernel(L),
        out_shape=jax.ShapeDtypeStruct((Bp, Op), jnp.float32),
        in_specs=[vmem] * len(args),
        out_specs=vmem,
        scratch_shapes=scratch,
        compiler_params=pltpu.CompilerParams(
            vmem_limit_bytes=_vmem_limit_bytes(T, Bp, D, Hp, Op, L)),
    )(*args)

    return out_pad[:B, :O]


if __name__ == "__main__":
    B, T = 2, 8
    input_size, hidden_size, num_layers, output_size = 4, 32, 2, 1

    key = jax.random.PRNGKey(0)
    key, kx, kp = jax.random.split(key, 3)
    x = jax.random.normal(kx, (B, T, input_size), jnp.float32)
    params = init_params(kp, input_size, hidden_size, num_layers, output_size)
    packed = pack_params(params, hidden_size, num_layers, output_size)

    out = financial_lstm_forward(packed, x)
    out = jax.block_until_ready(out)
    assert out.shape == (B, output_size), out.shape
    print("KERNEL_OK")
</pallas_src>

<mosaic_0001>
module attributes {stable_mosaic.version = 11 : i64} {
  func.func @kernel(%arg0: memref<64x4xbf16, #tpu.memory_space<vmem>>, %arg1: memref<4x512xbf16, #tpu.memory_space<vmem>>, %arg2: memref<1x128x512xbf16, #tpu.memory_space<vmem>>, %arg3: memref<2x128x512xbf16, #tpu.memory_space<vmem>>, %arg4: memref<2x1x512xf32, #tpu.memory_space<vmem>>, %arg5: memref<128x128xbf16, #tpu.memory_space<vmem>>, %arg6: memref<1x128xf32, #tpu.memory_space<vmem>>, %arg7: memref<8x128xf32, #tpu.memory_space<vmem>>, %arg8: memref<64x512xf32, #tpu.memory_space<vmem>>, %arg9: memref<64x128xf32, #tpu.memory_space<vmem>>) attributes {dimension_semantics = [], scalar_prefetch = 0 : i64, scratch_operands = 2 : i64, tpu.core_type = #tpu.core_type<tc>} {
    %c0 = arith.constant 0 : index
    %c0_0 = arith.constant 0 : index
    %0 = vector.load %arg0[%c0, %c0_0] : memref<64x4xbf16, #tpu.memory_space<vmem>>, vector<64x4xbf16>
    %c0_1 = arith.constant 0 : index
    %c0_2 = arith.constant 0 : index
    %1 = vector.load %arg1[%c0_1, %c0_2] : memref<4x512xbf16, #tpu.memory_space<vmem>>, vector<4x512xbf16>
    %c0_3 = arith.constant 0 : index
    %c0_4 = arith.constant 0 : index
    %c0_5 = arith.constant 0 : index
    %2 = vector.load %arg4[%c0_3, %c0_4, %c0_5] : memref<2x1x512xf32, #tpu.memory_space<vmem>>, vector<1x1x512xf32>
    %3 = vector.shape_cast %2 : vector<1x1x512xf32> to vector<1x512xf32>
    %cst = arith.constant dense<0.000000e+00> : vector<64x512xf32>
    %4 = tpu.matmul %0, %1, %cst {dimension_numbers = #tpu.dot_dimension_numbers<[1], [0], [0], [1], [0, 0, 1, 1], [], []>} : vector<64x4xbf16>, vector<4x512xbf16>, vector<64x512xf32> -> vector<64x512xf32>
    %5 = vector.broadcast %3 : vector<1x512xf32> to vector<64x512xf32>
    %6 = arith.addf %4, %5 : vector<64x512xf32>
    %c0_6 = arith.constant 0 : index
    %c0_7 = arith.constant 0 : index
    %7 = vector.load %arg8[%c0_6, %c0_7] : memref<64x512xf32, #tpu.memory_space<vmem>>, vector<64x512xf32>
    tpu.vector_store %arg8[%c0_6, %c0_7], %6 {strides = array<i32>} : memref<64x512xf32, #tpu.memory_space<vmem>>, vector<64x512xf32>,
    %c0_8 = arith.constant 0 : index
    %c0_9 = arith.constant 0 : index
    %c0_10 = arith.constant 0 : index
    %8 = vector.load %arg3[%c0_8, %c0_9, %c0_10] : memref<2x128x512xbf16, #tpu.memory_space<vmem>>, vector<1x128x512xbf16>
    %9 = vector.shape_cast %8 : vector<1x128x512xbf16> to vector<128x512xbf16>
    %cst_11 = arith.constant 0.000000e+00 : f32
    %10 = vector.broadcast %cst_11 : f32 to vector<8x128xf32>
    %cst_12 = arith.constant 0.000000e+00 : f32
    %11 = vector.broadcast %cst_12 : f32 to vector<8x128xf32>
    %c0_i32 = arith.constant 0 : i32
    %c8_i32 = arith.constant 8 : i32
    %12 = arith.muli %c0_i32, %c8_i32 : i32
    %13 = tpu.assume_multiple %12, 8 : i32
    %14 = arith.index_cast %13 : i32 to index
    %c0_13 = arith.constant 0 : index
    %15 = vector.load %arg8[%14, %c0_13] : memref<64x512xf32, #tpu.memory_space<vmem>>, vector<8x512xf32>
    %16 = arith.truncf %10 : vector<8x128xf32> to vector<8x128xbf16>
    %cst_14 = arith.constant dense<0.000000e+00> : vector<8x512xf32>
    %17 = tpu.matmul %16, %9, %cst_14 {dimension_numbers = #tpu.dot_dimension_numbers<[1], [0], [0], [1], [0, 0, 1, 1], [], []>} : vector<8x128xbf16>, vector<128x512xbf16>, vector<8x512xf32> -> vector<8x512xf32>
    %18 = arith.addf %15, %17 : vector<8x512xf32>
    %19 = vector.extract_strided_slice %18 {offsets = [0, 0], sizes = [8, 384], strides = [1, 1]} : vector<8x512xf32> to vector<8x384xf32>
    %20 = arith.negf %19 : vector<8x384xf32>
    %21 = math.exp %20 : vector<8x384xf32>
    %cst_15 = arith.constant 1.000000e+00 : f32
    %22 = vector.broadcast %cst_15 : f32 to vector<8x384xf32>
    %23 = arith.addf %22, %21 : vector<8x384xf32>
    %24 = arith.divf %22, %23 : vector<8x384xf32>
    %25 = vector.extract_strided_slice %18 {offsets = [0, 384], sizes = [8, 128], strides = [1, 1]} : vector<8x512xf32> to vector<8x128xf32>
    %26 = math.tanh %25 : vector<8x128xf32>
    %27 = vector.extract_strided_slice %24 {offsets = [0, 0], sizes = [8, 128], strides = [1, 1]} : vector<8x384xf32> to vector<8x128xf32>
    %28 = vector.extract_strided_slice %24 {offsets = [0, 128], sizes = [8, 128], strides = [1, 1]} : vector<8x384xf32> to vector<8x128xf32>
    %29 = vector.extract_strided_slice %24 {offsets = [0, 256], sizes = [8, 128], strides = [1, 1]} : vector<8x384xf32> to vector<8x128xf32>
    %30 = arith.mulf %28, %11 : vector<8x128xf32>
    %31 = arith.mulf %27, %26 : vector<8x128xf32>
    %32 = arith.addf %30, %31 : vector<8x128xf32>
    %33 = math.tanh %32 : vector<8x128xf32>
    %34 = arith.mulf %29, %33 : vector<8x128xf32>
    %35 = arith.index_cast %13 : i32 to index
    %c0_16 = arith.constant 0 : index
    %36 = vector.load %arg9[%35, %c0_16] : memref<64x128xf32, #tpu.memory_space<vmem>>, vector<8x128xf32>
    tpu.vector_store %arg9[%35, %c0_16], %34 {strides = array<i32>} : memref<64x128xf32, #tpu.memory_space<vmem>>, vector<8x128xf32>,
    %c1_i32 = arith.constant 1 : i32
    %c8_i32_17 = arith.constant 8 : i32
    %37 = arith.muli %c1_i32, %c8_i32_17 : i32
    %38 = tpu.assume_multiple %37, 8 : i32
    %39 = arith.index_cast %38 : i32 to index
    %c0_18 = arith.constant 0 : index
    %40 = vector.load %arg8[%39, %c0_18] : memref<64x512xf32, #tpu.memory_space<vmem>>, vector<8x512xf32>
    %41 = arith.truncf %34 : vector<8x128xf32> to vector<8x128xbf16>
    %cst_19 = arith.constant dense<0.000000e+00> : vector<8x512xf32>
    %42 = tpu.matmul %41, %9, %cst_19 {dimension_numbers = #tpu.dot_dimension_numbers<[1], [0], [0], [1], [0, 0, 1, 1], [], []>} : vector<8x128xbf16>, vector<128x512xbf16>, vector<8x512xf32> -> vector<8x512xf32>
    %43 = arith.addf %40, %42 : vector<8x512xf32>
    %44 = vector.extract_strided_slice %43 {offsets = [0, 0], sizes = [8, 384], strides = [1, 1]} : vector<8x512xf32> to vector<8x384xf32>
    %45 = arith.negf %44 : vector<8x384xf32>
    %46 = math.exp %45 : vector<8x384xf32>
    %cst_20 = arith.constant 1.000000e+00 : f32
    %47 = vector.broadcast %cst_20 : f32 to vector<8x384xf32>
    %48 = arith.addf %47, %46 : vector<8x384xf32>
    %49 = arith.divf %47, %48 : vector<8x384xf32>
    %50 = vector.extract_strided_slice %43 {offsets = [0, 384], sizes = [8, 128], strides = [1, 1]} : vector<8x512xf32> to vector<8x128xf32>
    %51 = math.tanh %50 : vector<8x128xf32>
    %52 = vector.extract_strided_slice %49 {offsets = [0, 0], sizes = [8, 128], strides = [1, 1]} : vector<8x384xf32> to vector<8x128xf32>
    %53 = vector.extract_strided_slice %49 {offsets = [0, 128], sizes = [8, 128], strides = [1, 1]} : vector<8x384xf32> to vector<8x128xf32>
    %54 = vector.extract_strided_slice %49 {offsets = [0, 256], sizes = [8, 128], strides = [1, 1]} : vector<8x384xf32> to vector<8x128xf32>
    %55 = arith.mulf %53, %32 : vector<8x128xf32>
    %56 = arith.mulf %52, %51 : vector<8x128xf32>
    %57 = arith.addf %55, %56 : vector<8x128xf32>
    %58 = math.tanh %57 : vector<8x128xf32>
    %59 = arith.mulf %54, %58 : vector<8x128xf32>
    %60 = arith.index_cast %38 : i32 to index
    %c0_21 = arith.constant 0 : index
    %61 = vector.load %arg9[%60, %c0_21] : memref<64x128xf32, #tpu.memory_space<vmem>>, vector<8x128xf32>
    tpu.vector_store %arg9[%60, %c0_21], %59 {strides = array<i32>} : memref<64x128xf32, #tpu.memory_space<vmem>>, vector<8x128xf32>,
    %c2_i32 = arith.constant 2 : i32
    %c8_i32_22 = arith.constant 8 : i32
    %62 = arith.muli %c2_i32, %c8_i32_22 : i32
    %63 = tpu.assume_multiple %62, 8 : i32
    %64 = arith.index_cast %63 : i32 to index
    %c0_23 = arith.constant 0 : index
    %65 = vector.load %arg8[%64, %c0_23] : memref<64x512xf32, #tpu.memory_space<vmem>>, vector<8x512xf32>
    %66 = arith.truncf %59 : vector<8x128xf32> to vector<8x128xbf16>
    %cst_24 = arith.constant dense<0.000000e+00> : vector<8x512xf32>
    %67 = tpu.matmul %66, %9, %cst_24 {dimension_numbers = #tpu.dot_dimension_numbers<[1], [0], [0], [1], [0, 0, 1, 1], [], []>} : vector<8x128xbf16>, vector<128x512xbf16>, vector<8x512xf32> -> vector<8x512xf32>
    %68 = arith.addf %65, %67 : vector<8x512xf32>
    %69 = vector.extract_strided_slice %68 {offsets = [0, 0], sizes = [8, 384], strides = [1, 1]} : vector<8x512xf32> to vector<8x384xf32>
    %70 = arith.negf %69 : vector<8x384xf32>
    %71 = math.exp %70 : vector<8x384xf32>
    %cst_25 = arith.constant 1.000000e+00 : f32
    %72 = vector.broadcast %cst_25 : f32 to vector<8x384xf32>
    %73 = arith.addf %72, %71 : vector<8x384xf32>
    %74 = arith.divf %72, %73 : vector<8x384xf32>
    %75 = vector.extract_strided_slice %68 {offsets = [0, 384], sizes = [8, 128], strides = [1, 1]} : vector<8x512xf32> to vector<8x128xf32>
    %76 = math.tanh %75 : vector<8x128xf32>
    %77 = vector.extract_strided_slice %74 {offsets = [0, 0], sizes = [8, 128], strides = [1, 1]} : vector<8x384xf32> to vector<8x128xf32>
    %78 = vector.extract_strided_slice %74 {offsets = [0, 128], sizes = [8, 128], strides = [1, 1]} : vector<8x384xf32> to vector<8x128xf32>
    %79 = vector.extract_strided_slice %74 {offsets = [0, 256], sizes = [8, 128], strides = [1, 1]} : vector<8x384xf32> to vector<8x128xf32>
    %80 = arith.mulf %78, %57 : vector<8x128xf32>
    %81 = arith.mulf %77, %76 : vector<8x128xf32>
    %82 = arith.addf %80, %81 : vector<8x128xf32>
    %83 = math.tanh %82 : vector<8x128xf32>
    %84 = arith.mulf %79, %83 : vector<8x128xf32>
    %85 = arith.index_cast %63 : i32 to index
    %c0_26 = arith.constant 0 : index
    %86 = vector.load %arg9[%85, %c0_26] : memref<64x128xf32, #tpu.memory_space<vmem>>, vector<8x128xf32>
    tpu.vector_store %arg9[%85, %c0_26], %84 {strides = array<i32>} : memref<64x128xf32, #tpu.memory_space<vmem>>, vector<8x128xf32>,
    %c3_i32 = arith.constant 3 : i32
    %c8_i32_27 = arith.constant 8 : i32
    %87 = arith.muli %c3_i32, %c8_i32_27 : i32
    %88 = tpu.assume_multiple %87, 8 : i32
    %89 = arith.index_cast %88 : i32 to index
    %c0_28 = arith.constant 0 : index
    %90 = vector.load %arg8[%89, %c0_28] : memref<64x512xf32, #tpu.memory_space<vmem>>, vector<8x512xf32>
    %91 = arith.truncf %84 : vector<8x128xf32> to vector<8x128xbf16>
    %cst_29 = arith.constant dense<0.000000e+00> : vector<8x512xf32>
    %92 = tpu.matmul %91, %9, %cst_29 {dimension_numbers = #tpu.dot_dimension_numbers<[1], [0], [0], [1], [0, 0, 1, 1], [], []>} : vector<8x128xbf16>, vector<128x512xbf16>, vector<8x512xf32> -> vector<8x512xf32>
    %93 = arith.addf %90, %92 : vector<8x512xf32>
    %94 = vector.extract_strided_slice %93 {offsets = [0, 0], sizes = [8, 384], strides = [1, 1]} : vector<8x512xf32> to vector<8x384xf32>
    %95 = arith.negf %94 : vector<8x384xf32>
    %96 = math.exp %95 : vector<8x384xf32>
    %cst_30 = arith.constant 1.000000e+00 : f32
    %97 = vector.broadcast %cst_30 : f32 to vector<8x384xf32>
    %98 = arith.addf %97, %96 : vector<8x384xf32>
    %99 = arith.divf %97, %98 : vector<8x384xf32>
    %100 = vector.extract_strided_slice %93 {offsets = [0, 384], sizes = [8, 128], strides = [1, 1]} : vector<8x512xf32> to vector<8x128xf32>
    %101 = math.tanh %100 : vector<8x128xf32>
    %102 = vector.extract_strided_slice %99 {offsets = [0, 0], sizes = [8, 128], strides = [1, 1]} : vector<8x384xf32> to vector<8x128xf32>
    %103 = vector.extract_strided_slice %99 {offsets = [0, 128], sizes = [8, 128], strides = [1, 1]} : vector<8x384xf32> to vector<8x128xf32>
    %104 = vector.extract_strided_slice %99 {offsets = [0, 256], sizes = [8, 128], strides = [1, 1]} : vector<8x384xf32> to vector<8x128xf32>
    %105 = arith.mulf %103, %82 : vector<8x128xf32>
    %106 = arith.mulf %102, %101 : vector<8x128xf32>
    %107 = arith.addf %105, %106 : vector<8x128xf32>
    %108 = math.tanh %107 : vector<8x128xf32>
    %109 = arith.mulf %104, %108 : vector<8x128xf32>
    %110 = arith.index_cast %88 : i32 to index
    %c0_31 = arith.constant 0 : index
    %111 = vector.load %arg9[%110, %c0_31] : memref<64x128xf32, #tpu.memory_space<vmem>>, vector<8x128xf32>
    tpu.vector_store %arg9[%110, %c0_31], %109 {strides = array<i32>} : memref<64x128xf32, #tpu.memory_space<vmem>>, vector<8x128xf32>,
    %c4_i32 = arith.constant 4 : i32
    %c8_i32_32 = arith.constant 8 : i32
    %112 = arith.muli %c4_i32, %c8_i32_32 : i32
    %113 = tpu.assume_multiple %112, 8 : i32
    %114 = arith.index_cast %113 : i32 to index
    %c0_33 = arith.constant 0 : index
    %115 = vector.load %arg8[%114, %c0_33] : memref<64x512xf32, #tpu.memory_space<vmem>>, vector<8x512xf32>
    %116 = arith.truncf %109 : vector<8x128xf32> to vector<8x128xbf16>
    %cst_34 = arith.constant dense<0.000000e+00> : vector<8x512xf32>
    %117 = tpu.matmul %116, %9, %cst_34 {dimension_numbers = #tpu.dot_dimension_numbers<[1], [0], [0], [1], [0, 0, 1, 1], [], []>} : vector<8x128xbf16>, vector<128x512xbf16>, vector<8x512xf32> -> vector<8x512xf32>
    %118 = arith.addf %115, %117 : vector<8x512xf32>
    %119 = vector.extract_strided_slice %118 {offsets = [0, 0], sizes = [8, 384], strides = [1, 1]} : vector<8x512xf32> to vector<8x384xf32>
    %120 = arith.negf %119 : vector<8x384xf32>
    %121 = math.exp %120 : vector<8x384xf32>
    %cst_35 = arith.constant 1.000000e+00 : f32
    %122 = vector.broadcast %cst_35 : f32 to vector<8x384xf32>
    %123 = arith.addf %122, %121 : vector<8x384xf32>
    %124 = arith.divf %122, %123 : vector<8x384xf32>
    %125 = vector.extract_strided_slice %118 {offsets = [0, 384], sizes = [8, 128], strides = [1, 1]} : vector<8x512xf32> to vector<8x128xf32>
    %126 = math.tanh %125 : vector<8x128xf32>
    %127 = vector.extract_strided_slice %124 {offsets = [0, 0], sizes = [8, 128], strides = [1, 1]} : vector<8x384xf32> to vector<8x128xf32>
    %128 = vector.extract_strided_slice %124 {offsets = [0, 128], sizes = [8, 128], strides = [1, 1]} : vector<8x384xf32> to vector<8x128xf32>
    %129 = vector.extract_strided_slice %124 {offsets = [0, 256], sizes = [8, 128], strides = [1, 1]} : vector<8x384xf32> to vector<8x128xf32>
    %130 = arith.mulf %128, %107 : vector<8x128xf32>
    %131 = arith.mulf %127, %126 : vector<8x128xf32>
    %132 = arith.addf %130, %131 : vector<8x128xf32>
    %133 = math.tanh %132 : vector<8x128xf32>
    %134 = arith.mulf %129, %133 : vector<8x128xf32>
    %135 = arith.index_cast %113 : i32 to index
    %c0_36 = arith.constant 0 : index
    %136 = vector.load %arg9[%135, %c0_36] : memref<64x128xf32, #tpu.memory_space<vmem>>, vector<8x128xf32>
    tpu.vector_store %arg9[%135, %c0_36], %134 {strides = array<i32>} : memref<64x128xf32, #tpu.memory_space<vmem>>, vector<8x128xf32>,
    %c5_i32 = arith.constant 5 : i32
    %c8_i32_37 = arith.constant 8 : i32
    %137 = arith.muli %c5_i32, %c8_i32_37 : i32
    %138 = tpu.assume_multiple %137, 8 : i32
    %139 = arith.index_cast %138 : i32 to index
    %c0_38 = arith.constant 0 : index
    %140 = vector.load %arg8[%139, %c0_38] : memref<64x512xf32, #tpu.memory_space<vmem>>, vector<8x512xf32>
    %141 = arith.truncf %134 : vector<8x128xf32> to vector<8x128xbf16>
    %cst_39 = arith.constant dense<0.000000e+00> : vector<8x512xf32>
    %142 = tpu.matmul %141, %9, %cst_39 {dimension_numbers = #tpu.dot_dimension_numbers<[1], [0], [0], [1], [0, 0, 1, 1], [], []>} : vector<8x128xbf16>, vector<128x512xbf16>, vector<8x512xf32> -> vector<8x512xf32>
    %143 = arith.addf %140, %142 : vector<8x512xf32>
    %144 = vector.extract_strided_slice %143 {offsets = [0, 0], sizes = [8, 384], strides = [1, 1]} : vector<8x512xf32> to vector<8x384xf32>
    %145 = arith.negf %144 : vector<8x384xf32>
    %146 = math.exp %145 : vector<8x384xf32>
    %cst_40 = arith.constant 1.000000e+00 : f32
    %147 = vector.broadcast %cst_40 : f32 to vector<8x384xf32>
    %148 = arith.addf %147, %146 : vector<8x384xf32>
    %149 = arith.divf %147, %148 : vector<8x384xf32>
    %150 = vector.extract_strided_slice %143 {offsets = [0, 384], sizes = [8, 128], strides = [1, 1]} : vector<8x512xf32> to vector<8x128xf32>
    %151 = math.tanh %150 : vector<8x128xf32>
    %152 = vector.extract_strided_slice %149 {offsets = [0, 0], sizes = [8, 128], strides = [1, 1]} : vector<8x384xf32> to vector<8x128xf32>
    %153 = vector.extract_strided_slice %149 {offsets = [0, 128], sizes = [8, 128], strides = [1, 1]} : vector<8x384xf32> to vector<8x128xf32>
    %154 = vector.extract_strided_slice %149 {offsets = [0, 256], sizes = [8, 128], strides = [1, 1]} : vector<8x384xf32> to vector<8x128xf32>
    %155 = arith.mulf %153, %132 : vector<8x128xf32>
    %156 = arith.mulf %152, %151 : vector<8x128xf32>
    %157 = arith.addf %155, %156 : vector<8x128xf32>
    %158 = math.tanh %157 : vector<8x128xf32>
    %159 = arith.mulf %154, %158 : vector<8x128xf32>
    %160 = arith.index_cast %138 : i32 to index
    %c0_41 = arith.constant 0 : index
    %161 = vector.load %arg9[%160, %c0_41] : memref<64x128xf32, #tpu.memory_space<vmem>>, vector<8x128xf32>
    tpu.vector_store %arg9[%160, %c0_41], %159 {strides = array<i32>} : memref<64x128xf32, #tpu.memory_space<vmem>>, vector<8x128xf32>,
    %c6_i32 = arith.constant 6 : i32
    %c8_i32_42 = arith.constant 8 : i32
    %162 = arith.muli %c6_i32, %c8_i32_42 : i32
    %163 = tpu.assume_multiple %162, 8 : i32
    %164 = arith.index_cast %163 : i32 to index
    %c0_43 = arith.constant 0 : index
    %165 = vector.load %arg8[%164, %c0_43] : memref<64x512xf32, #tpu.memory_space<vmem>>, vector<8x512xf32>
    %166 = arith.truncf %159 : vector<8x128xf32> to vector<8x128xbf16>
    %cst_44 = arith.constant dense<0.000000e+00> : vector<8x512xf32>
    %167 = tpu.matmul %166, %9, %cst_44 {dimension_numbers = #tpu.dot_dimension_numbers<[1], [0], [0], [1], [0, 0, 1, 1], [], []>} : vector<8x128xbf16>, vector<128x512xbf16>, vector<8x512xf32> -> vector<8x512xf32>
    %168 = arith.addf %165, %167 : vector<8x512xf32>
    %169 = vector.extract_strided_slice %168 {offsets = [0, 0], sizes = [8, 384], strides = [1, 1]} : vector<8x512xf32> to vector<8x384xf32>
    %170 = arith.negf %169 : vector<8x384xf32>
    %171 = math.exp %170 : vector<8x384xf32>
    %cst_45 = arith.constant 1.000000e+00 : f32
    %172 = vector.broadcast %cst_45 : f32 to vector<8x384xf32>
    %173 = arith.addf %172, %171 : vector<8x384xf32>
    %174 = arith.divf %172, %173 : vector<8x384xf32>
    %175 = vector.extract_strided_slice %168 {offsets = [0, 384], sizes = [8, 128], strides = [1, 1]} : vector<8x512xf32> to vector<8x128xf32>
    %176 = math.tanh %175 : vector<8x128xf32>
    %177 = vector.extract_strided_slice %174 {offsets = [0, 0], sizes = [8, 128], strides = [1, 1]} : vector<8x384xf32> to vector<8x128xf32>
    %178 = vector.extract_strided_slice %174 {offsets = [0, 128], sizes = [8, 128], strides = [1, 1]} : vector<8x384xf32> to vector<8x128xf32>
    %179 = vector.extract_strided_slice %174 {offsets = [0, 256], sizes = [8, 128], strides = [1, 1]} : vector<8x384xf32> to vector<8x128xf32>
    %180 = arith.mulf %178, %157 : vector<8x128xf32>
    %181 = arith.mulf %177, %176 : vector<8x128xf32>
    %182 = arith.addf %180, %181 : vector<8x128xf32>
    %183 = math.tanh %182 : vector<8x128xf32>
    %184 = arith.mulf %179, %183 : vector<8x128xf32>
    %185 = arith.index_cast %163 : i32 to index
    %c0_46 = arith.constant 0 : index
    %186 = vector.load %arg9[%185, %c0_46] : memref<64x128xf32, #tpu.memory_space<vmem>>, vector<8x128xf32>
    tpu.vector_store %arg9[%185, %c0_46], %184 {strides = array<i32>} : memref<64x128xf32, #tpu.memory_space<vmem>>, vector<8x128xf32>,
    %c7_i32 = arith.constant 7 : i32
    %c8_i32_47 = arith.constant 8 : i32
    %187 = arith.muli %c7_i32, %c8_i32_47 : i32
    %188 = tpu.assume_multiple %187, 8 : i32
    %189 = arith.index_cast %188 : i32 to index
    %c0_48 = arith.constant 0 : index
    %190 = vector.load %arg8[%189, %c0_48] : memref<64x512xf32, #tpu.memory_space<vmem>>, vector<8x512xf32>
    %191 = arith.truncf %184 : vector<8x128xf32> to vector<8x128xbf16>
    %cst_49 = arith.constant dense<0.000000e+00> : vector<8x512xf32>
    %192 = tpu.matmul %191, %9, %cst_49 {dimension_numbers = #tpu.dot_dimension_numbers<[1], [0], [0], [1], [0, 0, 1, 1], [], []>} : vector<8x128xbf16>, vector<128x512xbf16>, vector<8x512xf32> -> vector<8x512xf32>
    %193 = arith.addf %190, %192 : vector<8x512xf32>
    %194 = vector.extract_strided_slice %193 {offsets = [0, 0], sizes = [8, 384], strides = [1, 1]} : vector<8x512xf32> to vector<8x384xf32>
    %195 = arith.negf %194 : vector<8x384xf32>
    %196 = math.exp %195 : vector<8x384xf32>
    %cst_50 = arith.constant 1.000000e+00 : f32
    %197 = vector.broadcast %cst_50 : f32 to vector<8x384xf32>
    %198 = arith.addf %197, %196 : vector<8x384xf32>
    %199 = arith.divf %197, %198 : vector<8x384xf32>
    %200 = vector.extract_strided_slice %193 {offsets = [0, 384], sizes = [8, 128], strides = [1, 1]} : vector<8x512xf32> to vector<8x128xf32>
    %201 = math.tanh %200 : vector<8x128xf32>
    %202 = vector.extract_strided_slice %199 {offsets = [0, 0], sizes = [8, 128], strides = [1, 1]} : vector<8x384xf32> to vector<8x128xf32>
    %203 = vector.extract_strided_slice %199 {offsets = [0, 128], sizes = [8, 128], strides = [1, 1]} : vector<8x384xf32> to vector<8x128xf32>
    %204 = vector.extract_strided_slice %199 {offsets = [0, 256], sizes = [8, 128], strides = [1, 1]} : vector<8x384xf32> to vector<8x128xf32>
    %205 = arith.mulf %203, %182 : vector<8x128xf32>
    %206 = arith.mulf %202, %201 : vector<8x128xf32>
    %207 = arith.addf %205, %206 : vector<8x128xf32>
    %208 = math.tanh %207 : vector<8x128xf32>
    %209 = arith.mulf %204, %208 : vector<8x128xf32>
    %210 = arith.index_cast %188 : i32 to index
    %c0_51 = arith.constant 0 : index
    %211 = vector.load %arg9[%210, %c0_51] : memref<64x128xf32, #tpu.memory_space<vmem>>, vector<8x128xf32>
    tpu.vector_store %arg9[%210, %c0_51], %209 {strides = array<i32>} : memref<64x128xf32, #tpu.memory_space<vmem>>, vector<8x128xf32>,
    %c8_i32_52 = arith.constant 8 : i32
    %c0_53 = arith.constant 0 : index
    %c0_54 = arith.constant 0 : index
    %212 = vector.load %arg9[%c0_53, %c0_54] : memref<64x128xf32, #tpu.memory_space<vmem>>, vector<64x128xf32>
    %213 = arith.truncf %212 : vector<64x128xf32> to vector<64x128xbf16>
    %c0_55 = arith.constant 0 : index
    %c0_56 = arith.constant 0 : index
    %c0_57 = arith.constant 0 : index
    %214 = vector.load %arg2[%c0_55, %c0_56, %c0_57] : memref<1x128x512xbf16, #tpu.memory_space<vmem>>, vector<1x128x512xbf16>
    %215 = vector.shape_cast %214 : vector<1x128x512xbf16> to vector<128x512xbf16>
    %c1 = arith.constant 1 : index
    %c0_58 = arith.constant 0 : index
    %c0_59 = arith.constant 0 : index
    %216 = vector.load %arg4[%c1, %c0_58, %c0_59] : memref<2x1x512xf32, #tpu.memory_space<vmem>>, vector<1x1x512xf32>
    %217 = vector.shape_cast %216 : vector<1x1x512xf32> to vector<1x512xf32>
    %cst_60 = arith.constant dense<0.000000e+00> : vector<64x512xf32>
    %218 = tpu.matmul %213, %215, %cst_60 {dimension_numbers = #tpu.dot_dimension_numbers<[1], [0], [0], [1], [0, 0, 1, 1], [], []>} : vector<64x128xbf16>, vector<128x512xbf16>, vector<64x512xf32> -> vector<64x512xf32>
    %219 = vector.broadcast %217 : vector<1x512xf32> to vector<64x512xf32>
    %220 = arith.addf %218, %219 : vector<64x512xf32>
    %c0_61 = arith.constant 0 : index
    %c0_62 = arith.constant 0 : index
    %221 = vector.load %arg8[%c0_61, %c0_62] : memref<64x512xf32, #tpu.memory_space<vmem>>, vector<64x512xf32>
    tpu.vector_store %arg8[%c0_61, %c0_62], %220 {strides = array<i32>} : memref<64x512xf32, #tpu.memory_space<vmem>>, vector<64x512xf32>,
    %c1_63 = arith.constant 1 : index
    %c0_64 = arith.constant 0 : index
    %c0_65 = arith.constant 0 : index
    %222 = vector.load %arg3[%c1_63, %c0_64, %c0_65] : memref<2x128x512xbf16, #tpu.memory_space<vmem>>, vector<1x128x512xbf16>
    %223 = vector.shape_cast %222 : vector<1x128x512xbf16> to vector<128x512xbf16>
    %cst_66 = arith.constant 0.000000e+00 : f32
    %224 = vector.broadcast %cst_66 : f32 to vector<8x128xf32>
    %cst_67 = arith.constant 0.000000e+00 : f32
    %225 = vector.broadcast %cst_67 : f32 to vector<8x128xf32>
    %c0_i32_68 = arith.constant 0 : i32
    %c8_i32_69 = arith.constant 8 : i32
    %226 = arith.muli %c0_i32_68, %c8_i32_69 : i32
    %227 = tpu.assume_multiple %226, 8 : i32
    %228 = arith.index_cast %227 : i32 to index
    %c0_70 = arith.constant 0 : index
    %229 = vector.load %arg8[%228, %c0_70] : memref<64x512xf32, #tpu.memory_space<vmem>>, vector<8x512xf32>
    %230 = arith.truncf %224 : vector<8x128xf32> to vector<8x128xbf16>
    %cst_71 = arith.constant dense<0.000000e+00> : vector<8x512xf32>
    %231 = tpu.matmul %230, %223, %cst_71 {dimension_numbers = #tpu.dot_dimension_numbers<[1], [0], [0], [1], [0, 0, 1, 1], [], []>} : vector<8x128xbf16>, vector<128x512xbf16>, vector<8x512xf32> -> vector<8x512xf32>
    %232 = arith.addf %229, %231 : vector<8x512xf32>
    %233 = vector.extract_strided_slice %232 {offsets = [0, 0], sizes = [8, 384], strides = [1, 1]} : vector<8x512xf32> to vector<8x384xf32>
    %234 = arith.negf %233 : vector<8x384xf32>
    %235 = math.exp %234 : vector<8x384xf32>
    %cst_72 = arith.constant 1.000000e+00 : f32
    %236 = vector.broadcast %cst_72 : f32 to vector<8x384xf32>
    %237 = arith.addf %236, %235 : vector<8x384xf32>
    %238 = arith.divf %236, %237 : vector<8x384xf32>
    %239 = vector.extract_strided_slice %232 {offsets = [0, 384], sizes = [8, 128], strides = [1, 1]} : vector<8x512xf32> to vector<8x128xf32>
    %240 = math.tanh %239 : vector<8x128xf32>
    %241 = vector.extract_strided_slice %238 {offsets = [0, 0], sizes = [8, 128], strides = [1, 1]} : vector<8x384xf32> to vector<8x128xf32>
    %242 = vector.extract_strided_slice %238 {offsets = [0, 128], sizes = [8, 128], strides = [1, 1]} : vector<8x384xf32> to vector<8x128xf32>
    %243 = vector.extract_strided_slice %238 {offsets = [0, 256], sizes = [8, 128], strides = [1, 1]} : vector<8x384xf32> to vector<8x128xf32>
    %244 = arith.mulf %242, %225 : vector<8x128xf32>
    %245 = arith.mulf %241, %240 : vector<8x128xf32>
    %246 = arith.addf %244, %245 : vector<8x128xf32>
    %247 = math.tanh %246 : vector<8x128xf32>
    %248 = arith.mulf %243, %247 : vector<8x128xf32>
    %c1_i32_73 = arith.constant 1 : i32
    %c8_i32_74 = arith.constant 8 : i32
    %249 = arith.muli %c1_i32_73, %c8_i32_74 : i32
    %250 = tpu.assume_multiple %249, 8 : i32
    %251 = arith.index_cast %250 : i32 to index
    %c0_75 = arith.constant 0 : index
    %252 = vector.load %arg8[%251, %c0_75] : memref<64x512xf32, #tpu.memory_space<vmem>>, vector<8x512xf32>
    %253 = arith.truncf %248 : vector<8x128xf32> to vector<8x128xbf16>
    %cst_76 = arith.constant dense<0.000000e+00> : vector<8x512xf32>
    %254 = tpu.matmul %253, %223, %cst_76 {dimension_numbers = #tpu.dot_dimension_numbers<[1], [0], [0], [1], [0, 0, 1, 1], [], []>} : vector<8x128xbf16>, vector<128x512xbf16>, vector<8x512xf32> -> vector<8x512xf32>
    %255 = arith.addf %252, %254 : vector<8x512xf32>
    %256 = vector.extract_strided_slice %255 {offsets = [0, 0], sizes = [8, 384], strides = [1, 1]} : vector<8x512xf32> to vector<8x384xf32>
    %257 = arith.negf %256 : vector<8x384xf32>
    %258 = math.exp %257 : vector<8x384xf32>
    %cst_77 = arith.constant 1.000000e+00 : f32
    %259 = vector.broadcast %cst_77 : f32 to vector<8x384xf32>
    %260 = arith.addf %259, %258 : vector<8x384xf32>
    %261 = arith.divf %259, %260 : vector<8x384xf32>
    %262 = vector.extract_strided_slice %255 {offsets = [0, 384], sizes = [8, 128], strides = [1, 1]} : vector<8x512xf32> to vector<8x128xf32>
    %263 = math.tanh %262 : vector<8x128xf32>
    %264 = vector.extract_strided_slice %261 {offsets = [0, 0], sizes = [8, 128], strides = [1, 1]} : vector<8x384xf32> to vector<8x128xf32>
    %265 = vector.extract_strided_slice %261 {offsets = [0, 128], sizes = [8, 128], strides = [1, 1]} : vector<8x384xf32> to vector<8x128xf32>
    %266 = vector.extract_strided_slice %261 {offsets = [0, 256], sizes = [8, 128], strides = [1, 1]} : vector<8x384xf32> to vector<8x128xf32>
    %267 = arith.mulf %265, %246 : vector<8x128xf32>
    %268 = arith.mulf %264, %263 : vector<8x128xf32>
    %269 = arith.addf %267, %268 : vector<8x128xf32>
    %270 = math.tanh %269 : vector<8x128xf32>
    %271 = arith.mulf %266, %270 : vector<8x128xf32>
    %c2_i32_78 = arith.constant 2 : i32
    %c8_i32_79 = arith.constant 8 : i32
    %272 = arith.muli %c2_i32_78, %c8_i32_79 : i32
    %273 = tpu.assume_multiple %272, 8 : i32
    %274 = arith.index_cast %273 : i32 to index
    %c0_80 = arith.constant 0 : index
    %275 = vector.load %arg8[%274, %c0_80] : memref<64x512xf32, #tpu.memory_space<vmem>>, vector<8x512xf32>
    %276 = arith.truncf %271 : vector<8x128xf32> to vector<8x128xbf16>
    %cst_81 = arith.constant dense<0.000000e+00> : vector<8x512xf32>
    %277 = tpu.matmul %276, %223, %cst_81 {dimension_numbers = #tpu.dot_dimension_numbers<[1], [0], [0], [1], [0, 0, 1, 1], [], []>} : vector<8x128xbf16>, vector<128x512xbf16>, vector<8x512xf32> -> vector<8x512xf32>
    %278 = arith.addf %275, %277 : vector<8x512xf32>
    %279 = vector.extract_strided_slice %278 {offsets = [0, 0], sizes = [8, 384], strides = [1, 1]} : vector<8x512xf32> to vector<8x384xf32>
    %280 = arith.negf %279 : vector<8x384xf32>
    %281 = math.exp %280 : vector<8x384xf32>
    %cst_82 = arith.constant 1.000000e+00 : f32
    %282 = vector.broadcast %cst_82 : f32 to vector<8x384xf32>
    %283 = arith.addf %282, %281 : vector<8x384xf32>
    %284 = arith.divf %282, %283 : vector<8x384xf32>
    %285 = vector.extract_strided_slice %278 {offsets = [0, 384], sizes = [8, 128], strides = [1, 1]} : vector<8x512xf32> to vector<8x128xf32>
    %286 = math.tanh %285 : vector<8x128xf32>
    %287 = vector.extract_strided_slice %284 {offsets = [0, 0], sizes = [8, 128], strides = [1, 1]} : vector<8x384xf32> to vector<8x128xf32>
    %288 = vector.extract_strided_slice %284 {offsets = [0, 128], sizes = [8, 128], strides = [1, 1]} : vector<8x384xf32> to vector<8x128xf32>
    %289 = vector.extract_strided_slice %284 {offsets = [0, 256], sizes = [8, 128], strides = [1, 1]} : vector<8x384xf32> to vector<8x128xf32>
    %290 = arith.mulf %288, %269 : vector<8x128xf32>
    %291 = arith.mulf %287, %286 : vector<8x128xf32>
    %292 = arith.addf %290, %291 : vector<8x128xf32>
    %293 = math.tanh %292 : vector<8x128xf32>
    %294 = arith.mulf %289, %293 : vector<8x128xf32>
    %c3_i32_83 = arith.constant 3 : i32
    %c8_i32_84 = arith.constant 8 : i32
    %295 = arith.muli %c3_i32_83, %c8_i32_84 : i32
    %296 = tpu.assume_multiple %295, 8 : i32
    %297 = arith.index_cast %296 : i32 to index
    %c0_85 = arith.constant 0 : index
    %298 = vector.load %arg8[%297, %c0_85] : memref<64x512xf32, #tpu.memory_space<vmem>>, vector<8x512xf32>
    %299 = arith.truncf %294 : vector<8x128xf32> to vector<8x128xbf16>
    %cst_86 = arith.constant dense<0.000000e+00> : vector<8x512xf32>
    %300 = tpu.matmul %299, %223, %cst_86 {dimension_numbers = #tpu.dot_dimension_numbers<[1], [0], [0], [1], [0, 0, 1, 1], [], []>} : vector<8x128xbf16>, vector<128x512xbf16>, vector<8x512xf32> -> vector<8x512xf32>
    %301 = arith.addf %298, %300 : vector<8x512xf32>
    %302 = vector.extract_strided_slice %301 {offsets = [0, 0], sizes = [8, 384], strides = [1, 1]} : vector<8x512xf32> to vector<8x384xf32>
    %303 = arith.negf %302 : vector<8x384xf32>
    %304 = math.exp %303 : vector<8x384xf32>
    %cst_87 = arith.constant 1.000000e+00 : f32
    %305 = vector.broadcast %cst_87 : f32 to vector<8x384xf32>
    %306 = arith.addf %305, %304 : vector<8x384xf32>
    %307 = arith.divf %305, %306 : vector<8x384xf32>
    %308 = vector.extract_strided_slice %301 {offsets = [0, 384], sizes = [8, 128], strides = [1, 1]} : vector<8x512xf32> to vector<8x128xf32>
    %309 = math.tanh %308 : vector<8x128xf32>
    %310 = vector.extract_strided_slice %307 {offsets = [0, 0], sizes = [8, 128], strides = [1, 1]} : vector<8x384xf32> to vector<8x128xf32>
    %311 = vector.extract_strided_slice %307 {offsets = [0, 128], sizes = [8, 128], strides = [1, 1]} : vector<8x384xf32> to vector<8x128xf32>
    %312 = vector.extract_strided_slice %307 {offsets = [0, 256], sizes = [8, 128], strides = [1, 1]} : vector<8x384xf32> to vector<8x128xf32>
    %313 = arith.mulf %311, %292 : vector<8x128xf32>
    %314 = arith.mulf %310, %309 : vector<8x128xf32>
    %315 = arith.addf %313, %314 : vector<8x128xf32>
    %316 = math.tanh %315 : vector<8x128xf32>
    %317 = arith.mulf %312, %316 : vector<8x128xf32>
    %c4_i32_88 = arith.constant 4 : i32
    %c8_i32_89 = arith.constant 8 : i32
    %318 = arith.muli %c4_i32_88, %c8_i32_89 : i32
    %319 = tpu.assume_multiple %318, 8 : i32
    %320 = arith.index_cast %319 : i32 to index
    %c0_90 = arith.constant 0 : index
    %321 = vector.load %arg8[%320, %c0_90] : memref<64x512xf32, #tpu.memory_space<vmem>>, vector<8x512xf32>
    %322 = arith.truncf %317 : vector<8x128xf32> to vector<8x128xbf16>
    %cst_91 = arith.constant dense<0.000000e+00> : vector<8x512xf32>
    %323 = tpu.matmul %322, %223, %cst_91 {dimension_numbers = #tpu.dot_dimension_numbers<[1], [0], [0], [1], [0, 0, 1, 1], [], []>} : vector<8x128xbf16>, vector<128x512xbf16>, vector<8x512xf32> -> vector<8x512xf32>
    %324 = arith.addf %321, %323 : vector<8x512xf32>
    %325 = vector.extract_strided_slice %324 {offsets = [0, 0], sizes = [8, 384], strides = [1, 1]} : vector<8x512xf32> to vector<8x384xf32>
    %326 = arith.negf %325 : vector<8x384xf32>
    %327 = math.exp %326 : vector<8x384xf32>
    %cst_92 = arith.constant 1.000000e+00 : f32
    %328 = vector.broadcast %cst_92 : f32 to vector<8x384xf32>
    %329 = arith.addf %328, %327 : vector<8x384xf32>
    %330 = arith.divf %328, %329 : vector<8x384xf32>
    %331 = vector.extract_strided_slice %324 {offsets = [0, 384], sizes = [8, 128], strides = [1, 1]} : vector<8x512xf32> to vector<8x128xf32>
    %332 = math.tanh %331 : vector<8x128xf32>
    %333 = vector.extract_strided_slice %330 {offsets = [0, 0], sizes = [8, 128], strides = [1, 1]} : vector<8x384xf32> to vector<8x128xf32>
    %334 = vector.extract_strided_slice %330 {offsets = [0, 128], sizes = [8, 128], strides = [1, 1]} : vector<8x384xf32> to vector<8x128xf32>
    %335 = vector.extract_strided_slice %330 {offsets = [0, 256], sizes = [8, 128], strides = [1, 1]} : vector<8x384xf32> to vector<8x128xf32>
    %336 = arith.mulf %334, %315 : vector<8x128xf32>
    %337 = arith.mulf %333, %332 : vector<8x128xf32>
    %338 = arith.addf %336, %337 : vector<8x128xf32>
    %339 = math.tanh %338 : vector<8x128xf32>
    %340 = arith.mulf %335, %339 : vector<8x128xf32>
    %c5_i32_93 = arith.constant 5 : i32
    %c8_i32_94 = arith.constant 8 : i32
    %341 = arith.muli %c5_i32_93, %c8_i32_94 : i32
    %342 = tpu.assume_multiple %341, 8 : i32
    %343 = arith.index_cast %342 : i32 to index
    %c0_95 = arith.constant 0 : index
    %344 = vector.load %arg8[%343, %c0_95] : memref<64x512xf32, #tpu.memory_space<vmem>>, vector<8x512xf32>
    %345 = arith.truncf %340 : vector<8x128xf32> to vector<8x128xbf16>
    %cst_96 = arith.constant dense<0.000000e+00> : vector<8x512xf32>
    %346 = tpu.matmul %345, %223, %cst_96 {dimension_numbers = #tpu.dot_dimension_numbers<[1], [0], [0], [1], [0, 0, 1, 1], [], []>} : vector<8x128xbf16>, vector<128x512xbf16>, vector<8x512xf32> -> vector<8x512xf32>
    %347 = arith.addf %344, %346 : vector<8x512xf32>
    %348 = vector.extract_strided_slice %347 {offsets = [0, 0], sizes = [8, 384], strides = [1, 1]} : vector<8x512xf32> to vector<8x384xf32>
    %349 = arith.negf %348 : vector<8x384xf32>
    %350 = math.exp %349 : vector<8x384xf32>
    %cst_97 = arith.constant 1.000000e+00 : f32
    %351 = vector.broadcast %cst_97 : f32 to vector<8x384xf32>
    %352 = arith.addf %351, %350 : vector<8x384xf32>
    %353 = arith.divf %351, %352 : vector<8x384xf32>
    %354 = vector.extract_strided_slice %347 {offsets = [0, 384], sizes = [8, 128], strides = [1, 1]} : vector<8x512xf32> to vector<8x128xf32>
    %355 = math.tanh %354 : vector<8x128xf32>
    %356 = vector.extract_strided_slice %353 {offsets = [0, 0], sizes = [8, 128], strides = [1, 1]} : vector<8x384xf32> to vector<8x128xf32>
    %357 = vector.extract_strided_slice %353 {offsets = [0, 128], sizes = [8, 128], strides = [1, 1]} : vector<8x384xf32> to vector<8x128xf32>
    %358 = vector.extract_strided_slice %353 {offsets = [0, 256], sizes = [8, 128], strides = [1, 1]} : vector<8x384xf32> to vector<8x128xf32>
    %359 = arith.mulf %357, %338 : vector<8x128xf32>
    %360 = arith.mulf %356, %355 : vector<8x128xf32>
    %361 = arith.addf %359, %360 : vector<8x128xf32>
    %362 = math.tanh %361 : vector<8x128xf32>
    %363 = arith.mulf %358, %362 : vector<8x128xf32>
    %c6_i32_98 = arith.constant 6 : i32
    %c8_i32_99 = arith.constant 8 : i32
    %364 = arith.muli %c6_i32_98, %c8_i32_99 : i32
    %365 = tpu.assume_multiple %364, 8 : i32
    %366 = arith.index_cast %365 : i32 to index
    %c0_100 = arith.constant 0 : index
    %367 = vector.load %arg8[%366, %c0_100] : memref<64x512xf32, #tpu.memory_space<vmem>>, vector<8x512xf32>
    %368 = arith.truncf %363 : vector<8x128xf32> to vector<8x128xbf16>
    %cst_101 = arith.constant dense<0.000000e+00> : vector<8x512xf32>
    %369 = tpu.matmul %368, %223, %cst_101 {dimension_numbers = #tpu.dot_dimension_numbers<[1], [0], [0], [1], [0, 0, 1, 1], [], []>} : vector<8x128xbf16>, vector<128x512xbf16>, vector<8x512xf32> -> vector<8x512xf32>
    %370 = arith.addf %367, %369 : vector<8x512xf32>
    %371 = vector.extract_strided_slice %370 {offsets = [0, 0], sizes = [8, 384], strides = [1, 1]} : vector<8x512xf32> to vector<8x384xf32>
    %372 = arith.negf %371 : vector<8x384xf32>
    %373 = math.exp %372 : vector<8x384xf32>
    %cst_102 = arith.constant 1.000000e+00 : f32
    %374 = vector.broadcast %cst_102 : f32 to vector<8x384xf32>
    %375 = arith.addf %374, %373 : vector<8x384xf32>
    %376 = arith.divf %374, %375 : vector<8x384xf32>
    %377 = vector.extract_strided_slice %370 {offsets = [0, 384], sizes = [8, 128], strides = [1, 1]} : vector<8x512xf32> to vector<8x128xf32>
    %378 = math.tanh %377 : vector<8x128xf32>
    %379 = vector.extract_strided_slice %376 {offsets = [0, 0], sizes = [8, 128], strides = [1, 1]} : vector<8x384xf32> to vector<8x128xf32>
    %380 = vector.extract_strided_slice %376 {offsets = [0, 128], sizes = [8, 128], strides = [1, 1]} : vector<8x384xf32> to vector<8x128xf32>
    %381 = vector.extract_strided_slice %376 {offsets = [0, 256], sizes = [8, 128], strides = [1, 1]} : vector<8x384xf32> to vector<8x128xf32>
    %382 = arith.mulf %380, %361 : vector<8x128xf32>
    %383 = arith.mulf %379, %378 : vector<8x128xf32>
    %384 = arith.addf %382, %383 : vector<8x128xf32>
    %385 = math.tanh %384 : vector<8x128xf32>
    %386 = arith.mulf %381, %385 : vector<8x128xf32>
    %c7_i32_103 = arith.constant 7 : i32
    %c8_i32_104 = arith.constant 8 : i32
    %387 = arith.muli %c7_i32_103, %c8_i32_104 : i32
    %388 = tpu.assume_multiple %387, 8 : i32
    %389 = arith.index_cast %388 : i32 to index
    %c0_105 = arith.constant 0 : index
    %390 = vector.load %arg8[%389, %c0_105] : memref<64x512xf32, #tpu.memory_space<vmem>>, vector<8x512xf32>
    %391 = arith.truncf %386 : vector<8x128xf32> to vector<8x128xbf16>
    %cst_106 = arith.constant dense<0.000000e+00> : vector<8x512xf32>
    %392 = tpu.matmul %391, %223, %cst_106 {dimension_numbers = #tpu.dot_dimension_numbers<[1], [0], [0], [1], [0, 0, 1, 1], [], []>} : vector<8x128xbf16>, vector<128x512xbf16>, vector<8x512xf32> -> vector<8x512xf32>
    %393 = arith.addf %390, %392 : vector<8x512xf32>
    %394 = vector.extract_strided_slice %393 {offsets = [0, 0], sizes = [8, 384], strides = [1, 1]} : vector<8x512xf32> to vector<8x384xf32>
    %395 = arith.negf %394 : vector<8x384xf32>
    %396 = math.exp %395 : vector<8x384xf32>
    %cst_107 = arith.constant 1.000000e+00 : f32
    %397 = vector.broadcast %cst_107 : f32 to vector<8x384xf32>
    %398 = arith.addf %397, %396 : vector<8x384xf32>
    %399 = arith.divf %397, %398 : vector<8x384xf32>
    %400 = vector.extract_strided_slice %393 {offsets = [0, 384], sizes = [8, 128], strides = [1, 1]} : vector<8x512xf32> to vector<8x128xf32>
    %401 = math.tanh %400 : vector<8x128xf32>
    %402 = vector.extract_strided_slice %399 {offsets = [0, 0], sizes = [8, 128], strides = [1, 1]} : vector<8x384xf32> to vector<8x128xf32>
    %403 = vector.extract_strided_slice %399 {offsets = [0, 128], sizes = [8, 128], strides = [1, 1]} : vector<8x384xf32> to vector<8x128xf32>
    %404 = vector.extract_strided_slice %399 {offsets = [0, 256], sizes = [8, 128], strides = [1, 1]} : vector<8x384xf32> to vector<8x128xf32>
    %405 = arith.mulf %403, %384 : vector<8x128xf32>
    %406 = arith.mulf %402, %401 : vector<8x128xf32>
    %407 = arith.addf %405, %406 : vector<8x128xf32>
    %408 = math.tanh %407 : vector<8x128xf32>
    %409 = arith.mulf %404, %408 : vector<8x128xf32>
    %c8_i32_108 = arith.constant 8 : i32
    %410 = arith.truncf %409 : vector<8x128xf32> to vector<8x128xbf16>
    %c0_109 = arith.constant 0 : index
    %c0_110 = arith.constant 0 : index
    %411 = vector.load %arg5[%c0_109, %c0_110] : memref<128x128xbf16, #tpu.memory_space<vmem>>, vector<128x128xbf16>
    %cst_111 = arith.constant dense<0.000000e+00> : vector<8x128xf32>
    %412 = tpu.matmul %410, %411, %cst_111 {dimension_numbers = #tpu.dot_dimension_numbers<[1], [0], [0], [1], [0, 0, 1, 1], [], []>} : vector<8x128xbf16>, vector<128x128xbf16>, vector<8x128xf32> -> vector<8x128xf32>
    %c0_112 = arith.constant 0 : index
    %c0_113 = arith.constant 0 : index
    %413 = vector.load %arg6[%c0_112, %c0_113] : memref<1x128xf32, #tpu.memory_space<vmem>>, vector<1x128xf32>
    %414 = vector.broadcast %413 : vector<1x128xf32> to vector<8x128xf32>
    %415 = arith.addf %412, %414 : vector<8x128xf32>
    %c0_114 = arith.constant 0 : index
    %c0_115 = arith.constant 0 : index
    %416 = vector.load %arg7[%c0_114, %c0_115] : memref<8x128xf32, #tpu.memory_space<vmem>>, vector<8x128xf32>
    tpu.vector_store %arg7[%c0_114, %c0_115], %415 {strides = array<i32>} : memref<8x128xf32, #tpu.memory_space<vmem>>, vector<8x128xf32>,
    return
  }
}

</mosaic_0001>

<bundles_post_ra>
// kernel: tpu_custom_call.1
= control target key start
LH: loop header
LB: loop body
LE: loop exit
PB: predicated region body
PF: predicated region fallthrough
CT: control target
= control target key end

     0   :  { %12 = vsyncpa [#allocation5], 0  ;;  %s5248_s0 = inlined_call_operand.vmem [shape: bf16[64,4], index: 0, kind: input, shape index: {}]   ;;  %s5249_s1 = inlined_call_operand.vmem [shape: bf16[4,512], index: 1, kind: input, shape index: {}]   ;;  %s5250_s2 = inlined_call_operand.hbm [shape: bf16[1,128,512], index: 2, kind: input, shape index: {}]   ;;  %s5251_s3 = inlined_call_operand.hbm [shape: bf16[2,128,512], index: 3, kind: input, shape index: {}]   ;;  %s5252_s4 = inlined_call_operand.vmem [shape: f32[2,1,512], index: 4, kind: input, shape index: {}]   ;;  %s5253_s5 = inlined_call_operand.hbm [shape: bf16[128,128], index: 5, kind: input, shape index: {}]   ;;  %s5254_s6 = inlined_call_operand.vmem [shape: f32[1,128], index: 6, kind: input, shape index: {}]   ;;  %s5255_s7 = inlined_call_operand.hbm [shape: f32[8,128], index: 7, kind: output, shape index: {}]  }
   0x1   :  { %13 = vsyncpa [#allocation8], 0 }
   0x2   :  { %14 = vsyncpa [#allocation6], 0  ;;  %s3925_s24 = smov [#allocation7]   ;;  %s3926_s26 = smov [#allocation4]  }
   0x3   :  { %s36_s25 = sshll.u32 %s3925_s24, 4  ;;  %s24_s27 = sshll.u32 %s3926_s26, 4  ;;  %s37_s25 = int_to_ptr.vmem [resolvable:$true] %s36_s25  ;;  %s3977_s27 = int_to_ptr.vmem [resolvable:$true] %s24_s27 }
   0x4   :  { %s3831_s30 = scalar_lea.hbm %s5251_s3, 8192 }
   0x5   :  { %p3832_p0 = scmp.ne.s32.totalorder %s5251_s3, %s3831_s30  ;;  %p3835_p1 = scmp.lt.u32.totalorder %s3831_s30, %s5251_s3 }
   0x7   :  { %p3837_p2 = pnand %p3835_p1, %p3832_p0 }
   0x9   :  { %3840 = shalt.err (!%p3837_p2)
}
   0xa   :  { %s3841_s12 = scalar_lea.vmem %s37_s25, 8192  ;;  %p3846_p4 = scmp.lt.s32.totalorder %s37_s25, %s37_s25 }
   0xb   :  { %p3842_p3 = scmp.ne.s32.totalorder %s37_s25, %s3841_s12  ;;  %p3847_p5 = scmp.lt.s32.totalorder %s3841_s12, %s3841_s12 }
   0xd   :  { %p3848_p6 = por %p3847_p5, %p3846_p4 }
   0xf   :  { %p3849_p7 = pnand %p3848_p6, %p3842_p3 }
  0x11   :  { %3852 = shalt.err (!%p3849_p7)
}
  0x12   :  { %s3927_s13 = smov 256   ;;  %s3928_s14 = smov 16  }
  0x13   :  { %42 = dma.hbm_to_vmem [thread:$0]  %s5251_s3, 8192, %s37_s25, [#allocation8], %s3927_s13, %s3927_s13, %s3928_s14  }
  0x14   :  { %s3853_s19 = scalar_lea.hbm %s5250_s2, 4096 }
  0x15   :  { %p3854_p8 = scmp.ne.s32.totalorder %s5250_s2, %s3853_s19  ;;  %p3857_p9 = scmp.lt.u32.totalorder %s3853_s19, %s5250_s2 }
  0x17   :  { %p3859_p10 = pnand %p3857_p9, %p3854_p8 }
  0x19   :  { %3862 = shalt.err (!%p3859_p10)
}
  0x1a   :  { %s3863_s24 = scalar_lea.vmem %s3977_s27, 4096  ;;  %p3868_p12 = scmp.lt.s32.totalorder %s3977_s27, %s3977_s27 }
  0x1b   :  { %p3864_p11 = scmp.ne.s32.totalorder %s3977_s27, %s3863_s24  ;;  %p3869_p13 = scmp.lt.s32.totalorder %s3863_s24, %s3863_s24 }
  0x1d   :  { %p3870_p0 = por %p3869_p13, %p3868_p12 }
  0x1f   :  { %p3871_p1 = pnand %p3870_p0, %p3864_p11 }
  0x21   :  { %3874 = shalt.err (!%p3871_p1)
}
  0x22   :  { %30 = dma.hbm_to_vmem [thread:$0]  %s5250_s2, 4096, %s3977_s27, [#allocation5], %s3927_s13, %s3927_s13, %s3928_s14  }
  0x23   :  { %s3929_s26 = smov [#allocation9]   ;;  %s3875_s8 = scalar_lea.hbm %s5253_s5, 1024 }
  0x24   :  { %s50_s28 = sshll.u32 %s3929_s26, 4  ;;  %p3876_p2 = scmp.ne.s32.totalorder %s5253_s5, %s3875_s8  ;;  %s51_s28 = int_to_ptr.vmem [resolvable:$true] %s50_s28 }
  0x25   :  { %p3879_p3 = scmp.lt.u32.totalorder %s3875_s8, %s5253_s5 }
  0x27   :  { %p3881_p4 = pnand %p3879_p3, %p3876_p2 }
  0x29   :  { %3884 = shalt.err (!%p3881_p4)
}
  0x2a   :  { %s3885_s15 = scalar_lea.vmem %s51_s28, 1024  ;;  %p3890_p6 = scmp.lt.s32.totalorder %s51_s28, %s51_s28 }
  0x2b   :  { %p3886_p5 = scmp.ne.s32.totalorder %s51_s28, %s3885_s15  ;;  %p3891_p7 = scmp.lt.s32.totalorder %s3885_s15, %s3885_s15 }
  0x2d   :  { %p3892_p8 = por %p3891_p7, %p3890_p6 }
  0x2f   :  { %p3893_p9 = pnand %p3892_p8, %p3886_p5 }
  0x31   :  { %3896 = shalt.err (!%p3893_p9)
}
  0x32   :  { %s3930_s2 = smov 64   ;;  %s3931_s27 = smov 4  }
  0x33   :  { %56 = dma.hbm_to_vmem [thread:$0]  %s5253_s5, 1024, %s51_s28, [#allocation8], %s3930_s2, %s3930_s2, %s3931_s27  }
  0x34   :  { %3919 = dma.done.wait [#allocation5], 4096  }
  0x35   :  { %3920 = vsyncadd [#allocation5], 4294963200 }
  0x36   :  { %3921 = dma.done.wait [#allocation8], 9216  }
  0x37   :  { %3922 = vsyncadd [#allocation8], 4294958080  ;;  %v80_v0 = vlaneseq  ;;  %v3932_v1 = vmov 1983009808   ;;  %v5260_v3 = vmov 0   ;;  %v77_v7 = vld [vmem:[%s5249_s1] sm:$0xff] }
  0x38   :  { %v123_v2 = vunpack.c.l.s4 %v3932_v1  ;;  %196 = vmatprep.mubr.bf16.mxu0 %v5260_v3  ;;  %269 = vmatprep.mubr.bf16.mxu1 %v5260_v3  ;;  %vm151_vm0 = vcmask 1041408   ;;  %v121_v9 = vcombine.high %v77_v7, %v77_v7  ;;  %v4028_v13 = vld [vmem:[#allocation7 + $0x4] ss:$16 sps:$4 sm:$0xff]   ;;  %v4033_v17 = vld [vmem:[#allocation7 + $0xc] ss:$16 sps:$4 sm:$0xff]   ;;  %vm138_vm1 = vcmask 31744  }
  0x39   :  { %v4022_v4 = vshrl.u32 %v80_v0, 7  ;;  %v3355_v14 = vld [vmem:[%s5248_s0] sm:$0xff]   ;;  %v4040_v20 = vld [vmem:[#allocation7 + $0x8] ss:$16 sps:$4 sm:$0xff]   ;;  %v4044_v21 = vld [vmem:[#allocation7 + $0x2c] ss:$16 sps:$4 sm:$0xff]  }
  0x3a   :  { %v124_v5 = vunpack.c.0.s8 %v123_v2  ;;  %v4035_v18 = vld [vmem:[#allocation7] ss:$16 sps:$4 sm:$0xff]   ;;  %v4038_v19 = vld [vmem:[#allocation7 + $0x24] ss:$16 sps:$4 sm:$0xff]   ;;  %v4055_v24 = vld [vmem:[#allocation7 + $0x28] ss:$16 sps:$4 sm:$0xff]  }
  0x3b   :  { %5264 = vst [vmem:[#allocation14_spill] sm:$0xff] %v4022_v4  ;;  %v4047_v22 = vld [vmem:[#allocation7 + $0x20] ss:$16 sps:$4 sm:$0xff]   ;;  %v4052_v23 = vld [vmem:[#allocation7 + $0x44] ss:$16 sps:$4 sm:$0xff]   ;;  %v3368_v25 = vld [vmem:[%s5248_s0 + $0x8] sm:$0xff]  }
  0x3c   :  { %v127_v6 = vsub.s32 %v124_v5, %v4022_v4  ;;  %v4062_v26 = vld [vmem:[#allocation7 + $0x4c] ss:$16 sps:$4 sm:$0xff]   ;;  %v4065_v27 = vld [vmem:[#allocation7 + $0x40] ss:$16 sps:$4 sm:$0xff]   ;;  %v4068_v28 = vld [vmem:[#allocation7 + $0x64] ss:$16 sps:$4 sm:$0xff]  }
  0x3d   :  { %v4071_v29 = vld [vmem:[#allocation7 + $0x48] ss:$16 sps:$4 sm:$0xff]   ;;  %v4075_v30 = vld [vmem:[#allocation7 + $0x6c] ss:$16 sps:$4 sm:$0xff]   ;;  %v4078_v31 = vld [vmem:[#allocation7 + $0x60] ss:$16 sps:$4 sm:$0xff]  }
  0x3e   :  { %v128_v8 = vrot.slane %v77_v7, %v127_v6  ;;  %v135_v12 = vrot.slane %v121_v9, %v127_v6  ;;  %v4083_v32 = vld [vmem:[#allocation7 + $0x84] ss:$16 sps:$4 sm:$0xff]   ;;  %v4086_v33 = vld [vmem:[#allocation7 + $0x68] ss:$16 sps:$4 sm:$0xff]   ;;  %v4093_v35 = vld [vmem:[#allocation7 + $0x8c] ss:$16 sps:$4 sm:$0xff]  }
  0x3f   :  { %v3381_v34 = vld [vmem:[%s5248_s0 + $0x10] sm:$0xff]   ;;  %v4102_v38 = vld [vmem:[#allocation7 + $0x88] ss:$16 sps:$4 sm:$0xff]   ;;  %v4108_v40 = vld [vmem:[#allocation7 + $0xac] ss:$16 sps:$4 sm:$0xff]   ;;  %v5259_v51 = vsub.s32 0, %v4022_v4 }
  0x40   :  { %v136_v10 = vcombine.high %v128_v8, %v128_v8  ;;  %v153_v11 = vsel %vm151_vm0, %v128_v8, 0  ;;  %v137_v15 = vcombine.high %v135_v12, %v135_v12  ;;  %v159_v16 = vsel %vm151_vm0, %v135_v12, 0  ;;  %v4096_v36 = vld [vmem:[#allocation7 + $0x80] ss:$16 sps:$4 sm:$0xff]   ;;  %v4099_v37 = vld [vmem:[#allocation7 + $0xa4] ss:$16 sps:$4 sm:$0xff]  }
  0x41   :  { %v4106_v39 = vld [vmem:[#allocation7 + $0xa0] ss:$16 sps:$4 sm:$0xff]   ;;  %v4110_v41 = vld [vmem:[#allocation7 + $0xc4] ss:$16 sps:$4 sm:$0xff]   ;;  %v4114_v42 = vld [vmem:[#allocation7 + $0xa8] ss:$16 sps:$4 sm:$0xff]  }
  0x42   :  { %3149 = vmatprep.subr.msk.bf16.mxu0 %vm151_vm0, %v136_v10  ;;  %3154 = vmatprep.subr.msk.bf16.mxu1 %vm151_vm0, %v137_v15  ;;  %v3394_v43 = vld [vmem:[%s5248_s0 + $0x18] sm:$0xff]   ;;  %v4125_v45 = vld [vmem:[#allocation7 + $0xc0] ss:$16 sps:$4 sm:$0xff]   ;;  %v4128_v46 = vld [vmem:[#allocation7 + $0xe4] ss:$16 sps:$4 sm:$0xff]   ;;  %v5258_v52 = vsub.s32 2, %v4022_v4 }
  0x43   :  { %165 = vmatpush1.bf16.msra.mxu0 %v153_v11  ;;  %238 = vmatpush1.bf16.msra.mxu1 %v159_v16  ;;  %v4121_v44 = vld [vmem:[#allocation7 + $0xcc] ss:$16 sps:$4 sm:$0xff]   ;;  %v4131_v47 = vld [vmem:[#allocation7 + $0xc8] ss:$16 sps:$4 sm:$0xff]   ;;  %v4137_v49 = vld [vmem:[#allocation7 + $0xe0] ss:$16 sps:$4 sm:$0xff]  }
  0x44   :  { %541 = vmatprep.subr.bf16.mxu0 %v4028_v13  ;;  %582 = vmatprep.subr.bf16.mxu1 %v4033_v17  ;;  %v4134_v48 = vld [vmem:[#allocation7 + $0xec] ss:$16 sps:$4 sm:$0xff]   ;;  %v4143_v50 = vld [vmem:[#allocation7 + $0xe8] ss:$16 sps:$4 sm:$0xff]   ;;  %v78_v53 = vld [vmem:[%s5252_s4] sm:$0xf] }
  0x45   :  { %v5257_v54 = vsub.s32 1, %v4022_v4  ;;  %v5256_v55 = vsub.s32 3, %v4022_v4  ;;  %v4201_v57 = vrot.slane %v78_v53, %v5259_v51  ;;  %v4207_v59 = vrot.slane %v78_v53, %v5258_v52  ;;  %s3936_s28 = smov [#allocation10]  }
  0x46   :  { %3150 = vmatmul.mubr.msk.bf16.vlgmr.msra.gmra.mrb[0].mxu0 %vm138_vm1, %v3355_v14  ;;  %3155 = vmatmul.mubr.msk.bf16.vlgmr.msra.gmra.mrb[0].mxu1 %vm138_vm1, %v3355_v14  ;;  %vm3935_vm2 = vmmov 0   ;;  %s3128_s29 = sshll.u32 %s3936_s28, 4  ;;  %s3129_s29 = int_to_ptr.vmem [resolvable:$true] %s3128_s29 }
  0x47   :  { %542 = vmatpush1.bf16.msra.mxu0 %v4035_v18  ;;  %206 = vmatprep.mubr.bf16.mxu0 %v5260_v3  ;;  %v87_v60 = vrot.slane %v78_v53, %v5257_v54  ;;  %v4213_v63 = vrot.slane %v78_v53, %v5256_v55  ;;  %s3897_s30 = scalar_lea.vmem %s3129_s29, 128  ;;  %p3902_p11 = scmp.lt.s32.totalorder %s3129_s29, %s3129_s29 }
  0x48   :  { %543 = vmatprep.subr.bf16.mxu0 %v4038_v19  ;;  %583 = vmatpush1.bf16.msra.mxu1 %v4040_v20  ;;  %p3898_p10 = scmp.ne.s32.totalorder %s3129_s29, %s3897_s30  ;;  %p3903_p12 = scmp.lt.s32.totalorder %s3897_s30, %s3897_s30 }
  0x49   :  { %279 = vmatprep.mubr.bf16.mxu1 %v5260_v3  ;;  %584 = vmatprep.subr.bf16.mxu1 %v4044_v21 }
  0x4a   :  { %p3904_p13 = por %p3903_p12, %p3902_p11 }
  0x4b   :  { %544 = vmatpush1.bf16.msra.mxu0 %v4047_v22 }
  0x4c   :  { %545 = vmatprep.subr.bf16.mxu0 %v4052_v23  ;;  %585 = vmatpush1.bf16.msra.mxu1 %v4055_v24  ;;  %p3905_p0 = pnand %p3904_p13, %p3898_p10 }
  0x4d   :  { %586 = vmatprep.subr.bf16.mxu1 %v4062_v26 }
  0x4e   :  { %3151 = vmatmul.mubr.msk.bf16.gmra.mrb[4].mxu0 %vm138_vm1, %v3368_v25  ;;  %3156 = vmatmul.mubr.msk.bf16.gmra.mrb[4].mxu1 %vm138_vm1, %v3368_v25 }
  0x4f   :  { %546 = vmatpush1.bf16.msra.mxu0 %v4065_v27  ;;  %216 = vmatprep.mubr.bf16.mxu0 %v5260_v3 }
  0x50   :  { %547 = vmatprep.subr.bf16.mxu0 %v4068_v28  ;;  %587 = vmatpush1.bf16.msra.mxu1 %v4071_v29 }
  0x51   :  { %289 = vmatprep.mubr.bf16.mxu1 %v5260_v3  ;;  %588 = vmatprep.subr.bf16.mxu1 %v4075_v30 }
  0x53   :  { %548 = vmatpush1.bf16.msra.mxu0 %v4078_v31 }
  0x54   :  { %549 = vmatprep.subr.bf16.mxu0 %v4083_v32  ;;  %589 = vmatpush1.bf16.msra.mxu1 %v4086_v33 }
  0x55   :  { %590 = vmatprep.subr.bf16.mxu1 %v4093_v35 }
  0x56   :  { %3152 = vmatmul.mubr.msk.bf16.gmra.mrb[8].mxu0 %vm138_vm1, %v3381_v34  ;;  %3157 = vmatmul.mubr.msk.bf16.gmra.mrb[8].mxu1 %vm138_vm1, %v3381_v34 }
  0x57   :  { %550 = vmatpush1.bf16.msra.mxu0 %v4096_v36  ;;  %226 = vmatprep.mubr.bf16.mxu0 %v5260_v3 }
  0x58   :  { %551 = vmatprep.subr.bf16.mxu0 %v4099_v37  ;;  %591 = vmatpush1.bf16.msra.mxu1 %v4102_v38 }
  0x59   :  { %299 = vmatprep.mubr.bf16.mxu1 %v5260_v3  ;;  %592 = vmatprep.subr.bf16.mxu1 %v4108_v40 }
  0x5b   :  { %552 = vmatpush1.bf16.msra.mxu0 %v4106_v39 }
  0x5c   :  { %553 = vmatprep.subr.bf16.mxu0 %v4110_v41  ;;  %593 = vmatpush1.bf16.msra.mxu1 %v4114_v42 }
  0x5d   :  { %594 = vmatprep.subr.bf16.mxu1 %v4121_v44 }
  0x5e   :  { %3153 = vmatmul.mubr.msk.bf16.gmra.mrb[12].mxu0 %vm138_vm1, %v3394_v43  ;;  %3158 = vmatmul.mubr.msk.bf16.gmra.mrb[12].mxu1 %vm138_vm1, %v3394_v43 }
  0x5f   :  { %554 = vmatpush1.bf16.msra.mxu0 %v4125_v45  ;;  %573 = vmatprep.mubr.bf16.mxu0 %v5260_v3 }
  0x60   :  { %555 = vmatprep.subr.bf16.mxu0 %v4128_v46  ;;  %595 = vmatpush1.bf16.msra.mxu1 %v4131_v47 }
  0x61   :  { %614 = vmatprep.mubr.bf16.mxu1 %v5260_v3  ;;  %596 = vmatprep.subr.bf16.mxu1 %v4134_v48 }
  0x63   :  { %556 = vmatpush1.bf16.msra.mxu0 %v4137_v49 }
  0x64   :  { %660 = vmatprep.subr.bf16.mxu0 %v4028_v13  ;;  %597 = vmatpush1.bf16.msra.mxu1 %v4143_v50 }
  0x65   :  { %701 = vmatprep.subr.bf16.mxu1 %v4033_v17 }
  0x66   :  { %574 = vmatmul.mubr.bf16.vlgmr.msra.gmra.mrb[16].mxu0 %v5260_v3 }
  0x67   :  { %661 = vmatpush1.bf16.msra.mxu0 %v4035_v18  ;;  %692 = vmatprep.mubr.bf16.mxu0 %v5260_v3 }
  0x68   :  { %615 = vmatmul.mubr.bf16.vlgmr.msra.gmra.mrb[16].mxu1 %v5260_v3  ;;  %662 = vmatprep.subr.bf16.mxu0 %v4038_v19 }
  0x69   :  { %702 = vmatpush1.bf16.msra.mxu1 %v4040_v20  ;;  %733 = vmatprep.mubr.bf16.mxu1 %v5260_v3 }
  0x6a   :  { %703 = vmatprep.subr.bf16.mxu1 %v4044_v21 }
  0x6b   :  { %663 = vmatpush1.bf16.msra.mxu0 %v4047_v22 }
  0x6c   :  { %664 = vmatprep.subr.bf16.mxu0 %v4052_v23 }
  0x6d   :  { %704 = vmatpush1.bf16.msra.mxu1 %v4055_v24 }
  0x6e   :  { %705 = vmatprep.subr.bf16.mxu1 %v4062_v26 }
  0x6f   :  { %665 = vmatpush1.bf16.msra.mxu0 %v4065_v27 }
  0x70   :  { %666 = vmatprep.subr.bf16.mxu0 %v4068_v28 }
  0x71   :  { %706 = vmatpush1.bf16.msra.mxu1 %v4071_v29 }
  0x72   :  { %707 = vmatprep.subr.bf16.mxu1 %v4075_v30 }
  0x73   :  { %667 = vmatpush1.bf16.msra.mxu0 %v4078_v31 }
  0x74   :  { %668 = vmatprep.subr.bf16.mxu0 %v4083_v32 }
  0x75   :  { %708 = vmatpush1.bf16.msra.mxu1 %v4086_v33 }
  0x76   :  { %709 = vmatprep.subr.bf16.mxu1 %v4093_v35 }
  0x77   :  { %669 = vmatpush1.bf16.msra.mxu0 %v4096_v36 }
  0x78   :  { %670 = vmatprep.subr.bf16.mxu0 %v4099_v37 }
  0x79   :  { %710 = vmatpush1.bf16.msra.mxu1 %v4102_v38 }
  0x7a   :  { %711 = vmatprep.subr.bf16.mxu1 %v4108_v40 }
  0x7b   :  { %671 = vmatpush1.bf16.msra.mxu0 %v4106_v39 }
  0x7c   :  { %672 = vmatprep.subr.bf16.mxu0 %v4110_v41 }
  0x7d   :  { %712 = vmatpush1.bf16.msra.mxu1 %v4114_v42 }
  0x7e   :  { %713 = vmatprep.subr.bf16.mxu1 %v4121_v44 }
  0x7f   :  { %673 = vmatpush1.bf16.msra.mxu0 %v4125_v45 }
  0x80   :  { %674 = vmatprep.subr.bf16.mxu0 %v4128_v46 }
  0x81   :  { %714 = vmatpush1.bf16.msra.mxu1 %v4131_v47 }
  0x82   :  { %715 = vmatprep.subr.bf16.mxu1 %v4134_v48 }
  0x83   :  { %675 = vmatpush1.bf16.msra.mxu0 %v4137_v49 }
  0x84   :  { %780 = vmatprep.subr.bf16.mxu0 %v4028_v13 }
  0x85   :  { %716 = vmatpush1.bf16.msra.mxu1 %v4143_v50 }
  0x86   :  { %821 = vmatprep.subr.bf16.mxu1 %v4033_v17 }
 0x119   :  { %v4197_v56 = vpop.f32.mrb[0].mxu0  ;;  %v271_v62 = vpop.f32.mrb[0].mxu1 }
 0x11a   :  { %v4203_v58 = vpop.f32.mrb[1].mxu0  ;;  %v273_v2 = vpop.f32.mrb[1].mxu1 }
 0x11b   :  { %v202_v61 = vpop.f32.mrb[2].mxu0  ;;  %v275_v6 = vpop.f32.mrb[2].mxu1 }
 0x11c   :  { %v4216_v0 = vadd.f32 %v202_v61, %v4201_v57  ;;  %v204_v1 = vpop.f32.mrb[3].mxu0  ;;  %v4221_v7 = vadd.f32 %v275_v6, %v4207_v59  ;;  %v277_v8 = vpop.f32.mrb[3].mxu1 }
 0x11d   :  { %v4218_v5 = vadd.f32 %v204_v1, %v87_v60  ;;  %v4224_v9 = vadd.f32 %v277_v8, %v4213_v63 }
 0x121   :  { %v208_v10 = vpop.f32.mrb[4].mxu0  ;;  %v281_v16 = vpop.f32.mrb[4].mxu1 }
 0x122   :  { %v4227_v11 = vadd.f32 %v208_v10, %v4201_v57  ;;  %v210_v12 = vpop.f32.mrb[5].mxu0  ;;  %v4235_v43 = vadd.f32 %v281_v16, %v4207_v59  ;;  %v283_v53 = vpop.f32.mrb[5].mxu1 }
 0x123   :  { %v4229_v14 = vadd.f32 %v210_v12, %v87_v60  ;;  %v212_v15 = vpop.f32.mrb[6].mxu0  ;;  %v4240_v1 = vadd.f32 %v283_v53, %v4213_v63  ;;  %v285_v6 = vpop.f32.mrb[6].mxu1 }
 0x124   :  { %v4232_v25 = vadd.f32 %v212_v15, %v4201_v57  ;;  %v214_v34 = vpop.f32.mrb[7].mxu0  ;;  %v4243_v8 = vadd.f32 %v285_v6, %v4207_v59  ;;  %v287_v10 = vpop.f32.mrb[7].mxu1 }
 0x125   :  { %v4237_v61 = vadd.f32 %v214_v34, %v87_v60  ;;  %5267 = vst [vmem:[#allocation17_spill] sm:$0xff] %v4240_v1  ;;  %v4246_v12 = vadd.f32 %v287_v10, %v4213_v63 }
 0x126   :  { %5265 = vst [vmem:[#allocation15_spill] sm:$0xff] %v4232_v25  ;;  %5268 = vst [vmem:[#allocation18_spill] sm:$0xff] %v4243_v8 }
 0x127   :  { %5266 = vst [vmem:[#allocation16_spill] sm:$0xff] %v4237_v61  ;;  %5269 = vst [vmem:[#allocation19_spill] sm:$0xff] %v4246_v12 }
 0x129   :  { %v218_v15 = vpop.f32.mrb[8].mxu0  ;;  %v291_v52 = vpop.f32.mrb[8].mxu1 }
 0x12a   :  { %v4249_v55 = vadd.f32 %v218_v15, %v4201_v57  ;;  %v220_v16 = vpop.f32.mrb[9].mxu0  ;;  %v4257_v6 = vadd.f32 %v291_v52, %v4207_v59  ;;  %v293_v3 = vpop.f32.mrb[9].mxu1 }
 0x12b   :  { %v4251_v54 = vadd.f32 %v220_v16, %v87_v60  ;;  %v222_v34 = vpop.f32.mrb[10].mxu0  ;;  %v4262_v10 = vadd.f32 %v293_v3, %v4213_v63  ;;  %v295_v15 = vpop.f32.mrb[10].mxu1 }
 0x12c   :  { %5270 = vst [vmem:[#allocation20_spill] sm:$0xff] %v4249_v55  ;;  %v4254_v53 = vadd.f32 %v222_v34, %v4201_v57  ;;  %v224_v51 = vpop.f32.mrb[11].mxu0  ;;  %5273 = vst [vmem:[#allocation23_spill] sm:$0xff] %v4257_v6  ;;  %v4265_v55 = vadd.f32 %v295_v15, %v4207_v59  ;;  %v297_v16 = vpop.f32.mrb[11].mxu1 }
 0x12d   :  { %5271 = vst [vmem:[#allocation21_spill] sm:$0xff] %v4251_v54  ;;  %v4259_v4 = vadd.f32 %v224_v51, %v87_v60  ;;  %5275 = vst [vmem:[#allocation25_spill] sm:$0xff] %v4262_v10  ;;  %v4268_v54 = vadd.f32 %v297_v16, %v4213_v63 }
 0x12e   :  { %5272 = vst [vmem:[#allocation22_spill] sm:$0xff] %v4254_v53  ;;  %5276 = vst [vmem:[#allocation26_spill] sm:$0xff] %v4265_v55 }
 0x12f   :  { %5274 = vst [vmem:[#allocation24_spill] sm:$0xff] %v4259_v4  ;;  %5277 = vst [vmem:[#allocation27_spill] sm:$0xff] %v4268_v54 }
 0x131   :  { %v228_v34 = vpop.f32.mrb[12].mxu0  ;;  %v301_v4 = vpop.f32.mrb[12].mxu1 }
 0x132   :  { %v4271_v53 = vadd.f32 %v228_v34, %v4201_v57  ;;  %v230_v52 = vpop.f32.mrb[13].mxu0  ;;  %v4279_v15 = vadd.f32 %v301_v4, %v4207_v59  ;;  %v303_v55 = vpop.f32.mrb[13].mxu1  ;;  %v201_v4 = vadd.f32 %v4203_v58, %v87_v60 }
 0x133   :  { %v4273_v6 = vadd.f32 %v230_v52, %v87_v60  ;;  %v232_v51 = vpop.f32.mrb[14].mxu0  ;;  %v4284_v16 = vadd.f32 %v303_v55, %v4213_v63  ;;  %v305_v34 = vpop.f32.mrb[14].mxu1  ;;  %v274_v55 = vadd.f32 %v273_v2, %v4213_v63 }
 0x134   :  { %5278 = vst [vmem:[#allocation28_spill] sm:$0xff] %v4271_v53  ;;  %v4276_v3 = vadd.f32 %v232_v51, %v4201_v57  ;;  %v234_v10 = vpop.f32.mrb[15].mxu0  ;;  %5281 = vst [vmem:[#allocation31_spill] sm:$0xff] %v4279_v15  ;;  %v4287_v53 = vadd.f32 %v305_v34, %v4207_v59  ;;  %v307_v52 = vpop.f32.mrb[15].mxu1  ;;  %v199_v51 = vadd.f32 %v4197_v56, %v4201_v57 }
 0x135   :  { %5279 = vst [vmem:[#allocation29_spill] sm:$0xff] %v4273_v6  ;;  %v4281_v12 = vadd.f32 %v234_v10, %v87_v60  ;;  %5283 = vst [vmem:[#allocation33_spill] sm:$0xff] %v4284_v16  ;;  %v4290_v6 = vadd.f32 %v307_v52, %v4213_v63  ;;  %v272_v10 = vadd.f32 %v271_v62, %v4207_v59 }
 0x136   :  { %5280 = vst [vmem:[#allocation30_spill] sm:$0xff] %v4276_v3  ;;  %5284 = vst [vmem:[#allocation34_spill] sm:$0xff] %v4287_v53 }
 0x137   :  { %5282 = vst [vmem:[#allocation32_spill] sm:$0xff] %v4281_v12  ;;  %5285 = vst [vmem:[#allocation35_spill] sm:$0xff] %v4290_v6 }
 0x139   :  { %v575_v3 = vpop.f32.mrb[16].mxu0 }
 0x13a   :  { %v623_v12 = vadd.f32 %v575_v3, %v199_v51  ;;  %v577_v15 = vpop.f32.mrb[17].mxu0 }
 0x13b   :  { %v624_v16 = vadd.f32 %v577_v15, %v201_v4  ;;  %v579_v54 = vpop.f32.mrb[18].mxu0  ;;  %v616_v34 = vpop.f32.mrb[16].mxu1 }
 0x13c   :  { %v3191_v53 = vmul.f32 -1.442695, %v623_v12  ;;  %v625_v61 = vadd.f32 %v616_v34, %v272_v10  ;;  %v580_v8 = vpop.f32.mrb[19].mxu0  ;;  %v618_v52 = vpop.f32.mrb[17].mxu1 }
 0x13d   :  { %v3192_v6 = vmul.f32 -1.442695, %v624_v16  ;;  %v626_v25 = vadd.f32 %v618_v52, %v274_v55  ;;  %v620_v1 = vpop.f32.mrb[18].mxu1  ;;  %v5286_v16 = vmov 0  }
 0x13e   :  { %3511 = vpow2.f32 %v3191_v53  ;;  %v621_v56 = vpop.f32.mrb[19].mxu1  ;;  %v3193_v57 = vmul.f32 -1.442695, %v625_v61 }
 0x13f   :  { %3513 = vpow2.f32 %v3192_v6 }
 0x140   :  { %3515 = vpow2.f32 %v3193_v57 }
 0x141   :  { %3517 = vtanh.f32 %v626_v25 }
 0x148   :  { %v3512_v58 = vpop.eup %3511 }
 0x149   :  { %v3514_v59 = vpop.eup %3513  ;;  %v636_v60 = vadd.f32 1.0, %v3512_v58 }
 0x14a   :  { %v637_v62 = vadd.f32 1.0, %v3514_v59  ;;  %v3516_v54 = vpop.eup %3515 }
 0x14b   :  { %3519 = vrcp.f32 %v636_v60  ;;  %v3518_v63 = vpop.eup %3517  ;;  %v638_v12 = vadd.f32 1.0, %v3516_v54 }
 0x14c   :  { %3521 = vrcp.f32 %v637_v62 }
 0x14d   :  { %3523 = vrcp.f32 %v638_v12 }
 0x155   :  { %v3520_v2 = vpop.eup %3519 }
 0x156   :  { %v3522_v8 = vpop.eup %3521  ;;  %v647_v3 = vmul.f32 %v3520_v2, %v3518_v63 }
 0x157   :  { %v646_v15 = vmul.f32 0.0, %v3522_v8  ;;  %v3524_v61 = vpop.eup %3523 }
 0x159   :  { %v4297_v1 = vadd.f32 %v647_v3, %v646_v15 }
 0x15b   :  { %3525 = vtanh.f32 %v4297_v1 }
 0x165   :  { %v3526_v53 = vpop.eup %3525 }
 0x166   :  { %v4300_v6 = vmul.f32 %v3526_v53, %v3524_v61 }
 0x168   :  { %v659_v25 = vpack.c.bf16 %v4300_v6, %v4300_v6 }
 0x16a   :  { %693 = vmatmul.mubr.bf16.vlgmr.msra.gmra.mrb[20].mxu0 %v659_v25  ;;  %734 = vmatmul.mubr.bf16.vlgmr.msra.gmra.mrb[20].mxu1 %v659_v25 }
 0x16b   :  { %781 = vmatpush1.bf16.msra.mxu0 %v4035_v18  ;;  %822 = vmatpush1.bf16.msra.mxu1 %v4040_v20 }
 0x16c   :  { %782 = vmatprep.subr.bf16.mxu0 %v4038_v19  ;;  %823 = vmatprep.subr.bf16.mxu1 %v4044_v21 }
 0x16d   :  { %812 = vmatprep.mubr.bf16.mxu0 %v5286_v16  ;;  %853 = vmatprep.mubr.bf16.mxu1 %v5286_v16 }
 0x16f   :  { %783 = vmatpush1.bf16.msra.mxu0 %v4047_v22  ;;  %824 = vmatpush1.bf16.msra.mxu1 %v4055_v24 }
 0x170   :  { %784 = vmatprep.subr.bf16.mxu0 %v4052_v23  ;;  %825 = vmatprep.subr.bf16.mxu1 %v4062_v26 }
 0x173   :  { %785 = vmatpush1.bf16.msra.mxu0 %v4065_v27  ;;  %826 = vmatpush1.bf16.msra.mxu1 %v4071_v29 }
 0x174   :  { %786 = vmatprep.subr.bf16.mxu0 %v4068_v28  ;;  %827 = vmatprep.subr.bf16.mxu1 %v4075_v30 }
 0x177   :  { %787 = vmatpush1.bf16.msra.mxu0 %v4078_v31  ;;  %828 = vmatpush1.bf16.msra.mxu1 %v4086_v33 }
 0x178   :  { %788 = vmatprep.subr.bf16.mxu0 %v4083_v32  ;;  %829 = vmatprep.subr.bf16.mxu1 %v4093_v35 }
 0x17b   :  { %789 = vmatpush1.bf16.msra.mxu0 %v4096_v36  ;;  %830 = vmatpush1.bf16.msra.mxu1 %v4102_v38 }
 0x17c   :  { %790 = vmatprep.subr.bf16.mxu0 %v4099_v37  ;;  %831 = vmatprep.subr.bf16.mxu1 %v4108_v40 }
 0x17f   :  { %791 = vmatpush1.bf16.msra.mxu0 %v4106_v39  ;;  %832 = vmatpush1.bf16.msra.mxu1 %v4114_v42 }
 0x180   :  { %792 = vmatprep.subr.bf16.mxu0 %v4110_v41  ;;  %833 = vmatprep.subr.bf16.mxu1 %v4121_v44 }
 0x183   :  { %793 = vmatpush1.bf16.msra.mxu0 %v4125_v45  ;;  %834 = vmatpush1.bf16.msra.mxu1 %v4131_v47 }
 0x184   :  { %794 = vmatprep.subr.bf16.mxu0 %v4128_v46  ;;  %835 = vmatprep.subr.bf16.mxu1 %v4134_v48 }
 0x187   :  { %795 = vmatpush1.bf16.msra.mxu0 %v4137_v49  ;;  %836 = vmatpush1.bf16.msra.mxu1 %v4143_v50 }
 0x188   :  { %900 = vmatprep.subr.bf16.mxu0 %v4028_v13  ;;  %941 = vmatprep.subr.bf16.mxu1 %v4033_v17 }
 0x23d   :  { %v694_v51 = vpop.f32.mrb[20].mxu0  ;;  %v735_v4 = vpop.f32.mrb[20].mxu1 }
 0x23e   :  { %v742_v10 = vadd.f32 %v694_v51, %v4216_v0  ;;  %v744_v55 = vadd.f32 %v735_v4, %v4221_v7  ;;  %v696_v34 = vpop.f32.mrb[21].mxu0  ;;  %v737_v52 = vpop.f32.mrb[21].mxu1 }
 0x23f   :  { %v743_v56 = vadd.f32 %v696_v34, %v4218_v5  ;;  %v745_v57 = vadd.f32 %v737_v52, %v4224_v9  ;;  %v698_v58 = vpop.f32.mrb[22].mxu0  ;;  %v739_v59 = vpop.f32.mrb[22].mxu1 }
 0x240   :  { %v3194_v60 = vmul.f32 -1.442695, %v742_v10  ;;  %v699_v62 = vpop.f32.mrb[23].mxu0  ;;  %v740_v54 = vpop.f32.mrb[23].mxu1  ;;  %v3196_v2 = vmul.f32 -1.442695, %v744_v55 }
 0x241   :  { %v3195_v63 = vmul.f32 -1.442695, %v743_v56  ;;  %v5287_v62 = vld [vmem:[#allocation17_spill] sm:$0xff] }
 0x242   :  { %3527 = vpow2.f32 %v3194_v60 }
 0x243   :  { %3529 = vpow2.f32 %v3195_v63 }
 0x244   :  { %3531 = vtanh.f32 %v745_v57 }
 0x245   :  { %3533 = vpow2.f32 %v3196_v2 }
 0x24c   :  { %v3528_v8 = vpop.eup %3527 }
 0x24d   :  { %v755_v12 = vadd.f32 1.0, %v3528_v8  ;;  %v3530_v0 = vpop.eup %3529 }
 0x24e   :  { %v756_v7 = vadd.f32 1.0, %v3530_v0  ;;  %v3532_v5 = vpop.eup %3531 }
 0x24f   :  { %3535 = vrcp.f32 %v755_v12  ;;  %v3534_v3 = vpop.eup %3533 }
 0x250   :  { %3537 = vrcp.f32 %v756_v7  ;;  %v757_v53 = vadd.f32 1.0, %v3534_v3 }
 0x252   :  { %3539 = vrcp.f32 %v757_v53 }
 0x259   :  { %v3536_v9 = vpop.eup %3535 }
 0x25a   :  { %v766_v15 = vmul.f32 %v3536_v9, %v3532_v5  ;;  %v3538_v61 = vpop.eup %3537 }
 0x25b   :  { %v765_v25 = vmul.f32 %v3538_v61, %v4297_v1 }
 0x25c   :  { %v3540_v4 = vpop.eup %3539 }
 0x25d   :  { %v4343_v51 = vadd.f32 %v766_v15, %v765_v25 }
 0x25f   :  { %3541 = vtanh.f32 %v4343_v51 }
 0x269   :  { %v3542_v10 = vpop.eup %3541 }
 0x26a   :  { %v4346_v55 = vmul.f32 %v3542_v10, %v3540_v4 }
 0x26c   :  { %v779_v34 = vpack.c.bf16 %v4346_v55, %v4346_v55 }
 0x26e   :  { %813 = vmatmul.mubr.bf16.vlgmr.msra.gmra.mrb[24].mxu0 %v779_v34  ;;  %854 = vmatmul.mubr.bf16.vlgmr.msra.gmra.mrb[24].mxu1 %v779_v34 }
 0x26f   :  { %901 = vmatpush1.bf16.msra.mxu0 %v4035_v18  ;;  %942 = vmatpush1.bf16.msra.mxu1 %v4040_v20 }
 0x270   :  { %902 = vmatprep.subr.bf16.mxu0 %v4038_v19  ;;  %943 = vmatprep.subr.bf16.mxu1 %v4044_v21 }
 0x271   :  { %932 = vmatprep.mubr.bf16.mxu0 %v5286_v16  ;;  %973 = vmatprep.mubr.bf16.mxu1 %v5286_v16 }
 0x273   :  { %903 = vmatpush1.bf16.msra.mxu0 %v4047_v22  ;;  %944 = vmatpush1.bf16.msra.mxu1 %v4055_v24 }
 0x274   :  { %904 = vmatprep.subr.bf16.mxu0 %v4052_v23  ;;  %945 = vmatprep.subr.bf16.mxu1 %v4062_v26 }
 0x277   :  { %905 = vmatpush1.bf16.msra.mxu0 %v4065_v27  ;;  %946 = vmatpush1.bf16.msra.mxu1 %v4071_v29 }
 0x278   :  { %906 = vmatprep.subr.bf16.mxu0 %v4068_v28  ;;  %947 = vmatprep.subr.bf16.mxu1 %v4075_v30 }
 0x27b   :  { %907 = vmatpush1.bf16.msra.mxu0 %v4078_v31  ;;  %948 = vmatpush1.bf16.msra.mxu1 %v4086_v33 }
 0x27c   :  { %908 = vmatprep.subr.bf16.mxu0 %v4083_v32  ;;  %949 = vmatprep.subr.bf16.mxu1 %v4093_v35 }
 0x27f   :  { %909 = vmatpush1.bf16.msra.mxu0 %v4096_v36  ;;  %950 = vmatpush1.bf16.msra.mxu1 %v4102_v38 }
 0x280   :  { %910 = vmatprep.subr.bf16.mxu0 %v4099_v37  ;;  %951 = vmatprep.subr.bf16.mxu1 %v4108_v40 }
 0x283   :  { %911 = vmatpush1.bf16.msra.mxu0 %v4106_v39  ;;  %952 = vmatpush1.bf16.msra.mxu1 %v4114_v42 }
 0x284   :  { %912 = vmatprep.subr.bf16.mxu0 %v4110_v41  ;;  %953 = vmatprep.subr.bf16.mxu1 %v4121_v44 }
 0x287   :  { %913 = vmatpush1.bf16.msra.mxu0 %v4125_v45  ;;  %954 = vmatpush1.bf16.msra.mxu1 %v4131_v47 }
 0x288   :  { %914 = vmatprep.subr.bf16.mxu0 %v4128_v46  ;;  %955 = vmatprep.subr.bf16.mxu1 %v4134_v48 }
 0x28b   :  { %915 = vmatpush1.bf16.msra.mxu0 %v4137_v49  ;;  %956 = vmatpush1.bf16.msra.mxu1 %v4143_v50 }
 0x28c   :  { %1020 = vmatprep.subr.bf16.mxu0 %v4028_v13  ;;  %1061 = vmatprep.subr.bf16.mxu1 %v4033_v17 }
 0x341   :  { %v814_v1 = vpop.f32.mrb[24].mxu0  ;;  %v855_v52 = vpop.f32.mrb[24].mxu1 }
 0x342   :  { %v862_v56 = vadd.f32 %v814_v1, %v4227_v11  ;;  %v864_v57 = vadd.f32 %v855_v52, %v4235_v43  ;;  %v816_v58 = vpop.f32.mrb[25].mxu0  ;;  %v857_v59 = vpop.f32.mrb[25].mxu1 }
 0x343   :  { %v863_v60 = vadd.f32 %v816_v58, %v4229_v14  ;;  %v865_v54 = vadd.f32 %v857_v59, %v5287_v62  ;;  %v818_v63 = vpop.f32.mrb[26].mxu0  ;;  %v859_v2 = vpop.f32.mrb[26].mxu1 }
 0x344   :  { %v3197_v8 = vmul.f32 -1.442695, %v862_v56  ;;  %v819_v12 = vpop.f32.mrb[27].mxu0  ;;  %v860_v0 = vpop.f32.mrb[27].mxu1  ;;  %v3199_v17 = vmul.f32 -1.442695, %v864_v57 }
 0x345   :  { %v3198_v13 = vmul.f32 -1.442695, %v863_v60 }
 0x346   :  { %3543 = vpow2.f32 %v3197_v8 }
 0x347   :  { %3545 = vpow2.f32 %v3198_v13 }
 0x348   :  { %3547 = vtanh.f32 %v865_v54 }
 0x349   :  { %3549 = vpow2.f32 %v3199_v17 }
 0x350   :  { %v3544_v7 = vpop.eup %3543 }
 0x351   :  { %v875_v5 = vadd.f32 1.0, %v3544_v7  ;;  %v3546_v11 = vpop.eup %3545 }
 0x352   :  { %v876_v43 = vadd.f32 1.0, %v3546_v11  ;;  %v3548_v14 = vpop.eup %3547  ;;  %v4449_v11 = vld [vmem:[#allocation7 + $0x8] ss:$16 sps:$4 sm:$0xff]  }
 0x353   :  { %3551 = vrcp.f32 %v875_v5  ;;  %v3550_v3 = vpop.eup %3549  ;;  %v4446_v5 = vld [vmem:[#allocation7] ss:$16 sps:$4 sm:$0xff]  }
 0x354   :  { %3553 = vrcp.f32 %v876_v43  ;;  %v877_v53 = vadd.f32 1.0, %v3550_v3  ;;  %v4452_v43 = vld [vmem:[#allocation7 + $0x24] ss:$16 sps:$4 sm:$0xff]   ;;  %v4460_v3 = vld [vmem:[#allocation7 + $0x20] ss:$16 sps:$4 sm:$0xff]  }
 0x356   :  { %3555 = vrcp.f32 %v877_v53  ;;  %v4472_v53 = vld [vmem:[#allocation7 + $0x40] ss:$16 sps:$4 sm:$0xff]  }
 0x35d   :  { %v3552_v9 = vpop.eup %3551 }
 0x35e   :  { %v886_v15 = vmul.f32 %v3552_v9, %v3548_v14  ;;  %v3554_v61 = vpop.eup %3553  ;;  %v4455_v14 = vld [vmem:[#allocation7 + $0x2c] ss:$16 sps:$4 sm:$0xff]   ;;  %v4463_v9 = vld [vmem:[#allocation7 + $0x28] ss:$16 sps:$4 sm:$0xff]  }
 0x35f   :  { %v885_v25 = vmul.f32 %v3554_v61, %v4343_v51  ;;  %v4469_v61 = vld [vmem:[#allocation7 + $0x4c] ss:$16 sps:$4 sm:$0xff]  }
 0x360   :  { %v3556_v10 = vpop.eup %3555 }
 0x361   :  { %v4389_v4 = vadd.f32 %v886_v15, %v885_v25  ;;  %v4466_v15 = vld [vmem:[#allocation7 + $0x44] ss:$16 sps:$4 sm:$0xff]   ;;  %v4475_v25 = vld [vmem:[#allocation7 + $0x48] ss:$16 sps:$4 sm:$0xff]  }
 0x363   :  { %3557 = vtanh.f32 %v4389_v4 }
 0x36d   :  { %v3558_v34 = vpop.eup %3557 }
 0x36e   :  { %v4392_v1 = vmul.f32 %v3558_v34, %v3556_v10  ;;  %v4481_v10 = vld [vmem:[#allocation7 + $0x6c] ss:$16 sps:$4 sm:$0xff]   ;;  %v4484_v34 = vld [vmem:[#allocation7 + $0x60] ss:$16 sps:$4 sm:$0xff]  }
 0x370   :  { %v899_v52 = vpack.c.bf16 %v4392_v1, %v4392_v1 }
 0x372   :  { %933 = vmatmul.mubr.bf16.vlgmr.msra.gmra.mrb[28].mxu0 %v899_v52  ;;  %974 = vmatmul.mubr.bf16.vlgmr.msra.gmra.mrb[28].mxu1 %v899_v52  ;;  %v4487_v52 = vld [vmem:[#allocation7 + $0x68] ss:$16 sps:$4 sm:$0xff]  }
 0x373   :  { %1021 = vmatpush1.bf16.msra.mxu0 %v4035_v18  ;;  %1062 = vmatpush1.bf16.msra.mxu1 %v4040_v20  ;;  %v4428_v18 = vld [vmem:[#allocation7 + $0x4] ss:$16 sps:$4 sm:$0xff]  }
 0x374   :  { %1022 = vmatprep.subr.bf16.mxu0 %v4038_v19  ;;  %1063 = vmatprep.subr.bf16.mxu1 %v4044_v21  ;;  %v4431_v19 = vld [vmem:[#allocation7 + $0xc] ss:$16 sps:$4 sm:$0xff]  }
 0x375   :  { %1052 = vmatprep.mubr.bf16.mxu0 %v5286_v16  ;;  %1093 = vmatprep.mubr.bf16.mxu1 %v5286_v16 }
 0x377   :  { %1023 = vmatpush1.bf16.msra.mxu0 %v4047_v22  ;;  %1064 = vmatpush1.bf16.msra.mxu1 %v4055_v24  ;;  %v5288_v22 = vld [vmem:[#allocation15_spill] sm:$0xff]  ;;  %v5289_v24 = vld [vmem:[#allocation18_spill] sm:$0xff] }
 0x378   :  { %1024 = vmatprep.subr.bf16.mxu0 %v4052_v23  ;;  %1065 = vmatprep.subr.bf16.mxu1 %v4062_v26 }
 0x37b   :  { %1025 = vmatpush1.bf16.msra.mxu0 %v4065_v27  ;;  %1066 = vmatpush1.bf16.msra.mxu1 %v4071_v29  ;;  %v5290_v29 = vld [vmem:[#allocation16_spill] sm:$0xff] }
 0x37c   :  { %1026 = vmatprep.subr.bf16.mxu0 %v4068_v28  ;;  %1067 = vmatprep.subr.bf16.mxu1 %v4075_v30 }
 0x37f   :  { %1027 = vmatpush1.bf16.msra.mxu0 %v4078_v31  ;;  %1068 = vmatpush1.bf16.msra.mxu1 %v4086_v33  ;;  %v5291_v31 = vld [vmem:[#allocation19_spill] sm:$0xff] }
 0x380   :  { %1028 = vmatprep.subr.bf16.mxu0 %v4083_v32  ;;  %1069 = vmatprep.subr.bf16.mxu1 %v4093_v35 }
 0x383   :  { %1029 = vmatpush1.bf16.msra.mxu0 %v4096_v36  ;;  %1070 = vmatpush1.bf16.msra.mxu1 %v4102_v38 }
 0x384   :  { %1030 = vmatprep.subr.bf16.mxu0 %v4099_v37  ;;  %1071 = vmatprep.subr.bf16.mxu1 %v4108_v40 }
 0x387   :  { %1031 = vmatpush1.bf16.msra.mxu0 %v4106_v39  ;;  %1072 = vmatpush1.bf16.msra.mxu1 %v4114_v42 }
 0x388   :  { %1032 = vmatprep.subr.bf16.mxu0 %v4110_v41  ;;  %1073 = vmatprep.subr.bf16.mxu1 %v4121_v44 }
 0x38b   :  { %1033 = vmatpush1.bf16.msra.mxu0 %v4125_v45  ;;  %1074 = vmatpush1.bf16.msra.mxu1 %v4131_v47 }
 0x38c   :  { %1034 = vmatprep.subr.bf16.mxu0 %v4128_v46  ;;  %1075 = vmatprep.subr.bf16.mxu1 %v4134_v48 }
 0x38f   :  { %1035 = vmatpush1.bf16.msra.mxu0 %v4137_v49  ;;  %1076 = vmatpush1.bf16.msra.mxu1 %v4143_v50 }
 0x390   :  { %1140 = vmatprep.subr.bf16.mxu0 %v4428_v18  ;;  %1181 = vmatprep.subr.bf16.mxu1 %v4431_v19 }
 0x445   :  { %v934_v20 = vpop.f32.mrb[28].mxu0  ;;  %v975_v21 = vpop.f32.mrb[28].mxu1 }
 0x446   :  { %v982_v23 = vadd.f32 %v934_v20, %v5288_v22  ;;  %v984_v26 = vadd.f32 %v975_v21, %v5289_v24  ;;  %v936_v27 = vpop.f32.mrb[29].mxu0  ;;  %v977_v28 = vpop.f32.mrb[29].mxu1  ;;  %v4490_v20 = vld [vmem:[#allocation7 + $0x84] ss:$16 sps:$4 sm:$0xff]   ;;  %v4493_v21 = vld [vmem:[#allocation7 + $0x8c] ss:$16 sps:$4 sm:$0xff]  }
 0x447   :  { %v983_v30 = vadd.f32 %v936_v27, %v5290_v29  ;;  %v985_v32 = vadd.f32 %v977_v28, %v5291_v31  ;;  %v938_v33 = vpop.f32.mrb[30].mxu0  ;;  %v979_v35 = vpop.f32.mrb[30].mxu1  ;;  %v4496_v22 = vld [vmem:[#allocation7 + $0x80] ss:$16 sps:$4 sm:$0xff]   ;;  %v4502_v24 = vld [vmem:[#allocation7 + $0xa4] ss:$16 sps:$4 sm:$0xff]  }
 0x448   :  { %v3200_v36 = vmul.f32 -1.442695, %v982_v23  ;;  %v939_v37 = vpop.f32.mrb[31].mxu0  ;;  %v980_v38 = vpop.f32.mrb[31].mxu1  ;;  %v3202_v41 = vmul.f32 -1.442695, %v984_v26 }
 0x449   :  { %v3201_v39 = vmul.f32 -1.442695, %v983_v30  ;;  %v4499_v23 = vld [vmem:[#allocation7 + $0x88] ss:$16 sps:$4 sm:$0xff]   ;;  %v4506_v26 = vld [vmem:[#allocation7 + $0xa0] ss:$16 sps:$4 sm:$0xff]  }
 0x44a   :  { %3559 = vpow2.f32 %v3200_v36  ;;  %v4510_v27 = vld [vmem:[#allocation7 + $0xc4] ss:$16 sps:$4 sm:$0xff]   ;;  %v5292_v28 = vld [vmem:[#allocation20_spill] sm:$0xff] }
 0x44b   :  { %3561 = vpow2.f32 %v3201_v39  ;;  %v5293_v29 = vld [vmem:[#allocation23_spill] sm:$0xff]  ;;  %v5294_v31 = vld [vmem:[#allocation21_spill] sm:$0xff] }
 0x44c   :  { %3563 = vtanh.f32 %v985_v32  ;;  %v5295_v32 = vld [vmem:[#allocation25_spill] sm:$0xff] }
 0x44d   :  { %3565 = vpow2.f32 %v3202_v41 }
 0x454   :  { %v3560_v51 = vpop.eup %3559 }
 0x455   :  { %v995_v56 = vadd.f32 1.0, %v3560_v51  ;;  %v3562_v57 = vpop.eup %3561 }
 0x456   :  { %v996_v58 = vadd.f32 1.0, %v3562_v57  ;;  %v3564_v59 = vpop.eup %3563 }
 0x457   :  { %3567 = vrcp.f32 %v995_v56  ;;  %v3566_v60 = vpop.eup %3565 }
 0x458   :  { %3569 = vrcp.f32 %v996_v58  ;;  %v997_v2 = vadd.f32 1.0, %v3566_v60 }
 0x45a   :  { %3571 = vrcp.f32 %v997_v2 }
 0x461   :  { %v3568_v62 = vpop.eup %3567 }
 0x462   :  { %v1006_v54 = vmul.f32 %v3568_v62, %v3564_v59  ;;  %v3570_v63 = vpop.eup %3569 }
 0x463   :  { %v1005_v8 = vmul.f32 %v3570_v63, %v4389_v4  ;;  %v4478_v4 = vld [vmem:[#allocation7 + $0x64] ss:$16 sps:$4 sm:$0xff]  }
 0x464   :  { %v3572_v0 = vpop.eup %3571 }
 0x465   :  { %v4439_v12 = vadd.f32 %v1006_v54, %v1005_v8 }
 0x467   :  { %3573 = vtanh.f32 %v4439_v12 }
 0x471   :  { %v3574_v13 = vpop.eup %3573 }
 0x472   :  { %v4442_v17 = vmul.f32 %v3574_v13, %v3572_v0 }
 0x474   :  { %v1019_v7 = vpack.c.bf16 %v4442_v17, %v4442_v17 }
 0x476   :  { %1053 = vmatmul.mubr.bf16.vlgmr.msra.gmra.mrb[32].mxu0 %v1019_v7  ;;  %1094 = vmatmul.mubr.bf16.vlgmr.msra.gmra.mrb[32].mxu1 %v1019_v7 }
 0x477   :  { %1141 = vmatpush1.bf16.msra.mxu0 %v4446_v5  ;;  %1182 = vmatpush1.bf16.msra.mxu1 %v4449_v11 }
 0x478   :  { %1142 = vmatprep.subr.bf16.mxu0 %v4452_v43  ;;  %1183 = vmatprep.subr.bf16.mxu1 %v4455_v14 }
 0x479   :  { %1172 = vmatprep.mubr.bf16.mxu0 %v5286_v16  ;;  %1213 = vmatprep.mubr.bf16.mxu1 %v5286_v16 }
 0x47b   :  { %1143 = vmatpush1.bf16.msra.mxu0 %v4460_v3  ;;  %1184 = vmatpush1.bf16.msra.mxu1 %v4463_v9 }
 0x47c   :  { %1144 = vmatprep.subr.bf16.mxu0 %v4466_v15  ;;  %1185 = vmatprep.subr.bf16.mxu1 %v4469_v61 }
 0x47f   :  { %1145 = vmatpush1.bf16.msra.mxu0 %v4472_v53  ;;  %1186 = vmatpush1.bf16.msra.mxu1 %v4475_v25 }
 0x480   :  { %1146 = vmatprep.subr.bf16.mxu0 %v4478_v4  ;;  %1187 = vmatprep.subr.bf16.mxu1 %v4481_v10 }
 0x483   :  { %1147 = vmatpush1.bf16.msra.mxu0 %v4484_v34  ;;  %1188 = vmatpush1.bf16.msra.mxu1 %v4487_v52 }
 0x484   :  { %1148 = vmatprep.subr.bf16.mxu0 %v4490_v20  ;;  %1189 = vmatprep.subr.bf16.mxu1 %v4493_v21 }
 0x487   :  { %1149 = vmatpush1.bf16.msra.mxu0 %v4496_v22  ;;  %1190 = vmatpush1.bf16.msra.mxu1 %v4499_v23 }
 0x488   :  { %1150 = vmatprep.subr.bf16.mxu0 %v4502_v24  ;;  %1191 = vmatprep.subr.bf16.mxu1 %v4108_v40 }
 0x48b   :  { %1151 = vmatpush1.bf16.msra.mxu0 %v4506_v26  ;;  %1192 = vmatpush1.bf16.msra.mxu1 %v4114_v42 }
 0x48c   :  { %1152 = vmatprep.subr.bf16.mxu0 %v4510_v27  ;;  %1193 = vmatprep.subr.bf16.mxu1 %v4121_v44 }
 0x48f   :  { %1153 = vmatpush1.bf16.msra.mxu0 %v4125_v45  ;;  %1194 = vmatpush1.bf16.msra.mxu1 %v4131_v47 }
 0x490   :  { %1154 = vmatprep.subr.bf16.mxu0 %v4128_v46  ;;  %1195 = vmatprep.subr.bf16.mxu1 %v4134_v48 }
 0x493   :  { %1155 = vmatpush1.bf16.msra.mxu0 %v4137_v49  ;;  %1196 = vmatpush1.bf16.msra.mxu1 %v4143_v50 }
 0x494   :  { %1260 = vmatprep.subr.bf16.mxu0 %v4428_v18  ;;  %1301 = vmatprep.subr.bf16.mxu1 %v4431_v19 }
 0x549   :  { %v1054_v40 = vpop.f32.mrb[32].mxu0  ;;  %v1095_v42 = vpop.f32.mrb[32].mxu1 }
 0x54a   :  { %v1102_v44 = vadd.f32 %v1054_v40, %v5292_v28  ;;  %v1104_v45 = vadd.f32 %v1095_v42, %v5293_v29  ;;  %v1056_v30 = vpop.f32.mrb[33].mxu0  ;;  %v1097_v47 = vpop.f32.mrb[33].mxu1  ;;  %v4559_v40 = vld [vmem:[#allocation7 + $0xa8] ss:$16 sps:$4 sm:$0xff]   ;;  %v4563_v42 = vld [vmem:[#allocation7 + $0xcc] ss:$16 sps:$4 sm:$0xff]  }
 0x54b   :  { %v1103_v46 = vadd.f32 %v1056_v30, %v5294_v31  ;;  %v1105_v48 = vadd.f32 %v1097_v47, %v5295_v32  ;;  %v1058_v33 = vpop.f32.mrb[34].mxu0  ;;  %v1099_v49 = vpop.f32.mrb[34].mxu1  ;;  %v4566_v28 = vld [vmem:[#allocation7 + $0xc0] ss:$16 sps:$4 sm:$0xff]   ;;  %v4572_v29 = vld [vmem:[#allocation7 + $0xe4] ss:$16 sps:$4 sm:$0xff]  }
 0x54c   :  { %v3203_v35 = vmul.f32 -1.442695, %v1102_v44  ;;  %v1059_v50 = vpop.f32.mrb[35].mxu0  ;;  %v1100_v36 = vpop.f32.mrb[35].mxu1  ;;  %v3205_v38 = vmul.f32 -1.442695, %v1104_v45 }
 0x54d   :  { %v3204_v37 = vmul.f32 -1.442695, %v1103_v46  ;;  %v4569_v44 = vld [vmem:[#allocation7 + $0xc8] ss:$16 sps:$4 sm:$0xff]   ;;  %v4575_v45 = vld [vmem:[#allocation7 + $0xec] ss:$16 sps:$4 sm:$0xff]  }
 0x54e   :  { %3575 = vpow2.f32 %v3203_v35  ;;  %v4578_v30 = vld [vmem:[#allocation7 + $0xe0] ss:$16 sps:$4 sm:$0xff]   ;;  %v4581_v47 = vld [vmem:[#allocation7 + $0xe8] ss:$16 sps:$4 sm:$0xff]  }
 0x54f   :  { %3577 = vpow2.f32 %v3204_v37  ;;  %v5296_v32 = vld [vmem:[#allocation22_spill] sm:$0xff]  ;;  %v5298_v36 = vld [vmem:[#allocation24_spill] sm:$0xff] }
 0x550   :  { %3579 = vtanh.f32 %v1105_v48  ;;  %v5297_v33 = vld [vmem:[#allocation26_spill] sm:$0xff] }
 0x551   :  { %3581 = vpow2.f32 %v3205_v38  ;;  %v5299_v38 = vld [vmem:[#allocation27_spill] sm:$0xff] }
 0x558   :  { %v3576_v39 = vpop.eup %3575 }
 0x559   :  { %v1115_v41 = vadd.f32 1.0, %v3576_v39  ;;  %v3578_v51 = vpop.eup %3577 }
 0x55a   :  { %v1116_v56 = vadd.f32 1.0, %v3578_v51  ;;  %v3580_v57 = vpop.eup %3579 }
 0x55b   :  { %3583 = vrcp.f32 %v1115_v41  ;;  %v3582_v58 = vpop.eup %3581 }
 0x55c   :  { %3585 = vrcp.f32 %v1116_v56  ;;  %v1117_v54 = vadd.f32 1.0, %v3582_v58 }
 0x55e   :  { %3587 = vrcp.f32 %v1117_v54 }
 0x565   :  { %v3584_v59 = vpop.eup %3583 }
 0x566   :  { %v1126_v60 = vmul.f32 %v3584_v59, %v3580_v57  ;;  %v3586_v62 = vpop.eup %3585 }
 0x567   :  { %v1125_v63 = vmul.f32 %v3586_v62, %v4439_v12  ;;  %v4555_v12 = vld [vmem:[#allocation7 + $0xac] ss:$16 sps:$4 sm:$0xff]  }
 0x568   :  { %v3588_v8 = vpop.eup %3587 }
 0x569   :  { %v4527_v2 = vadd.f32 %v1126_v60, %v1125_v63 }
 0x56b   :  { %3589 = vtanh.f32 %v4527_v2 }
 0x575   :  { %v3590_v0 = vpop.eup %3589 }
 0x576   :  { %v4530_v13 = vmul.f32 %v3590_v0, %v3588_v8 }
 0x578   :  { %v1139_v7 = vpack.c.bf16 %v4530_v13, %v4530_v13 }
 0x57a   :  { %1173 = vmatmul.mubr.bf16.vlgmr.msra.gmra.mrb[36].mxu0 %v1139_v7  ;;  %1214 = vmatmul.mubr.bf16.vlgmr.msra.gmra.mrb[36].mxu1 %v1139_v7 }
 0x57b   :  { %1261 = vmatpush1.bf16.msra.mxu0 %v4446_v5  ;;  %1302 = vmatpush1.bf16.msra.mxu1 %v4449_v11 }
 0x57c   :  { %1262 = vmatprep.subr.bf16.mxu0 %v4452_v43  ;;  %1303 = vmatprep.subr.bf16.mxu1 %v4455_v14 }
 0x57d   :  { %1292 = vmatprep.mubr.bf16.mxu0 %v5286_v16  ;;  %1333 = vmatprep.mubr.bf16.mxu1 %v5286_v16 }
 0x57f   :  { %1263 = vmatpush1.bf16.msra.mxu0 %v4460_v3  ;;  %1304 = vmatpush1.bf16.msra.mxu1 %v4463_v9 }
 0x580   :  { %1264 = vmatprep.subr.bf16.mxu0 %v4466_v15  ;;  %1305 = vmatprep.subr.bf16.mxu1 %v4469_v61 }
 0x583   :  { %1265 = vmatpush1.bf16.msra.mxu0 %v4472_v53  ;;  %1306 = vmatpush1.bf16.msra.mxu1 %v4475_v25 }
 0x584   :  { %1266 = vmatprep.subr.bf16.mxu0 %v4478_v4  ;;  %1307 = vmatprep.subr.bf16.mxu1 %v4481_v10 }
 0x587   :  { %1267 = vmatpush1.bf16.msra.mxu0 %v4484_v34  ;;  %1308 = vmatpush1.bf16.msra.mxu1 %v4487_v52 }
 0x588   :  { %1268 = vmatprep.subr.bf16.mxu0 %v4490_v20  ;;  %1309 = vmatprep.subr.bf16.mxu1 %v4493_v21 }
 0x58b   :  { %1269 = vmatpush1.bf16.msra.mxu0 %v4496_v22  ;;  %1310 = vmatpush1.bf16.msra.mxu1 %v4499_v23 }
 0x58c   :  { %1270 = vmatprep.subr.bf16.mxu0 %v4502_v24  ;;  %1311 = vmatprep.subr.bf16.mxu1 %v4555_v12 }
 0x58f   :  { %1271 = vmatpush1.bf16.msra.mxu0 %v4506_v26  ;;  %1312 = vmatpush1.bf16.msra.mxu1 %v4559_v40 }
 0x590   :  { %1272 = vmatprep.subr.bf16.mxu0 %v4510_v27  ;;  %1313 = vmatprep.subr.bf16.mxu1 %v4563_v42 }
 0x593   :  { %1273 = vmatpush1.bf16.msra.mxu0 %v4566_v28  ;;  %1314 = vmatpush1.bf16.msra.mxu1 %v4569_v44 }
 0x594   :  { %1274 = vmatprep.subr.bf16.mxu0 %v4572_v29  ;;  %1315 = vmatprep.subr.bf16.mxu1 %v4575_v45 }
 0x597   :  { %1275 = vmatpush1.bf16.msra.mxu0 %v4578_v30  ;;  %1316 = vmatpush1.bf16.msra.mxu1 %v4581_v47 }
 0x598   :  { %1380 = vmatprep.subr.bf16.mxu0 %v4428_v18  ;;  %1421 = vmatprep.subr.bf16.mxu1 %v4431_v19 }
 0x64d   :  { %v1174_v31 = vpop.f32.mrb[36].mxu0  ;;  %v1215_v46 = vpop.f32.mrb[36].mxu1 }
 0x64e   :  { %v1222_v48 = vadd.f32 %v1174_v31, %v5296_v32  ;;  %v1224_v49 = vadd.f32 %v1215_v46, %v5297_v33  ;;  %v1176_v35 = vpop.f32.mrb[37].mxu0  ;;  %v1217_v50 = vpop.f32.mrb[37].mxu1 }
 0x64f   :  { %v1223_v37 = vadd.f32 %v1176_v35, %v5298_v36  ;;  %v1225_v39 = vadd.f32 %v1217_v50, %v5299_v38  ;;  %v1178_v41 = vpop.f32.mrb[38].mxu0  ;;  %v1219_v51 = vpop.f32.mrb[38].mxu1 }
 0x650   :  { %v3206_v56 = vmul.f32 -1.442695, %v1222_v48  ;;  %v1179_v57 = vpop.f32.mrb[39].mxu0  ;;  %v1220_v58 = vpop.f32.mrb[39].mxu1  ;;  %v3208_v19 = vmul.f32 -1.442695, %v1224_v49 }
 0x651   :  { %v3207_v18 = vmul.f32 -1.442695, %v1223_v37  ;;  %v3407_v51 = vld [vmem:[#allocation4] ss:$16 sps:$4 sm:$0xff]   ;;  %v3415_v58 = vld [vmem:[#allocation4 + $0x24] ss:$16 sps:$4 sm:$0xff]  }
 0x652   :  { %3591 = vpow2.f32 %v3206_v56  ;;  %v3410_v56 = vld [vmem:[#allocation4 + $0x8] ss:$16 sps:$4 sm:$0xff]  }
 0x653   :  { %3593 = vpow2.f32 %v3207_v18  ;;  %v3418_v18 = vld [vmem:[#allocation4 + $0x2c] ss:$16 sps:$4 sm:$0xff]  }
 0x654   :  { %3595 = vtanh.f32 %v1225_v39 }
 0x655   :  { %3597 = vpow2.f32 %v3208_v19  ;;  %v3413_v19 = vld [vmem:[#allocation4 + $0x20] ss:$16 sps:$4 sm:$0xff]  }
 0x65c   :  { %v3592_v59 = vpop.eup %3591 }
 0x65d   :  { %v1235_v60 = vadd.f32 1.0, %v3592_v59  ;;  %v3594_v62 = vpop.eup %3593  ;;  %v3416_v59 = vld [vmem:[#allocation4 + $0x28] ss:$16 sps:$4 sm:$0xff]  }
 0x65e   :  { %v1236_v54 = vadd.f32 1.0, %v3594_v62  ;;  %v3596_v63 = vpop.eup %3595  ;;  %v3424_v62 = vld [vmem:[#allocation4 + $0x4c] ss:$16 sps:$4 sm:$0xff]  }
 0x65f   :  { %3599 = vrcp.f32 %v1235_v60  ;;  %v3598_v8 = vpop.eup %3597  ;;  %v3421_v60 = vld [vmem:[#allocation4 + $0x44] ss:$16 sps:$4 sm:$0xff]  }
 0x660   :  { %3601 = vrcp.f32 %v1236_v54  ;;  %v1237_v46 = vadd.f32 1.0, %v3598_v8  ;;  %v3419_v54 = vld [vmem:[#allocation4 + $0x40] ss:$16 sps:$4 sm:$0xff]   ;;  %v3427_v8 = vld [vmem:[#allocation4 + $0x64] ss:$16 sps:$4 sm:$0xff]  }
 0x662   :  { %3603 = vrcp.f32 %v1237_v46  ;;  %v3433_v46 = vld [vmem:[#allocation4 + $0x84] ss:$16 sps:$4 sm:$0xff]  }
 0x669   :  { %v3600_v0 = vpop.eup %3599 }
 0x66a   :  { %v1246_v7 = vmul.f32 %v3600_v0, %v3596_v63  ;;  %v3602_v31 = vpop.eup %3601  ;;  %v3422_v63 = vld [vmem:[#allocation4 + $0x48] ss:$16 sps:$4 sm:$0xff]   ;;  %v3430_v0 = vld [vmem:[#allocation4 + $0x6c] ss:$16 sps:$4 sm:$0xff]  }
 0x66b   :  { %v1245_v32 = vmul.f32 %v3602_v31, %v4527_v2  ;;  %v3428_v31 = vld [vmem:[#allocation4 + $0x68] ss:$16 sps:$4 sm:$0xff]  }
 0x66c   :  { %v3604_v33 = vpop.eup %3603 }
 0x66d   :  { %v4591_v48 = vadd.f32 %v1246_v7, %v1245_v32  ;;  %v3425_v7 = vld [vmem:[#allocation4 + $0x60] ss:$16 sps:$4 sm:$0xff]   ;;  %v3436_v32 = vld [vmem:[#allocation4 + $0x8c] ss:$16 sps:$4 sm:$0xff]  }
 0x66f   :  { %3605 = vtanh.f32 %v4591_v48 }
 0x679   :  { %v3606_v49 = vpop.eup %3605 }
 0x67a   :  { %v4594_v35 = vmul.f32 %v3606_v49, %v3604_v33  ;;  %v3434_v33 = vld [vmem:[#allocation4 + $0x88] ss:$16 sps:$4 sm:$0xff]   ;;  %v3439_v49 = vld [vmem:[#allocation4 + $0xa4] ss:$16 sps:$4 sm:$0xff]  }
 0x67c   :  { %v1259_v50 = vpack.c.bf16 %v4594_v35, %v4594_v35 }
 0x67e   :  { %1293 = vmatmul.mubr.bf16.vlgmr.msra.gmra.mrb[40].mxu0 %v1259_v50  ;;  %1334 = vmatmul.mubr.bf16.vlgmr.msra.gmra.mrb[40].mxu1 %v1259_v50  ;;  %v3442_v50 = vld [vmem:[#allocation4 + $0xac] ss:$16 sps:$4 sm:$0xff]  }
 0x67f   :  { %1381 = vmatpush1.bf16.msra.mxu0 %v4446_v5  ;;  %1422 = vmatpush1.bf16.msra.mxu1 %v4449_v11  ;;  %v3409_v5 = vld [vmem:[#allocation4 + $0x4] ss:$16 sps:$4 sm:$0xff]   ;;  %v3412_v11 = vld [vmem:[#allocation4 + $0xc] ss:$16 sps:$4 sm:$0xff]  }
 0x680   :  { %1382 = vmatprep.subr.bf16.mxu0 %v4452_v43  ;;  %1423 = vmatprep.subr.bf16.mxu1 %v4455_v14 }
 0x681   :  { %1412 = vmatprep.mubr.bf16.mxu0 %v5286_v16  ;;  %1453 = vmatprep.mubr.bf16.mxu1 %v5286_v16 }
 0x683   :  { %1383 = vmatpush1.bf16.msra.mxu0 %v4460_v3  ;;  %1424 = vmatpush1.bf16.msra.mxu1 %v4463_v9  ;;  %v5300_v3 = vld [vmem:[#allocation28_spill] sm:$0xff] }
 0x684   :  { %1384 = vmatprep.subr.bf16.mxu0 %v4466_v15  ;;  %1425 = vmatprep.subr.bf16.mxu1 %v4469_v61  ;;  %v5301_v15 = vld [vmem:[#allocation31_spill] sm:$0xff] }
 0x687   :  { %1385 = vmatpush1.bf16.msra.mxu0 %v4472_v53  ;;  %1426 = vmatpush1.bf16.msra.mxu1 %v4475_v25 }
 0x688   :  { %1386 = vmatprep.subr.bf16.mxu0 %v4478_v4  ;;  %1427 = vmatprep.subr.bf16.mxu1 %v4481_v10  ;;  %v5302_v4 = vld [vmem:[#allocation29_spill] sm:$0xff] }
 0x68b   :  { %1387 = vmatpush1.bf16.msra.mxu0 %v4484_v34  ;;  %1428 = vmatpush1.bf16.msra.mxu1 %v4487_v52  ;;  %v5303_v34 = vld [vmem:[#allocation33_spill] sm:$0xff] }
 0x68c   :  { %1388 = vmatprep.subr.bf16.mxu0 %v4490_v20  ;;  %1429 = vmatprep.subr.bf16.mxu1 %v4493_v21 }
 0x68f   :  { %1389 = vmatpush1.bf16.msra.mxu0 %v4496_v22  ;;  %1430 = vmatpush1.bf16.msra.mxu1 %v4499_v23 }
 0x690   :  { %1390 = vmatprep.subr.bf16.mxu0 %v4502_v24  ;;  %1431 = vmatprep.subr.bf16.mxu1 %v4555_v12 }
 0x693   :  { %1391 = vmatpush1.bf16.msra.mxu0 %v4506_v26  ;;  %1432 = vmatpush1.bf16.msra.mxu1 %v4559_v40 }
 0x694   :  { %1392 = vmatprep.subr.bf16.mxu0 %v4510_v27  ;;  %1433 = vmatprep.subr.bf16.mxu1 %v4563_v42 }
 0x697   :  { %1393 = vmatpush1.bf16.msra.mxu0 %v4566_v28  ;;  %1434 = vmatpush1.bf16.msra.mxu1 %v4569_v44 }
 0x698   :  { %1394 = vmatprep.subr.bf16.mxu0 %v4572_v29  ;;  %1435 = vmatprep.subr.bf16.mxu1 %v4575_v45 }
 0x69b   :  { %1395 = vmatpush1.bf16.msra.mxu0 %v4578_v30  ;;  %1436 = vmatpush1.bf16.msra.mxu1 %v4581_v47 }
 0x69c   :  { %1719 = vmatprep.subr.bf16.mxu0 %v3409_v5  ;;  %1792 = vmatprep.subr.bf16.mxu1 %v3412_v11  ;;  %v3437_v5 = vld [vmem:[#allocation4 + $0xa0] ss:$16 sps:$4 sm:$0xff]   ;;  %v3440_v11 = vld [vmem:[#allocation4 + $0xa8] ss:$16 sps:$4 sm:$0xff]  }
 0x751   :  { %v1294_v43 = vpop.f32.mrb[40].mxu0  ;;  %v1335_v14 = vpop.f32.mrb[40].mxu1 }
 0x752   :  { %v1342_v9 = vadd.f32 %v1294_v43, %v5300_v3  ;;  %v1344_v61 = vadd.f32 %v1335_v14, %v5301_v15  ;;  %v1296_v53 = vpop.f32.mrb[41].mxu0  ;;  %v1337_v25 = vpop.f32.mrb[41].mxu1  ;;  %v3445_v43 = vld [vmem:[#allocation4 + $0xc4] ss:$16 sps:$4 sm:$0xff]   ;;  %v3448_v14 = vld [vmem:[#allocation4 + $0xcc] ss:$16 sps:$4 sm:$0xff]  }
 0x753   :  { %v1343_v10 = vadd.f32 %v1296_v53, %v5302_v4  ;;  %v1345_v52 = vadd.f32 %v1337_v25, %v5303_v34  ;;  %v1298_v20 = vpop.f32.mrb[42].mxu0  ;;  %v1339_v21 = vpop.f32.mrb[42].mxu1  ;;  %v3443_v3 = vld [vmem:[#allocation4 + $0xc0] ss:$16 sps:$4 sm:$0xff]   ;;  %v3451_v15 = vld [vmem:[#allocation4 + $0xe4] ss:$16 sps:$4 sm:$0xff]   ;;  %v1500_v4 = vpack.c.bf16 %v4346_v55, %v4300_v6  ;;  %v1502_v34 = vpack.c.bf16 %v4594_v35, %v4530_v13 }
 0x754   :  { %v3209_v22 = vmul.f32 -1.442695, %v1342_v9  ;;  %v1299_v23 = vpop.f32.mrb[43].mxu0  ;;  %v1340_v24 = vpop.f32.mrb[43].mxu1  ;;  %v3211_v27 = vmul.f32 -1.442695, %v1344_v61 }
 0x755   :  { %v3210_v26 = vmul.f32 -1.442695, %v1343_v10  ;;  %v3446_v9 = vld [vmem:[#allocation4 + $0xc8] ss:$16 sps:$4 sm:$0xff]   ;;  %v3454_v61 = vld [vmem:[#allocation4 + $0xec] ss:$16 sps:$4 sm:$0xff]   ;;  %v1501_v10 = vpack.c.bf16 %v4442_v17, %v4392_v1 }
 0x756   :  { %3607 = vpow2.f32 %v3209_v22  ;;  %v3449_v53 = vld [vmem:[#allocation4 + $0xe0] ss:$16 sps:$4 sm:$0xff]   ;;  %v3452_v25 = vld [vmem:[#allocation4 + $0xe8] ss:$16 sps:$4 sm:$0xff]   ;;  %v4656_v6 = vld [vmem:[#allocation7 + $0x104] ss:$16 sps:$4 sm:$0xff]  }
 0x757   :  { %3609 = vpow2.f32 %v3210_v26  ;;  %v4658_v55 = vld [vmem:[#allocation7 + $0x10c] ss:$16 sps:$4 sm:$0xff]   ;;  %v4660_v1 = vld [vmem:[#allocation7 + $0x100] ss:$16 sps:$4 sm:$0xff]   ;;  %v4662_v17 = vld [vmem:[#allocation7 + $0x108] ss:$16 sps:$4 sm:$0xff]  }
 0x758   :  { %3611 = vtanh.f32 %v1345_v52  ;;  %v4668_v13 = vld [vmem:[#allocation7 + $0x124] ss:$16 sps:$4 sm:$0xff]   ;;  %v4670_v35 = vld [vmem:[#allocation7 + $0x12c] ss:$16 sps:$4 sm:$0xff]   ;;  %v4672_v52 = vld [vmem:[#allocation7 + $0x120] ss:$16 sps:$4 sm:$0xff]  }
 0x759   :  { %3613 = vpow2.f32 %v3211_v27  ;;  %v4674_v20 = vld [vmem:[#allocation7 + $0x128] ss:$16 sps:$4 sm:$0xff]   ;;  %v4680_v21 = vld [vmem:[#allocation7 + $0x144] ss:$16 sps:$4 sm:$0xff]   ;;  %v4682_v22 = vld [vmem:[#allocation7 + $0x14c] ss:$16 sps:$4 sm:$0xff]  }
 0x75a   :  { %v4684_v23 = vld [vmem:[#allocation7 + $0x140] ss:$16 sps:$4 sm:$0xff]   ;;  %v4686_v24 = vld [vmem:[#allocation7 + $0x148] ss:$16 sps:$4 sm:$0xff]   ;;  %v4692_v26 = vld [vmem:[#allocation7 + $0x164] ss:$16 sps:$4 sm:$0xff]  }
 0x75b   :  { %v4694_v27 = vld [vmem:[#allocation7 + $0x16c] ss:$16 sps:$4 sm:$0xff]  }
 0x760   :  { %v3608_v2 = vpop.eup %3607 }
 0x761   :  { %v1355_v12 = vadd.f32 1.0, %v3608_v2  ;;  %v3610_v40 = vpop.eup %3609  ;;  %v4696_v2 = vld [vmem:[#allocation7 + $0x160] ss:$16 sps:$4 sm:$0xff]  }
 0x762   :  { %v1356_v42 = vadd.f32 1.0, %v3610_v40  ;;  %v3612_v28 = vpop.eup %3611  ;;  %v4704_v40 = vld [vmem:[#allocation7 + $0x184] ss:$16 sps:$4 sm:$0xff]  }
 0x763   :  { %3615 = vrcp.f32 %v1355_v12  ;;  %v3614_v44 = vpop.eup %3613  ;;  %v4698_v12 = vld [vmem:[#allocation7 + $0x168] ss:$16 sps:$4 sm:$0xff]  }
 0x764   :  { %3617 = vrcp.f32 %v1356_v42  ;;  %v1357_v47 = vadd.f32 1.0, %v3614_v44  ;;  %v4706_v42 = vld [vmem:[#allocation7 + $0x18c] ss:$16 sps:$4 sm:$0xff]   ;;  %v4710_v44 = vld [vmem:[#allocation7 + $0x188] ss:$16 sps:$4 sm:$0xff]  }
 0x766   :  { %3619 = vrcp.f32 %v1357_v47  ;;  %v4722_v47 = vld [vmem:[#allocation7 + $0x1a8] ss:$16 sps:$4 sm:$0xff]  }
 0x76d   :  { %v3616_v29 = vpop.eup %3615 }
 0x76e   :  { %v1366_v45 = vmul.f32 %v3616_v29, %v3612_v28  ;;  %v3618_v30 = vpop.eup %3617  ;;  %v4708_v28 = vld [vmem:[#allocation7 + $0x180] ss:$16 sps:$4 sm:$0xff]   ;;  %v4716_v29 = vld [vmem:[#allocation7 + $0x1a4] ss:$16 sps:$4 sm:$0xff]  }
 0x76f   :  { %v1365_v36 = vmul.f32 %v3618_v30, %v4591_v48  ;;  %v3431_v48 = vld [vmem:[#allocation4 + $0x80] ss:$16 sps:$4 sm:$0xff]  }
 0x770   :  { %v3620_v38 = vpop.eup %3619  ;;  %v4720_v30 = vld [vmem:[#allocation7 + $0x1a0] ss:$16 sps:$4 sm:$0xff]  }
 0x771   :  { %v4635_v37 = vadd.f32 %v1366_v45, %v1365_v36  ;;  %v4718_v45 = vld [vmem:[#allocation7 + $0x1ac] ss:$16 sps:$4 sm:$0xff]   ;;  %v4728_v36 = vld [vmem:[#allocation7 + $0x1c4] ss:$16 sps:$4 sm:$0xff]  }
 0x773   :  { %3621 = vtanh.f32 %v4635_v37 }
 0x77d   :  { %v3622_v39 = vpop.eup %3621 }
 0x77e   :  { %v4638_v41 = vmul.f32 %v3622_v39, %v3620_v38  ;;  %v4730_v38 = vld [vmem:[#allocation7 + $0x1cc] ss:$16 sps:$4 sm:$0xff]   ;;  %v4732_v39 = vld [vmem:[#allocation7 + $0x1c0] ss:$16 sps:$4 sm:$0xff]  }
 0x780   :  { %v1379_v57 = vpack.c.bf16 %v4638_v41, %v4638_v41 }
 0x782   :  { %1413 = vmatmul.mubr.bf16.vlgmr.msra.gmra.mrb[44].mxu0 %v1379_v57  ;;  %1454 = vmatmul.mubr.bf16.vlgmr.msra.gmra.mrb[44].mxu1 %v1379_v57  ;;  %v4742_v57 = vld [vmem:[#allocation7 + $0x1ec] ss:$16 sps:$4 sm:$0xff]  }
 0x783   :  { %1720 = vmatpush1.bf16.msra.mxu0 %v3407_v51  ;;  %1793 = vmatpush1.bf16.msra.mxu1 %v3410_v56  ;;  %v4734_v51 = vld [vmem:[#allocation7 + $0x1c8] ss:$16 sps:$4 sm:$0xff]   ;;  %v4740_v56 = vld [vmem:[#allocation7 + $0x1e4] ss:$16 sps:$4 sm:$0xff]  }
 0x784   :  { %1721 = vmatprep.subr.bf16.mxu0 %v3415_v58  ;;  %1794 = vmatprep.subr.bf16.mxu1 %v3418_v18  ;;  %v4744_v58 = vld [vmem:[#allocation7 + $0x1e0] ss:$16 sps:$4 sm:$0xff]   ;;  %v4746_v18 = vld [vmem:[#allocation7 + $0x1e8] ss:$16 sps:$4 sm:$0xff]  }
 0x785   :  { %1751 = vmatprep.mubr.bf16.mxu0 %v5286_v16  ;;  %1824 = vmatprep.mubr.bf16.mxu1 %v5286_v16 }
 0x787   :  { %1722 = vmatpush1.bf16.msra.mxu0 %v3413_v19  ;;  %1795 = vmatpush1.bf16.msra.mxu1 %v3416_v59 }
 0x788   :  { %1723 = vmatprep.subr.bf16.mxu0 %v3421_v60  ;;  %1796 = vmatprep.subr.bf16.mxu1 %v3424_v62  ;;  %v5304_v60 = vld [vmem:[#allocation30_spill] sm:$0xff] }
 0x78b   :  { %1724 = vmatpush1.bf16.msra.mxu0 %v3419_v54  ;;  %1797 = vmatpush1.bf16.msra.mxu1 %v3422_v63  ;;  %v5305_v54 = vld [vmem:[#allocation34_spill] sm:$0xff] }
 0x78c   :  { %1725 = vmatprep.subr.bf16.mxu0 %v3427_v8  ;;  %1798 = vmatprep.subr.bf16.mxu1 %v3430_v0 }
 0x78f   :  { %1726 = vmatpush1.bf16.msra.mxu0 %v3425_v7  ;;  %1799 = vmatpush1.bf16.msra.mxu1 %v3428_v31  ;;  %v5306_v7 = vld [vmem:[#allocation32_spill] sm:$0xff] }
 0x790   :  { %1727 = vmatprep.subr.bf16.mxu0 %v3433_v46  ;;  %1800 = vmatprep.subr.bf16.mxu1 %v3436_v32  ;;  %v5307_v46 = vld [vmem:[#allocation35_spill] sm:$0xff] }
 0x793   :  { %1728 = vmatpush1.bf16.msra.mxu0 %v3431_v48  ;;  %1801 = vmatpush1.bf16.msra.mxu1 %v3434_v33 }
 0x794   :  { %1729 = vmatprep.subr.bf16.mxu0 %v3439_v49  ;;  %1802 = vmatprep.subr.bf16.mxu1 %v3442_v50 }
 0x797   :  { %1730 = vmatpush1.bf16.msra.mxu0 %v3437_v5  ;;  %1803 = vmatpush1.bf16.msra.mxu1 %v3440_v11 }
 0x798   :  { %1731 = vmatprep.subr.bf16.mxu0 %v3445_v43  ;;  %1804 = vmatprep.subr.bf16.mxu1 %v3448_v14 }
 0x79b   :  { %1732 = vmatpush1.bf16.msra.mxu0 %v3443_v3  ;;  %1805 = vmatpush1.bf16.msra.mxu1 %v3446_v9 }
 0x79c   :  { %1733 = vmatprep.subr.bf16.mxu0 %v3451_v15  ;;  %1806 = vmatprep.subr.bf16.mxu1 %v3454_v61 }
 0x79f   :  { %1734 = vmatpush1.bf16.msra.mxu0 %v3449_v53  ;;  %1807 = vmatpush1.bf16.msra.mxu1 %v3452_v25 }
 0x7a0   :  { %2094 = vmatprep.subr.bf16.mxu0 %v4656_v6  ;;  %2135 = vmatprep.subr.bf16.mxu1 %v4658_v55 }
 0x7a2   :  { %1752 = vmatmul.mubr.bf16.vlgmr.msra.gmra.mrb[48].mxu0 %v1500_v4  ;;  %1825 = vmatmul.mubr.bf16.vlgmr.msra.gmra.mrb[48].mxu1 %v1500_v4 }
 0x7a3   :  { %1761 = vmatprep.mubr.bf16.mxu0 %v5286_v16  ;;  %1834 = vmatprep.mubr.bf16.mxu1 %v5286_v16 }
 0x7a4   :  { %2095 = vmatpush1.bf16.msra.mxu0 %v4660_v1  ;;  %2136 = vmatpush1.bf16.msra.mxu1 %v4662_v17 }
 0x7a5   :  { %2096 = vmatprep.subr.bf16.mxu0 %v4668_v13  ;;  %2137 = vmatprep.subr.bf16.mxu1 %v4670_v35 }
 0x7a8   :  { %2097 = vmatpush1.bf16.msra.mxu0 %v4672_v52  ;;  %2138 = vmatpush1.bf16.msra.mxu1 %v4674_v20 }
 0x7a9   :  { %2098 = vmatprep.subr.bf16.mxu0 %v4680_v21  ;;  %2139 = vmatprep.subr.bf16.mxu1 %v4682_v22 }
 0x7aa   :  { %1762 = vmatmul.mubr.bf16.gmra.mrb[52].mxu0 %v1501_v10  ;;  %1835 = vmatmul.mubr.bf16.gmra.mrb[52].mxu1 %v1501_v10 }
 0x7ab   :  { %1771 = vmatprep.mubr.bf16.mxu0 %v5286_v16  ;;  %1844 = vmatprep.mubr.bf16.mxu1 %v5286_v16 }
 0x7ac   :  { %2099 = vmatpush1.bf16.msra.mxu0 %v4684_v23  ;;  %2140 = vmatpush1.bf16.msra.mxu1 %v4686_v24 }
 0x7ad   :  { %2100 = vmatprep.subr.bf16.mxu0 %v4692_v26  ;;  %2141 = vmatprep.subr.bf16.mxu1 %v4694_v27 }
 0x7b0   :  { %2101 = vmatpush1.bf16.msra.mxu0 %v4696_v2  ;;  %2142 = vmatpush1.bf16.msra.mxu1 %v4698_v12 }
 0x7b1   :  { %2102 = vmatprep.subr.bf16.mxu0 %v4704_v40  ;;  %2143 = vmatprep.subr.bf16.mxu1 %v4706_v42 }
 0x7b2   :  { %1772 = vmatmul.mubr.bf16.gmra.mrb[56].mxu0 %v1502_v34  ;;  %1845 = vmatmul.mubr.bf16.gmra.mrb[56].mxu1 %v1502_v34 }
 0x7b3   :  { %1781 = vmatprep.mubr.bf16.mxu0 %v5286_v16  ;;  %1854 = vmatprep.mubr.bf16.mxu1 %v5286_v16 }
 0x7b4   :  { %2103 = vmatpush1.bf16.msra.mxu0 %v4708_v28  ;;  %2144 = vmatpush1.bf16.msra.mxu1 %v4710_v44 }
 0x7b5   :  { %2104 = vmatprep.subr.bf16.mxu0 %v4716_v29  ;;  %2145 = vmatprep.subr.bf16.mxu1 %v4718_v45 }
 0x7b8   :  { %2105 = vmatpush1.bf16.msra.mxu0 %v4720_v30  ;;  %2146 = vmatpush1.bf16.msra.mxu1 %v4722_v47 }
 0x7b9   :  { %2106 = vmatprep.subr.bf16.mxu0 %v4728_v36  ;;  %2147 = vmatprep.subr.bf16.mxu1 %v4730_v38 }
 0x7bc   :  { %2107 = vmatpush1.bf16.msra.mxu0 %v4732_v39  ;;  %2148 = vmatpush1.bf16.msra.mxu1 %v4734_v51 }
 0x7bd   :  { %2108 = vmatprep.subr.bf16.mxu0 %v4740_v56  ;;  %2149 = vmatprep.subr.bf16.mxu1 %v4742_v57 }
 0x7c0   :  { %2109 = vmatpush1.bf16.msra.mxu0 %v4744_v58  ;;  %2150 = vmatpush1.bf16.msra.mxu1 %v4746_v18 }
 0x7c1   :  { %2209 = vmatprep.subr.bf16.mxu0 %v4656_v6  ;;  %2250 = vmatprep.subr.bf16.mxu1 %v4658_v55 }
 0x855   :  { %v1414_v19 = vpop.f32.mrb[44].mxu0  ;;  %v1455_v59 = vpop.f32.mrb[44].mxu1 }
 0x856   :  { %v1462_v62 = vadd.f32 %v1414_v19, %v5304_v60  ;;  %v1464_v63 = vadd.f32 %v1455_v59, %v5305_v54  ;;  %v1416_v8 = vpop.f32.mrb[45].mxu0  ;;  %v1457_v0 = vpop.f32.mrb[45].mxu1 }
 0x857   :  { %v1463_v31 = vadd.f32 %v1416_v8, %v5306_v7  ;;  %v1465_v32 = vadd.f32 %v1457_v0, %v5307_v46  ;;  %v1418_v48 = vpop.f32.mrb[46].mxu0  ;;  %v1459_v33 = vpop.f32.mrb[46].mxu1 }
 0x858   :  { %v3212_v49 = vmul.f32 -1.442695, %v1462_v62  ;;  %v1419_v50 = vpop.f32.mrb[47].mxu0  ;;  %v1460_v5 = vpop.f32.mrb[47].mxu1  ;;  %v3214_v43 = vmul.f32 -1.442695, %v1464_v63 }
 0x859   :  { %v3213_v11 = vmul.f32 -1.442695, %v1463_v31 }
 0x85a   :  { %3623 = vpow2.f32 %v3212_v49 }
 0x85b   :  { %3625 = vpow2.f32 %v3213_v11 }
 0x85c   :  { %3627 = vtanh.f32 %v1465_v32 }
 0x85d   :  { %3629 = vpow2.f32 %v3214_v43 }
 0x864   :  { %v3624_v14 = vpop.eup %3623 }
 0x865   :  { %v1475_v3 = vadd.f32 1.0, %v3624_v14  ;;  %v3626_v9 = vpop.eup %3625 }
 0x866   :  { %v1476_v15 = vadd.f32 1.0, %v3626_v9  ;;  %v3628_v61 = vpop.eup %3627 }
 0x867   :  { %3631 = vrcp.f32 %v1475_v3  ;;  %v3630_v53 = vpop.eup %3629 }
 0x868   :  { %3633 = vrcp.f32 %v1476_v15  ;;  %v1477_v34 = vadd.f32 1.0, %v3630_v53 }
 0x86a   :  { %3635 = vrcp.f32 %v1477_v34 }
 0x871   :  { %v3632_v25 = vpop.eup %3631 }
 0x872   :  { %v1486_v4 = vmul.f32 %v3632_v25, %v3628_v61  ;;  %v3634_v10 = vpop.eup %3633 }
 0x873   :  { %v1485_v19 = vmul.f32 %v3634_v10, %v4635_v37 }
 0x874   :  { %v3636_v11 = vpop.eup %3635 }
 0x875   :  { %v4759_v59 = vpop.f32.mrb[48].mxu0  ;;  %v4761_v60 = vpop.f32.mrb[48].mxu1  ;;  %v1487_v62 = vadd.f32 %v1486_v4, %v1485_v19 }
 0x876   :  { %v4763_v54 = vpop.f32.mrb[49].mxu0  ;;  %v4765_v63 = vpop.f32.mrb[49].mxu1 }
 0x877   :  { %v4767_v8 = vpop.f32.mrb[50].mxu0  ;;  %v4769_v0 = vpop.f32.mrb[50].mxu1  ;;  %3637 = vtanh.f32 %v1487_v62 }
 0x878   :  { %v4771_v7 = vpop.f32.mrb[51].mxu0  ;;  %v4773_v31 = vpop.f32.mrb[51].mxu1 }
 0x87d   :  { %v4775_v37 = vpop.f32.mrb[52].mxu0  ;;  %v4777_v46 = vpop.f32.mrb[52].mxu1 }
 0x87e   :  { %5308 = vst [vmem:[#allocation17_spill] sm:$0xff] %v4777_v46  ;;  %v4779_v32 = vpop.f32.mrb[53].mxu0  ;;  %v4781_v48 = vpop.f32.mrb[53].mxu1 }
 0x87f   :  { %5309 = vst [vmem:[#allocation15_spill] sm:$0xff] %v4779_v32  ;;  %5310 = vst [vmem:[#allocation18_spill] sm:$0xff] %v4781_v48  ;;  %v4783_v33 = vpop.f32.mrb[54].mxu0  ;;  %v4785_v49 = vpop.f32.mrb[54].mxu1 }
 0x880   :  { %5311 = vst [vmem:[#allocation16_spill] sm:$0xff] %v4783_v33  ;;  %5312 = vst [vmem:[#allocation19_spill] sm:$0xff] %v4785_v49  ;;  %v4787_v50 = vpop.f32.mrb[55].mxu0  ;;  %v4789_v5 = vpop.f32.mrb[55].mxu1 }
 0x881   :  { %5313 = vst [vmem:[#allocation20_spill] sm:$0xff] %v4787_v50  ;;  %5314 = vst [vmem:[#allocation23_spill] sm:$0xff] %v4789_v5  ;;  %v3638_v43 = vpop.eup %3637 }
 0x882   :  { %v1489_v14 = vmul.f32 %v3638_v43, %v3636_v11 }
 0x884   :  { %v1503_v15 = vpack.c.bf16 %v1489_v14, %v4638_v41  ;;  %v3215_v41 = vld [vmem:[%s5252_s4 + $0x4] sm:$0xf] }
 0x885   :  { %v4791_v3 = vpop.f32.mrb[56].mxu0  ;;  %v4793_v9 = vpop.f32.mrb[56].mxu1 }
 0x886   :  { %5315 = vst [vmem:[#allocation21_spill] sm:$0xff] %v4791_v3  ;;  %5316 = vst [vmem:[#allocation25_spill] sm:$0xff] %v4793_v9  ;;  %v4796_v61 = vpop.f32.mrb[57].mxu0  ;;  %v4798_v53 = vpop.f32.mrb[57].mxu1  ;;  %1782 = vmatmul.mubr.bf16.gmra.mrb[60].mxu0 %v1503_v15  ;;  %1855 = vmatmul.mubr.bf16.gmra.mrb[60].mxu1 %v1503_v15 }
 0x887   :  { %5317 = vst [vmem:[#allocation22_spill] sm:$0xff] %v4796_v61  ;;  %5318 = vst [vmem:[#allocation26_spill] sm:$0xff] %v4798_v53  ;;  %v4800_v25 = vpop.f32.mrb[58].mxu0  ;;  %v4802_v4 = vpop.f32.mrb[58].mxu1  ;;  %2126 = vmatprep.mubr.bf16.mxu0 %v5286_v16  ;;  %2167 = vmatprep.mubr.bf16.mxu1 %v5286_v16 }
 0x888   :  { %5319 = vst [vmem:[#allocation24_spill] sm:$0xff] %v4800_v25  ;;  %5320 = vst [vmem:[#allocation27_spill] sm:$0xff] %v4802_v4  ;;  %v4804_v10 = vpop.f32.mrb[59].mxu0  ;;  %v4806_v34 = vpop.f32.mrb[59].mxu1 }
 0x889   :  { %5321 = vst [vmem:[#allocation28_spill] sm:$0xff] %v4804_v10  ;;  %5322 = vst [vmem:[#allocation31_spill] sm:$0xff] %v4806_v34  ;;  %v5329_v34 = vld [vmem:[#allocation14_spill] sm:$0xff] }
 0x88a   :  { %v5330_v10 = vsub.s32 0, %v5329_v34  ;;  %v5331_v25 = vsub.s32 2, %v5329_v34 }
 0x88c   :  { %v4863_v4 = vrot.slane %v3215_v41, %v5330_v10  ;;  %v4867_v53 = vrot.slane %v3215_v41, %v5331_v25 }
 0x88e   :  { %2127 = vmatmul.mubr.bf16.vlgmr.msra.gmra.mrb[64].mxu0 %v5286_v16  ;;  %2168 = vmatmul.mubr.bf16.vlgmr.msra.gmra.mrb[64].mxu1 %v5286_v16  ;;  %v1754_v10 = vadd.f32 %v4759_v59, %v4863_v4 }
 0x88f   :  { %2210 = vmatpush1.bf16.msra.mxu0 %v4660_v1  ;;  %2251 = vmatpush1.bf16.msra.mxu1 %v4662_v17 }
 0x890   :  { %2211 = vmatprep.subr.bf16.mxu0 %v4668_v13  ;;  %2252 = vmatprep.subr.bf16.mxu1 %v4670_v35 }
 0x891   :  { %2241 = vmatprep.mubr.bf16.mxu0 %v5286_v16  ;;  %2282 = vmatprep.mubr.bf16.mxu1 %v5286_v16 }
 0x893   :  { %2212 = vmatpush1.bf16.msra.mxu0 %v4672_v52  ;;  %2253 = vmatpush1.bf16.msra.mxu1 %v4674_v20 }
 0x894   :  { %2213 = vmatprep.subr.bf16.mxu0 %v4680_v21  ;;  %2254 = vmatprep.subr.bf16.mxu1 %v4682_v22 }
 0x897   :  { %2214 = vmatpush1.bf16.msra.mxu0 %v4684_v23  ;;  %2255 = vmatpush1.bf16.msra.mxu1 %v4686_v24 }
 0x898   :  { %2215 = vmatprep.subr.bf16.mxu0 %v4692_v26  ;;  %2256 = vmatprep.subr.bf16.mxu1 %v4694_v27 }
 0x89b   :  { %2216 = vmatpush1.bf16.msra.mxu0 %v4696_v2  ;;  %2257 = vmatpush1.bf16.msra.mxu1 %v4698_v12 }
 0x89c   :  { %2217 = vmatprep.subr.bf16.mxu0 %v4704_v40  ;;  %2258 = vmatprep.subr.bf16.mxu1 %v4706_v42 }
 0x89f   :  { %2218 = vmatpush1.bf16.msra.mxu0 %v4708_v28  ;;  %2259 = vmatpush1.bf16.msra.mxu1 %v4710_v44 }
 0x8a0   :  { %2219 = vmatprep.subr.bf16.mxu0 %v4716_v29  ;;  %2260 = vmatprep.subr.bf16.mxu1 %v4718_v45 }
 0x8a3   :  { %2220 = vmatpush1.bf16.msra.mxu0 %v4720_v30  ;;  %2261 = vmatpush1.bf16.msra.mxu1 %v4722_v47 }
 0x8a4   :  { %2221 = vmatprep.subr.bf16.mxu0 %v4728_v36  ;;  %2262 = vmatprep.subr.bf16.mxu1 %v4730_v38 }
 0x8a7   :  { %2222 = vmatpush1.bf16.msra.mxu0 %v4732_v39  ;;  %2263 = vmatpush1.bf16.msra.mxu1 %v4734_v51 }
 0x8a8   :  { %2223 = vmatprep.subr.bf16.mxu0 %v4740_v56  ;;  %2264 = vmatprep.subr.bf16.mxu1 %v4742_v57 }
 0x8ab   :  { %2224 = vmatpush1.bf16.msra.mxu0 %v4744_v58  ;;  %2265 = vmatpush1.bf16.msra.mxu1 %v4746_v18 }
 0x8ac   :  { %2324 = vmatprep.subr.bf16.mxu0 %v4656_v6  ;;  %2365 = vmatprep.subr.bf16.mxu1 %v4658_v55 }
 0x959   :  { %v4849_v19 = vpop.f32.mrb[60].mxu0  ;;  %v4851_v62 = vpop.f32.mrb[60].mxu1 }
 0x95a   :  { %5323 = vst [vmem:[#allocation29_spill] sm:$0xff] %v4849_v19  ;;  %5324 = vst [vmem:[#allocation33_spill] sm:$0xff] %v4851_v62  ;;  %v4853_v11 = vpop.f32.mrb[61].mxu0  ;;  %v4855_v43 = vpop.f32.mrb[61].mxu1 }
 0x95b   :  { %5325 = vst [vmem:[#allocation30_spill] sm:$0xff] %v4853_v11  ;;  %5326 = vst [vmem:[#allocation34_spill] sm:$0xff] %v4855_v43  ;;  %v4857_v14 = vpop.f32.mrb[62].mxu0  ;;  %v4859_v15 = vpop.f32.mrb[62].mxu1  ;;  %v5334_v11 = vsub.s32 1, %v5329_v34 }
 0x95c   :  { %5327 = vst [vmem:[#allocation32_spill] sm:$0xff] %v4857_v14  ;;  %5328 = vst [vmem:[#allocation35_spill] sm:$0xff] %v4859_v15  ;;  %v4869_v61 = vpop.f32.mrb[63].mxu0  ;;  %v4871_v19 = vpop.f32.mrb[63].mxu1  ;;  %v5335_v14 = vsub.s32 3, %v5329_v34  ;;  %v1827_v15 = vadd.f32 %v4761_v60, %v4867_v53 }
 0x95d   :  { %5332 = vst [vmem:[#allocation14_spill] sm:$0xff] %v4869_v61  ;;  %5333 = vst [vmem:[#allocation36_spill] sm:$0xff] %v4871_v19  ;;  %v4875_v62 = vrot.slane %v3215_v41, %v5334_v11 }
 0x95e   :  { %v4879_v43 = vrot.slane %v3215_v41, %v5335_v14 }
 0x95f   :  { %v1756_v25 = vadd.f32 %v4763_v54, %v4875_v62 }
 0x960   :  { %v1829_v19 = vadd.f32 %v4765_v63, %v4879_v43 }
 0x961   :  { %v2128_v61 = vpop.f32.mrb[64].mxu0  ;;  %v2169_v9 = vpop.f32.mrb[64].mxu1 }
 0x962   :  { %v2176_v11 = vadd.f32 %v2128_v61, %v1754_v10  ;;  %v2178_v3 = vadd.f32 %v2169_v9, %v1827_v15  ;;  %v2130_v5 = vpop.f32.mrb[65].mxu0  ;;  %v2171_v34 = vpop.f32.mrb[65].mxu1 }
 0x963   :  { %v2177_v41 = vadd.f32 %v2130_v5, %v1756_v25  ;;  %v2179_v14 = vadd.f32 %v2171_v34, %v1829_v19  ;;  %v2132_v50 = vpop.f32.mrb[66].mxu0  ;;  %v2173_v49 = vpop.f32.mrb[66].mxu1  ;;  %v1760_v34 = vadd.f32 %v4771_v7, %v4875_v62 }
 0x964   :  { %v3280_v59 = vmul.f32 -1.442695, %v2176_v11  ;;  %v2133_v33 = vpop.f32.mrb[67].mxu0  ;;  %v2174_v48 = vpop.f32.mrb[67].mxu1  ;;  %v3282_v54 = vmul.f32 -1.442695, %v2178_v3  ;;  %v1831_v11 = vadd.f32 %v4769_v0, %v4867_v53 }
 0x965   :  { %v3281_v60 = vmul.f32 -1.442695, %v2177_v41  ;;  %v1833_v41 = vadd.f32 %v4773_v31, %v4879_v43 }
 0x966   :  { %3639 = vpow2.f32 %v3280_v59 }
 0x967   :  { %3641 = vpow2.f32 %v3281_v60 }
 0x968   :  { %3643 = vtanh.f32 %v2179_v14 }
 0x969   :  { %3645 = vpow2.f32 %v3282_v54 }
 0x970   :  { %v3640_v32 = vpop.eup %3639 }
 0x971   :  { %v2189_v46 = vadd.f32 1.0, %v3640_v32  ;;  %v3642_v63 = vpop.eup %3641 }
 0x972   :  { %v2190_v9 = vadd.f32 1.0, %v3642_v63  ;;  %v3644_v61 = vpop.eup %3643 }
 0x973   :  { %3647 = vrcp.f32 %v2189_v46  ;;  %v3646_v5 = vpop.eup %3645  ;;  %v1758_v46 = vadd.f32 %v4767_v8, %v4863_v4 }
 0x974   :  { %3649 = vrcp.f32 %v2190_v9  ;;  %v2191_v15 = vadd.f32 1.0, %v3646_v5 }
 0x976   :  { %3651 = vrcp.f32 %v2191_v15 }
 0x97d   :  { %v3648_v19 = vpop.eup %3647 }
 0x97e   :  { %v2200_v50 = vmul.f32 %v3648_v19, %v3644_v61  ;;  %v3650_v49 = vpop.eup %3649 }
 0x97f   :  { %v2199_v33 = vmul.f32 0.0, %v3650_v49 }
 0x980   :  { %v3652_v3 = vpop.eup %3651 }
 0x981   :  { %v4889_v48 = vadd.f32 %v2200_v50, %v2199_v33 }
 0x983   :  { %3653 = vtanh.f32 %v4889_v48 }
 0x98d   :  { %v3654_v32 = vpop.eup %3653 }
 0x98e   :  { %v2203_v10 = vmul.f32 %v3654_v32, %v3652_v3 }
 0x990   :  { %v2208_v25 = vpack.c.bf16 %v2203_v10, %v2203_v10 }
 0x992   :  { %2242 = vmatmul.mubr.bf16.vlgmr.msra.gmra.mrb[68].mxu0 %v2208_v25  ;;  %2283 = vmatmul.mubr.bf16.vlgmr.msra.gmra.mrb[68].mxu1 %v2208_v25 }
 0x993   :  { %2325 = vmatpush1.bf16.msra.mxu0 %v4660_v1  ;;  %2366 = vmatpush1.bf16.msra.mxu1 %v4662_v17 }
 0x994   :  { %2326 = vmatprep.subr.bf16.mxu0 %v4668_v13  ;;  %2367 = vmatprep.subr.bf16.mxu1 %v4670_v35 }
 0x995   :  { %2356 = vmatprep.mubr.bf16.mxu0 %v5286_v16  ;;  %2397 = vmatprep.mubr.bf16.mxu1 %v5286_v16 }
 0x997   :  { %2327 = vmatpush1.bf16.msra.mxu0 %v4672_v52  ;;  %2368 = vmatpush1.bf16.msra.mxu1 %v4674_v20 }
 0x998   :  { %2328 = vmatprep.subr.bf16.mxu0 %v4680_v21  ;;  %2369 = vmatprep.subr.bf16.mxu1 %v4682_v22 }
 0x99b   :  { %2329 = vmatpush1.bf16.msra.mxu0 %v4684_v23  ;;  %2370 = vmatpush1.bf16.msra.mxu1 %v4686_v24 }
 0x99c   :  { %2330 = vmatprep.subr.bf16.mxu0 %v4692_v26  ;;  %2371 = vmatprep.subr.bf16.mxu1 %v4694_v27 }
 0x99f   :  { %2331 = vmatpush1.bf16.msra.mxu0 %v4696_v2  ;;  %2372 = vmatpush1.bf16.msra.mxu1 %v4698_v12 }
 0x9a0   :  { %2332 = vmatprep.subr.bf16.mxu0 %v4704_v40  ;;  %2373 = vmatprep.subr.bf16.mxu1 %v4706_v42 }
 0x9a3   :  { %2333 = vmatpush1.bf16.msra.mxu0 %v4708_v28  ;;  %2374 = vmatpush1.bf16.msra.mxu1 %v4710_v44 }
 0x9a4   :  { %2334 = vmatprep.subr.bf16.mxu0 %v4716_v29  ;;  %2375 = vmatprep.subr.bf16.mxu1 %v4718_v45 }
 0x9a7   :  { %2335 = vmatpush1.bf16.msra.mxu0 %v4720_v30  ;;  %2376 = vmatpush1.bf16.msra.mxu1 %v4722_v47 }
 0x9a8   :  { %2336 = vmatprep.subr.bf16.mxu0 %v4728_v36  ;;  %2377 = vmatprep.subr.bf16.mxu1 %v4730_v38 }
 0x9ab   :  { %2337 = vmatpush1.bf16.msra.mxu0 %v4732_v39  ;;  %2378 = vmatpush1.bf16.msra.mxu1 %v4734_v51 }
 0x9ac   :  { %2338 = vmatprep.subr.bf16.mxu0 %v4740_v56  ;;  %2379 = vmatprep.subr.bf16.mxu1 %v4742_v57 }
 0x9af   :  { %2339 = vmatpush1.bf16.msra.mxu0 %v4744_v58  ;;  %2380 = vmatpush1.bf16.msra.mxu1 %v4746_v18 }
 0x9b0   :  { %2439 = vmatprep.subr.bf16.mxu0 %v4656_v6  ;;  %2480 = vmatprep.subr.bf16.mxu1 %v4658_v55 }
 0xa65   :  { %v2243_v14 = vpop.f32.mrb[68].mxu0  ;;  %v2284_v59 = vpop.f32.mrb[68].mxu1 }
 0xa66   :  { %v2291_v60 = vadd.f32 %v2243_v14, %v1758_v46  ;;  %v2293_v54 = vadd.f32 %v2284_v59, %v1831_v11  ;;  %v2245_v63 = vpop.f32.mrb[69].mxu0  ;;  %v2286_v9 = vpop.f32.mrb[69].mxu1 }
 0xa67   :  { %v2292_v61 = vadd.f32 %v2245_v63, %v1760_v34  ;;  %v2294_v5 = vadd.f32 %v2286_v9, %v1833_v41  ;;  %v2247_v19 = vpop.f32.mrb[70].mxu0  ;;  %v2288_v50 = vpop.f32.mrb[70].mxu1 }
 0xa68   :  { %v3283_v8 = vmul.f32 -1.442695, %v2291_v60  ;;  %v2248_v49 = vpop.f32.mrb[71].mxu0  ;;  %v2289_v15 = vpop.f32.mrb[71].mxu1  ;;  %v3285_v7 = vmul.f32 -1.442695, %v2293_v54 }
 0xa69   :  { %v3284_v0 = vmul.f32 -1.442695, %v2292_v61  ;;  %v5336_v61 = vld [vmem:[#allocation17_spill] sm:$0xff]  ;;  %v5337_v19 = vld [vmem:[#allocation15_spill] sm:$0xff] }
 0xa6a   :  { %3655 = vpow2.f32 %v3283_v8  ;;  %v1766_v50 = vadd.f32 %v5337_v19, %v4875_v62  ;;  %v5338_v8 = vld [vmem:[#allocation18_spill] sm:$0xff] }
 0xa6b   :  { %3657 = vpow2.f32 %v3284_v0  ;;  %v1839_v49 = vadd.f32 %v5338_v8, %v4879_v43 }
 0xa6c   :  { %3659 = vtanh.f32 %v2294_v5  ;;  %v1837_v5 = vadd.f32 %v5336_v61, %v4867_v53 }
 0xa6d   :  { %3661 = vpow2.f32 %v3285_v7 }
 0xa74   :  { %v3656_v33 = vpop.eup %3655 }
 0xa75   :  { %v2304_v3 = vadd.f32 1.0, %v3656_v33  ;;  %v3658_v31 = vpop.eup %3657 }
 0xa76   :  { %v2305_v32 = vadd.f32 1.0, %v3658_v31  ;;  %v3660_v10 = vpop.eup %3659 }
 0xa77   :  { %3663 = vrcp.f32 %v2304_v3  ;;  %v3662_v25 = vpop.eup %3661 }
 0xa78   :  { %3665 = vrcp.f32 %v2305_v32  ;;  %v2306_v41 = vadd.f32 1.0, %v3662_v25 }
 0xa7a   :  { %3667 = vrcp.f32 %v2306_v41 }
 0xa81   :  { %v3664_v46 = vpop.eup %3663 }
 0xa82   :  { %v2315_v11 = vmul.f32 %v3664_v46, %v3660_v10  ;;  %v3666_v34 = vpop.eup %3665 }
 0xa83   :  { %v2314_v14 = vmul.f32 %v3666_v34, %v4889_v48  ;;  %v1764_v48 = vadd.f32 %v4775_v37, %v4863_v4 }
 0xa84   :  { %v3668_v60 = vpop.eup %3667 }
 0xa85   :  { %v4935_v59 = vadd.f32 %v2315_v11, %v2314_v14 }
 0xa87   :  { %3669 = vtanh.f32 %v4935_v59 }
 0xa91   :  { %v3670_v54 = vpop.eup %3669 }
 0xa92   :  { %v2318_v63 = vmul.f32 %v3670_v54, %v3668_v60 }
 0xa94   :  { %v2323_v9 = vpack.c.bf16 %v2318_v63, %v2318_v63 }
 0xa96   :  { %2357 = vmatmul.mubr.bf16.vlgmr.msra.gmra.mrb[72].mxu0 %v2323_v9  ;;  %2398 = vmatmul.mubr.bf16.vlgmr.msra.gmra.mrb[72].mxu1 %v2323_v9 }
 0xa97   :  { %2440 = vmatpush1.bf16.msra.mxu0 %v4660_v1  ;;  %2481 = vmatpush1.bf16.msra.mxu1 %v4662_v17 }
 0xa98   :  { %2441 = vmatprep.subr.bf16.mxu0 %v4668_v13  ;;  %2482 = vmatprep.subr.bf16.mxu1 %v4670_v35 }
 0xa99   :  { %2471 = vmatprep.mubr.bf16.mxu0 %v5286_v16  ;;  %2512 = vmatprep.mubr.bf16.mxu1 %v5286_v16 }
 0xa9b   :  { %2442 = vmatpush1.bf16.msra.mxu0 %v4672_v52  ;;  %2483 = vmatpush1.bf16.msra.mxu1 %v4674_v20 }
 0xa9c   :  { %2443 = vmatprep.subr.bf16.mxu0 %v4680_v21  ;;  %2484 = vmatprep.subr.bf16.mxu1 %v4682_v22 }
 0xa9f   :  { %2444 = vmatpush1.bf16.msra.mxu0 %v4684_v23  ;;  %2485 = vmatpush1.bf16.msra.mxu1 %v4686_v24 }
 0xaa0   :  { %2445 = vmatprep.subr.bf16.mxu0 %v4692_v26  ;;  %2486 = vmatprep.subr.bf16.mxu1 %v4694_v27 }
 0xaa3   :  { %2446 = vmatpush1.bf16.msra.mxu0 %v4696_v2  ;;  %2487 = vmatpush1.bf16.msra.mxu1 %v4698_v12 }
 0xaa4   :  { %2447 = vmatprep.subr.bf16.mxu0 %v4704_v40  ;;  %2488 = vmatprep.subr.bf16.mxu1 %v4706_v42 }
 0xaa7   :  { %2448 = vmatpush1.bf16.msra.mxu0 %v4708_v28  ;;  %2489 = vmatpush1.bf16.msra.mxu1 %v4710_v44 }
 0xaa8   :  { %2449 = vmatprep.subr.bf16.mxu0 %v4716_v29  ;;  %2490 = vmatprep.subr.bf16.mxu1 %v4718_v45 }
 0xaab   :  { %2450 = vmatpush1.bf16.msra.mxu0 %v4720_v30  ;;  %2491 = vmatpush1.bf16.msra.mxu1 %v4722_v47 }
 0xaac   :  { %2451 = vmatprep.subr.bf16.mxu0 %v4728_v36  ;;  %2492 = vmatprep.subr.bf16.mxu1 %v4730_v38 }
 0xaaf   :  { %2452 = vmatpush1.bf16.msra.mxu0 %v4732_v39  ;;  %2493 = vmatpush1.bf16.msra.mxu1 %v4734_v51 }
 0xab0   :  { %2453 = vmatprep.subr.bf16.mxu0 %v4740_v56  ;;  %2494 = vmatprep.subr.bf16.mxu1 %v4742_v57 }
 0xab3   :  { %2454 = vmatpush1.bf16.msra.mxu0 %v4744_v58  ;;  %2495 = vmatpush1.bf16.msra.mxu1 %v4746_v18 }
 0xab4   :  { %2554 = vmatprep.subr.bf16.mxu0 %v4656_v6  ;;  %2595 = vmatprep.subr.bf16.mxu1 %v4658_v55 }
 0xb69   :  { %v2358_v15 = vpop.f32.mrb[72].mxu0  ;;  %v2399_v0 = vpop.f32.mrb[72].mxu1 }
 0xb6a   :  { %v2406_v7 = vadd.f32 %v2358_v15, %v1764_v48  ;;  %v2408_v33 = vadd.f32 %v2399_v0, %v1837_v5  ;;  %v2360_v3 = vpop.f32.mrb[73].mxu0  ;;  %v2401_v31 = vpop.f32.mrb[73].mxu1 }
 0xb6b   :  { %v2407_v32 = vadd.f32 %v2360_v3, %v1766_v50  ;;  %v2409_v10 = vadd.f32 %v2401_v31, %v1839_v49  ;;  %v2362_v25 = vpop.f32.mrb[74].mxu0  ;;  %v2403_v46 = vpop.f32.mrb[74].mxu1 }
 0xb6c   :  { %v3286_v37 = vmul.f32 -1.442695, %v2406_v7  ;;  %v2363_v11 = vpop.f32.mrb[75].mxu0  ;;  %v2404_v34 = vpop.f32.mrb[75].mxu1  ;;  %v3288_v14 = vmul.f32 -1.442695, %v2408_v33 }
 0xb6d   :  { %v3287_v41 = vmul.f32 -1.442695, %v2407_v32  ;;  %v5340_v32 = vld [vmem:[#allocation19_spill] sm:$0xff]  ;;  %v5341_v25 = vld [vmem:[#allocation20_spill] sm:$0xff] }
 0xb6e   :  { %3671 = vpow2.f32 %v3286_v37  ;;  %v1770_v46 = vadd.f32 %v5341_v25, %v4875_v62  ;;  %v5342_v37 = vld [vmem:[#allocation23_spill] sm:$0xff] }
 0xb6f   :  { %3673 = vpow2.f32 %v3287_v41  ;;  %v1843_v11 = vadd.f32 %v5342_v37, %v4879_v43 }
 0xb70   :  { %3675 = vtanh.f32 %v2409_v10  ;;  %v1841_v10 = vadd.f32 %v5340_v32, %v4867_v53 }
 0xb71   :  { %3677 = vpow2.f32 %v3288_v14 }
 0xb78   :  { %v3672_v60 = vpop.eup %3671 }
 0xb79   :  { %v2419_v54 = vadd.f32 1.0, %v3672_v60  ;;  %v3674_v63 = vpop.eup %3673 }
 0xb7a   :  { %v2420_v9 = vadd.f32 1.0, %v3674_v63  ;;  %v3676_v48 = vpop.eup %3675 }
 0xb7b   :  { %3679 = vrcp.f32 %v2419_v54  ;;  %v3678_v61 = vpop.eup %3677 }
 0xb7c   :  { %3681 = vrcp.f32 %v2420_v9  ;;  %v2421_v8 = vadd.f32 1.0, %v3678_v61 }
 0xb7e   :  { %3683 = vrcp.f32 %v2421_v8 }
 0xb85   :  { %v3680_v5 = vpop.eup %3679 }
 0xb86   :  { %v2430_v19 = vmul.f32 %v3680_v5, %v3676_v48  ;;  %v3682_v50 = vpop.eup %3681 }
 0xb87   :  { %v2429_v49 = vmul.f32 %v3682_v50, %v4935_v59  ;;  %v5339_v59 = vld [vmem:[#allocation16_spill] sm:$0xff] }
 0xb88   :  { %v3684_v0 = vpop.eup %3683  ;;  %v1768_v31 = vadd.f32 %v5339_v59, %v4863_v4 }
 0xb89   :  { %v4981_v15 = vadd.f32 %v2430_v19, %v2429_v49 }
 0xb8b   :  { %3685 = vtanh.f32 %v4981_v15 }
 0xb95   :  { %v3686_v7 = vpop.eup %3685 }
 0xb96   :  { %v2433_v33 = vmul.f32 %v3686_v7, %v3684_v0 }
 0xb98   :  { %v2438_v3 = vpack.c.bf16 %v2433_v33, %v2433_v33 }
 0xb9a   :  { %2472 = vmatmul.mubr.bf16.vlgmr.msra.gmra.mrb[76].mxu0 %v2438_v3  ;;  %2513 = vmatmul.mubr.bf16.vlgmr.msra.gmra.mrb[76].mxu1 %v2438_v3 }
 0xb9b   :  { %2555 = vmatpush1.bf16.msra.mxu0 %v4660_v1  ;;  %2596 = vmatpush1.bf16.msra.mxu1 %v4662_v17 }
 0xb9c   :  { %2556 = vmatprep.subr.bf16.mxu0 %v4668_v13  ;;  %2597 = vmatprep.subr.bf16.mxu1 %v4670_v35 }
 0xb9d   :  { %2586 = vmatprep.mubr.bf16.mxu0 %v5286_v16  ;;  %2627 = vmatprep.mubr.bf16.mxu1 %v5286_v16 }
 0xb9f   :  { %2557 = vmatpush1.bf16.msra.mxu0 %v4672_v52  ;;  %2598 = vmatpush1.bf16.msra.mxu1 %v4674_v20 }
 0xba0   :  { %2558 = vmatprep.subr.bf16.mxu0 %v4680_v21  ;;  %2599 = vmatprep.subr.bf16.mxu1 %v4682_v22 }
 0xba3   :  { %2559 = vmatpush1.bf16.msra.mxu0 %v4684_v23  ;;  %2600 = vmatpush1.bf16.msra.mxu1 %v4686_v24 }
 0xba4   :  { %2560 = vmatprep.subr.bf16.mxu0 %v4692_v26  ;;  %2601 = vmatprep.subr.bf16.mxu1 %v4694_v27 }
 0xba7   :  { %2561 = vmatpush1.bf16.msra.mxu0 %v4696_v2  ;;  %2602 = vmatpush1.bf16.msra.mxu1 %v4698_v12 }
 0xba8   :  { %2562 = vmatprep.subr.bf16.mxu0 %v4704_v40  ;;  %2603 = vmatprep.subr.bf16.mxu1 %v4706_v42 }
 0xbab   :  { %2563 = vmatpush1.bf16.msra.mxu0 %v4708_v28  ;;  %2604 = vmatpush1.bf16.msra.mxu1 %v4710_v44 }
 0xbac   :  { %2564 = vmatprep.subr.bf16.mxu0 %v4716_v29  ;;  %2605 = vmatprep.subr.bf16.mxu1 %v4718_v45 }
 0xbaf   :  { %2565 = vmatpush1.bf16.msra.mxu0 %v4720_v30  ;;  %2606 = vmatpush1.bf16.msra.mxu1 %v4722_v47 }
 0xbb0   :  { %2566 = vmatprep.subr.bf16.mxu0 %v4728_v36  ;;  %2607 = vmatprep.subr.bf16.mxu1 %v4730_v38 }
 0xbb3   :  { %2567 = vmatpush1.bf16.msra.mxu0 %v4732_v39  ;;  %2608 = vmatpush1.bf16.msra.mxu1 %v4734_v51 }
 0xbb4   :  { %2568 = vmatprep.subr.bf16.mxu0 %v4740_v56  ;;  %2609 = vmatprep.subr.bf16.mxu1 %v4742_v57 }
 0xbb7   :  { %2569 = vmatpush1.bf16.msra.mxu0 %v4744_v58  ;;  %2610 = vmatpush1.bf16.msra.mxu1 %v4746_v18 }
 0xbb8   :  { %2669 = vmatprep.subr.bf16.mxu0 %v4656_v6  ;;  %2710 = vmatprep.subr.bf16.mxu1 %v4658_v55 }
 0xc6d   :  { %v2473_v34 = vpop.f32.mrb[76].mxu0  ;;  %v2514_v41 = vpop.f32.mrb[76].mxu1 }
 0xc6e   :  { %v2521_v14 = vadd.f32 %v2473_v34, %v1768_v31  ;;  %v2523_v60 = vadd.f32 %v2514_v41, %v1841_v10  ;;  %v2475_v54 = vpop.f32.mrb[77].mxu0  ;;  %v2516_v63 = vpop.f32.mrb[77].mxu1 }
 0xc6f   :  { %v2522_v9 = vadd.f32 %v2475_v54, %v1770_v46  ;;  %v2524_v48 = vadd.f32 %v2516_v63, %v1843_v11  ;;  %v2477_v61 = vpop.f32.mrb[78].mxu0  ;;  %v2518_v5 = vpop.f32.mrb[78].mxu1 }
 0xc70   :  { %v3289_v19 = vmul.f32 -1.442695, %v2521_v14  ;;  %v2478_v50 = vpop.f32.mrb[79].mxu0  ;;  %v2519_v8 = vpop.f32.mrb[79].mxu1  ;;  %v3291_v0 = vmul.f32 -1.442695, %v2523_v60 }
 0xc71   :  { %v3290_v49 = vmul.f32 -1.442695, %v2522_v9  ;;  %v5076_v50 = vld [vmem:[#allocation7 + $0x100] ss:$16 sps:$4 sm:$0xff]   ;;  %v5079_v8 = vld [vmem:[#allocation7 + $0x108] ss:$16 sps:$4 sm:$0xff]  }
 0xc72   :  { %3687 = vpow2.f32 %v3289_v19 }
 0xc73   :  { %3689 = vpow2.f32 %v3290_v49  ;;  %v5082_v49 = vld [vmem:[#allocation7 + $0x124] ss:$16 sps:$4 sm:$0xff]  }
 0xc74   :  { %3691 = vtanh.f32 %v2524_v48 }
 0xc75   :  { %3693 = vpow2.f32 %v3291_v0  ;;  %v5085_v0 = vld [vmem:[#allocation7 + $0x12c] ss:$16 sps:$4 sm:$0xff]  }
 0xc7c   :  { %v3688_v7 = vpop.eup %3687 }
 0xc7d   :  { %v2534_v33 = vadd.f32 1.0, %v3688_v7  ;;  %v3690_v3 = vpop.eup %3689  ;;  %v5090_v7 = vld [vmem:[#allocation7 + $0x120] ss:$16 sps:$4 sm:$0xff]  }
 0xc7e   :  { %v2535_v59 = vadd.f32 1.0, %v3690_v3  ;;  %v3692_v31 = vpop.eup %3691  ;;  %v5096_v3 = vld [vmem:[#allocation7 + $0x144] ss:$16 sps:$4 sm:$0xff]  }
 0xc7f   :  { %3695 = vrcp.f32 %v2534_v33  ;;  %v3694_v32 = vpop.eup %3693  ;;  %v5093_v33 = vld [vmem:[#allocation7 + $0x128] ss:$16 sps:$4 sm:$0xff]  }
 0xc80   :  { %3697 = vrcp.f32 %v2535_v59  ;;  %v2536_v37 = vadd.f32 1.0, %v3694_v32  ;;  %v5099_v59 = vld [vmem:[#allocation7 + $0x14c] ss:$16 sps:$4 sm:$0xff]   ;;  %v5105_v32 = vld [vmem:[#allocation7 + $0x148] ss:$16 sps:$4 sm:$0xff]  }
 0xc82   :  { %3699 = vrcp.f32 %v2536_v37  ;;  %v5117_v37 = vld [vmem:[#allocation7 + $0x168] ss:$16 sps:$4 sm:$0xff]  }
 0xc89   :  { %v3696_v10 = vpop.eup %3695 }
 0xc8a   :  { %v2545_v25 = vmul.f32 %v3696_v10, %v3692_v31  ;;  %v3698_v46 = vpop.eup %3697  ;;  %v5102_v31 = vld [vmem:[#allocation7 + $0x140] ss:$16 sps:$4 sm:$0xff]   ;;  %v5108_v10 = vld [vmem:[#allocation7 + $0x164] ss:$16 sps:$4 sm:$0xff]  }
 0xc8b   :  { %v2544_v11 = vmul.f32 %v3698_v46, %v4981_v15  ;;  %v5114_v46 = vld [vmem:[#allocation7 + $0x160] ss:$16 sps:$4 sm:$0xff]  }
 0xc8c   :  { %v3700_v41 = vpop.eup %3699 }
 0xc8d   :  { %v5027_v34 = vadd.f32 %v2545_v25, %v2544_v11  ;;  %v5111_v25 = vld [vmem:[#allocation7 + $0x16c] ss:$16 sps:$4 sm:$0xff]   ;;  %v5120_v11 = vld [vmem:[#allocation7 + $0x184] ss:$16 sps:$4 sm:$0xff]  }
 0xc8f   :  { %3701 = vtanh.f32 %v5027_v34 }
 0xc99   :  { %v3702_v14 = vpop.eup %3701 }
 0xc9a   :  { %v2548_v60 = vmul.f32 %v3702_v14, %v3700_v41  ;;  %v5126_v41 = vld [vmem:[#allocation7 + $0x180] ss:$16 sps:$4 sm:$0xff]   ;;  %v5129_v14 = vld [vmem:[#allocation7 + $0x188] ss:$16 sps:$4 sm:$0xff]  }
 0xc9c   :  { %v2553_v54 = vpack.c.bf16 %v2548_v60, %v2548_v60  ;;  %v5132_v60 = vld [vmem:[#allocation7 + $0x1a4] ss:$16 sps:$4 sm:$0xff]  }
 0xc9e   :  { %2587 = vmatmul.mubr.bf16.vlgmr.msra.gmra.mrb[80].mxu0 %v2553_v54  ;;  %2628 = vmatmul.mubr.bf16.vlgmr.msra.gmra.mrb[80].mxu1 %v2553_v54  ;;  %v5135_v54 = vld [vmem:[#allocation7 + $0x1ac] ss:$16 sps:$4 sm:$0xff]  }
 0xc9f   :  { %2670 = vmatpush1.bf16.msra.mxu0 %v4660_v1  ;;  %2711 = vmatpush1.bf16.msra.mxu1 %v4662_v17  ;;  %v5343_v1 = vld [vmem:[#allocation21_spill] sm:$0xff] }
 0xca0   :  { %2671 = vmatprep.subr.bf16.mxu0 %v4668_v13  ;;  %2712 = vmatprep.subr.bf16.mxu1 %v4670_v35  ;;  %v1774_v17 = vadd.f32 %v5343_v1, %v4863_v4  ;;  %v5344_v13 = vld [vmem:[#allocation25_spill] sm:$0xff] }
 0xca1   :  { %2701 = vmatprep.mubr.bf16.mxu0 %v5286_v16  ;;  %2742 = vmatprep.mubr.bf16.mxu1 %v5286_v16  ;;  %v1847_v35 = vadd.f32 %v5344_v13, %v4867_v53  ;;  %v5138_v1 = vld [vmem:[#allocation7 + $0x1a0] ss:$16 sps:$4 sm:$0xff]   ;;  %v5144_v13 = vld [vmem:[#allocation7 + $0x1c4] ss:$16 sps:$4 sm:$0xff]  }
 0xca3   :  { %2672 = vmatpush1.bf16.msra.mxu0 %v4672_v52  ;;  %2713 = vmatpush1.bf16.msra.mxu1 %v4674_v20  ;;  %v5345_v52 = vld [vmem:[#allocation22_spill] sm:$0xff] }
 0xca4   :  { %2673 = vmatprep.subr.bf16.mxu0 %v4680_v21  ;;  %2714 = vmatprep.subr.bf16.mxu1 %v4682_v22  ;;  %v1776_v20 = vadd.f32 %v5345_v52, %v4875_v62  ;;  %v5346_v21 = vld [vmem:[#allocation26_spill] sm:$0xff]  ;;  %v5150_v52 = vld [vmem:[#allocation7 + $0x1c0] ss:$16 sps:$4 sm:$0xff]  }
 0xca5   :  { %v1849_v22 = vadd.f32 %v5346_v21, %v4879_v43  ;;  %v5156_v21 = vld [vmem:[#allocation7 + $0x1e4] ss:$16 sps:$4 sm:$0xff]  }
 0xca7   :  { %2674 = vmatpush1.bf16.msra.mxu0 %v4684_v23  ;;  %2715 = vmatpush1.bf16.msra.mxu1 %v4686_v24 }
 0xca8   :  { %2675 = vmatprep.subr.bf16.mxu0 %v4692_v26  ;;  %2716 = vmatprep.subr.bf16.mxu1 %v4694_v27 }
 0xcab   :  { %2676 = vmatpush1.bf16.msra.mxu0 %v4696_v2  ;;  %2717 = vmatpush1.bf16.msra.mxu1 %v4698_v12 }
 0xcac   :  { %2677 = vmatprep.subr.bf16.mxu0 %v4704_v40  ;;  %2718 = vmatprep.subr.bf16.mxu1 %v4706_v42 }
 0xcaf   :  { %2678 = vmatpush1.bf16.msra.mxu0 %v4708_v28  ;;  %2719 = vmatpush1.bf16.msra.mxu1 %v4710_v44 }
 0xcb0   :  { %2679 = vmatprep.subr.bf16.mxu0 %v4716_v29  ;;  %2720 = vmatprep.subr.bf16.mxu1 %v4718_v45 }
 0xcb3   :  { %2680 = vmatpush1.bf16.msra.mxu0 %v4720_v30  ;;  %2721 = vmatpush1.bf16.msra.mxu1 %v4722_v47 }
 0xcb4   :  { %2681 = vmatprep.subr.bf16.mxu0 %v4728_v36  ;;  %2722 = vmatprep.subr.bf16.mxu1 %v4730_v38 }
 0xcb7   :  { %2682 = vmatpush1.bf16.msra.mxu0 %v4732_v39  ;;  %2723 = vmatpush1.bf16.msra.mxu1 %v4734_v51 }
 0xcb8   :  { %2683 = vmatprep.subr.bf16.mxu0 %v4740_v56  ;;  %2724 = vmatprep.subr.bf16.mxu1 %v4742_v57 }
 0xcbb   :  { %2684 = vmatpush1.bf16.msra.mxu0 %v4744_v58  ;;  %2725 = vmatpush1.bf16.msra.mxu1 %v4746_v18 }
 0xcbc   :  { %2784 = vmatprep.subr.bf16.mxu0 %v4656_v6  ;;  %2825 = vmatprep.subr.bf16.mxu1 %v4658_v55 }
 0xd71   :  { %v2588_v23 = vpop.f32.mrb[80].mxu0  ;;  %v2629_v24 = vpop.f32.mrb[80].mxu1 }
 0xd72   :  { %v2636_v26 = vadd.f32 %v2588_v23, %v1774_v17  ;;  %v2638_v27 = vadd.f32 %v2629_v24, %v1847_v35  ;;  %v2590_v2 = vpop.f32.mrb[81].mxu0  ;;  %v2631_v6 = vpop.f32.mrb[81].mxu1  ;;  %v5141_v17 = vld [vmem:[#allocation7 + $0x1a8] ss:$16 sps:$4 sm:$0xff]   ;;  %v5147_v35 = vld [vmem:[#allocation7 + $0x1cc] ss:$16 sps:$4 sm:$0xff]  }
 0xd73   :  { %v2637_v12 = vadd.f32 %v2590_v2, %v1776_v20  ;;  %v2639_v55 = vadd.f32 %v2631_v6, %v1849_v22  ;;  %v2592_v40 = vpop.f32.mrb[82].mxu0  ;;  %v2633_v42 = vpop.f32.mrb[82].mxu1  ;;  %v5153_v20 = vld [vmem:[#allocation7 + $0x1c8] ss:$16 sps:$4 sm:$0xff]   ;;  %v5159_v22 = vld [vmem:[#allocation7 + $0x1ec] ss:$16 sps:$4 sm:$0xff]  }
 0xd74   :  { %v3292_v28 = vmul.f32 -1.442695, %v2636_v26  ;;  %v2593_v44 = vpop.f32.mrb[83].mxu0  ;;  %v2634_v29 = vpop.f32.mrb[83].mxu1  ;;  %v3294_v30 = vmul.f32 -1.442695, %v2638_v27 }
 0xd75   :  { %v3293_v45 = vmul.f32 -1.442695, %v2637_v12  ;;  %v5162_v23 = vld [vmem:[#allocation7 + $0x1e0] ss:$16 sps:$4 sm:$0xff]   ;;  %v5165_v24 = vld [vmem:[#allocation7 + $0x1e8] ss:$16 sps:$4 sm:$0xff]  }
 0xd76   :  { %3703 = vpow2.f32 %v3292_v28  ;;  %v3829_v26 = vld [vmem:[#allocation7 + $0x104] ss:$16 sps:$4 sm:$0xff]   ;;  %v3830_v27 = vld [vmem:[#allocation7 + $0x10c] ss:$16 sps:$4 sm:$0xff]  }
 0xd77   :  { %3705 = vpow2.f32 %v3293_v45  ;;  %v5347_v2 = vld [vmem:[#allocation24_spill] sm:$0xff]  ;;  %v5348_v12 = vld [vmem:[#allocation27_spill] sm:$0xff] }
 0xd78   :  { %3707 = vtanh.f32 %v2639_v55  ;;  %v1778_v6 = vadd.f32 %v5347_v2, %v4863_v4  ;;  %v1851_v55 = vadd.f32 %v5348_v12, %v4867_v53  ;;  %v5349_v40 = vld [vmem:[#allocation28_spill] sm:$0xff]  ;;  %v5350_v28 = vld [vmem:[#allocation31_spill] sm:$0xff] }
 0xd79   :  { %3709 = vpow2.f32 %v3294_v30  ;;  %v1780_v42 = vadd.f32 %v5349_v40, %v4875_v62  ;;  %v1853_v44 = vadd.f32 %v5350_v28, %v4879_v43 }
 0xd80   :  { %v3704_v47 = vpop.eup %3703 }
 0xd81   :  { %v2649_v36 = vadd.f32 1.0, %v3704_v47  ;;  %v3706_v38 = vpop.eup %3705 }
 0xd82   :  { %v2650_v39 = vadd.f32 1.0, %v3706_v38  ;;  %v3708_v51 = vpop.eup %3707 }
 0xd83   :  { %3711 = vrcp.f32 %v2649_v36  ;;  %v3710_v56 = vpop.eup %3709 }
 0xd84   :  { %3713 = vrcp.f32 %v2650_v39  ;;  %v2651_v15 = vadd.f32 1.0, %v3710_v56 }
 0xd86   :  { %3715 = vrcp.f32 %v2651_v15 }
 0xd8d   :  { %v3712_v57 = vpop.eup %3711 }
 0xd8e   :  { %v2660_v58 = vmul.f32 %v3712_v57, %v3708_v51  ;;  %v3714_v18 = vpop.eup %3713 }
 0xd8f   :  { %v2659_v63 = vmul.f32 %v3714_v18, %v5027_v34  ;;  %v5123_v34 = vld [vmem:[#allocation7 + $0x18c] ss:$16 sps:$4 sm:$0xff]  }
 0xd90   :  { %v3716_v48 = vpop.eup %3715 }
 0xd91   :  { %v5073_v9 = vadd.f32 %v2660_v58, %v2659_v63 }
 0xd93   :  { %3717 = vtanh.f32 %v5073_v9 }
 0xd9d   :  { %v3718_v61 = vpop.eup %3717 }
 0xd9e   :  { %v2663_v5 = vmul.f32 %v3718_v61, %v3716_v48 }
 0xda0   :  { %v2668_v19 = vpack.c.bf16 %v2663_v5, %v2663_v5 }
 0xda2   :  { %2702 = vmatmul.mubr.bf16.vlgmr.msra.gmra.mrb[84].mxu0 %v2668_v19  ;;  %2743 = vmatmul.mubr.bf16.vlgmr.msra.gmra.mrb[84].mxu1 %v2668_v19 }
 0xda3   :  { %2785 = vmatpush1.bf16.msra.mxu0 %v5076_v50  ;;  %2826 = vmatpush1.bf16.msra.mxu1 %v5079_v8 }
 0xda4   :  { %2786 = vmatprep.subr.bf16.mxu0 %v5082_v49  ;;  %2827 = vmatprep.subr.bf16.mxu1 %v5085_v0 }
 0xda5   :  { %2816 = vmatprep.mubr.bf16.mxu0 %v5286_v16  ;;  %2857 = vmatprep.mubr.bf16.mxu1 %v5286_v16 }
 0xda7   :  { %2787 = vmatpush1.bf16.msra.mxu0 %v5090_v7  ;;  %2828 = vmatpush1.bf16.msra.mxu1 %v5093_v33 }
 0xda8   :  { %2788 = vmatprep.subr.bf16.mxu0 %v5096_v3  ;;  %2829 = vmatprep.subr.bf16.mxu1 %v5099_v59 }
 0xdab   :  { %2789 = vmatpush1.bf16.msra.mxu0 %v5102_v31  ;;  %2830 = vmatpush1.bf16.msra.mxu1 %v5105_v32 }
 0xdac   :  { %2790 = vmatprep.subr.bf16.mxu0 %v5108_v10  ;;  %2831 = vmatprep.subr.bf16.mxu1 %v5111_v25 }
 0xdaf   :  { %2791 = vmatpush1.bf16.msra.mxu0 %v5114_v46  ;;  %2832 = vmatpush1.bf16.msra.mxu1 %v5117_v37 }
 0xdb0   :  { %2792 = vmatprep.subr.bf16.mxu0 %v5120_v11  ;;  %2833 = vmatprep.subr.bf16.mxu1 %v5123_v34 }
 0xdb3   :  { %2793 = vmatpush1.bf16.msra.mxu0 %v5126_v41  ;;  %2834 = vmatpush1.bf16.msra.mxu1 %v5129_v14 }
 0xdb4   :  { %2794 = vmatprep.subr.bf16.mxu0 %v5132_v60  ;;  %2835 = vmatprep.subr.bf16.mxu1 %v5135_v54 }
 0xdb7   :  { %2795 = vmatpush1.bf16.msra.mxu0 %v5138_v1  ;;  %2836 = vmatpush1.bf16.msra.mxu1 %v5141_v17 }
 0xdb8   :  { %2796 = vmatprep.subr.bf16.mxu0 %v5144_v13  ;;  %2837 = vmatprep.subr.bf16.mxu1 %v5147_v35 }
 0xdbb   :  { %2797 = vmatpush1.bf16.msra.mxu0 %v5150_v52  ;;  %2838 = vmatpush1.bf16.msra.mxu1 %v5153_v20 }
 0xdbc   :  { %2798 = vmatprep.subr.bf16.mxu0 %v5156_v21  ;;  %2839 = vmatprep.subr.bf16.mxu1 %v5159_v22 }
 0xdbf   :  { %2799 = vmatpush1.bf16.msra.mxu0 %v5162_v23  ;;  %2840 = vmatpush1.bf16.msra.mxu1 %v5165_v24 }
 0xdc0   :  { %2899 = vmatprep.subr.bf16.mxu0 %v3829_v26  ;;  %2940 = vmatprep.subr.bf16.mxu1 %v3830_v27 }
 0xe75   :  { %v2703_v29 = vpop.f32.mrb[84].mxu0  ;;  %v2744_v45 = vpop.f32.mrb[84].mxu1 }
 0xe76   :  { %v2751_v30 = vadd.f32 %v2703_v29, %v1778_v6  ;;  %v2753_v47 = vadd.f32 %v2744_v45, %v1851_v55  ;;  %v2705_v36 = vpop.f32.mrb[85].mxu0  ;;  %v2746_v38 = vpop.f32.mrb[85].mxu1 }
 0xe77   :  { %v2752_v39 = vadd.f32 %v2705_v36, %v1780_v42  ;;  %v2754_v51 = vadd.f32 %v2746_v38, %v1853_v44  ;;  %v2707_v56 = vpop.f32.mrb[86].mxu0  ;;  %v2748_v57 = vpop.f32.mrb[86].mxu1 }
 0xe78   :  { %v3295_v58 = vmul.f32 -1.442695, %v2751_v30  ;;  %v2708_v18 = vpop.f32.mrb[87].mxu0  ;;  %v2749_v15 = vpop.f32.mrb[87].mxu1  ;;  %v3297_v48 = vmul.f32 -1.442695, %v2753_v47 }
 0xe79   :  { %v3296_v63 = vmul.f32 -1.442695, %v2752_v39  ;;  %v3934_v18 = vmov 0.0   ;;  %v3504_v15 = vld [vmem:[#allocation9 + $0x8] sm:$0xff]  }
 0xe7a   :  { %3719 = vpow2.f32 %v3295_v58  ;;  %v3503_v58 = vld [vmem:[#allocation9] sm:$0xff]  }
 0xe7b   :  { %3721 = vpow2.f32 %v3296_v63  ;;  %v3505_v63 = vld [vmem:[#allocation9 + $0x10] sm:$0xff]  }
 0xe7c   :  { %3723 = vtanh.f32 %v2754_v51 }
 0xe7d   :  { %3725 = vpow2.f32 %v3297_v48  ;;  %v3506_v48 = vld [vmem:[#allocation9 + $0x18] sm:$0xff]  }
 0xe84   :  { %v3720_v61 = vpop.eup %3719 }
 0xe85   :  { %v2764_v5 = vadd.f32 1.0, %v3720_v61  ;;  %v3722_v19 = vpop.eup %3721  ;;  %v3507_v61 = vld [vmem:[#allocation9 + $0x20] sm:$0xff]  }
 0xe86   :  { %v2765_v26 = vadd.f32 1.0, %v3722_v19  ;;  %v3724_v27 = vpop.eup %3723  ;;  %v3509_v19 = vld [vmem:[#allocation9 + $0x30] sm:$0xff]  }
 0xe87   :  { %3727 = vrcp.f32 %v2764_v5  ;;  %v3726_v2 = vpop.eup %3725  ;;  %v3508_v5 = vld [vmem:[#allocation9 + $0x28] sm:$0xff]  }
 0xe88   :  { %3729 = vrcp.f32 %v2765_v26  ;;  %v2766_v40 = vadd.f32 1.0, %v3726_v2  ;;  %v3510_v26 = vld [vmem:[#allocation9 + $0x38] sm:$0xff]  }
 0xe8a   :  { %3731 = vrcp.f32 %v2766_v40 }
 0xe91   :  { %v3728_v6 = vpop.eup %3727 }
 0xe92   :  { %v2775_v12 = vmul.f32 %v3728_v6, %v3724_v27  ;;  %v3730_v55 = vpop.eup %3729  ;;  %v5355_v27 = vld [vmem:[#allocation32_spill] sm:$0xff]  ;;  %v5356_v6 = vld [vmem:[#allocation35_spill] sm:$0xff] }
 0xe93   :  { %v2774_v42 = vmul.f32 %v3730_v55, %v5073_v9  ;;  %v1788_v2 = vadd.f32 %v5355_v27, %v4863_v4  ;;  %v5357_v55 = vld [vmem:[#allocation14_spill] sm:$0xff] }
 0xe94   :  { %v3732_v44 = vpop.eup %3731  ;;  %v1790_v40 = vadd.f32 %v5357_v55, %v4875_v62 }
 0xe95   :  { %v5177_v28 = vadd.f32 %v2775_v12, %v2774_v42  ;;  %v1861_v12 = vadd.f32 %v5356_v6, %v4867_v53  ;;  %v5358_v42 = vld [vmem:[#allocation36_spill] sm:$0xff] }
 0xe97   :  { %3733 = vtanh.f32 %v5177_v28 }
 0xea1   :  { %v3734_v29 = vpop.eup %3733 }
 0xea2   :  { %v2778_v45 = vmul.f32 %v3734_v29, %v3732_v44 }
 0xea4   :  { %v2783_v30 = vpack.c.bf16 %v2778_v45, %v2778_v45 }
 0xea6   :  { %2817 = vmatmul.mubr.bf16.vlgmr.msra.gmra.mrb[88].mxu0 %v2783_v30  ;;  %2858 = vmatmul.mubr.bf16.vlgmr.msra.gmra.mrb[88].mxu1 %v2783_v30 }
 0xea7   :  { %2900 = vmatpush1.bf16.msra.mxu0 %v5076_v50  ;;  %2941 = vmatpush1.bf16.msra.mxu1 %v5079_v8  ;;  %v5352_v50 = vld [vmem:[#allocation33_spill] sm:$0xff] }
 0xea8   :  { %2901 = vmatprep.subr.bf16.mxu0 %v5082_v49  ;;  %2942 = vmatprep.subr.bf16.mxu1 %v5085_v0  ;;  %v1857_v8 = vadd.f32 %v5352_v50, %v4867_v53  ;;  %v5353_v49 = vld [vmem:[#allocation30_spill] sm:$0xff] }
 0xea9   :  { %2931 = vmatprep.mubr.bf16.mxu0 %v5286_v16  ;;  %2972 = vmatprep.mubr.bf16.mxu1 %v5286_v16  ;;  %v5351_v16 = vld [vmem:[#allocation29_spill] sm:$0xff]  ;;  %v1786_v0 = vadd.f32 %v5353_v49, %v4875_v62 }
 0xeaa   :  { %v1784_v9 = vadd.f32 %v5351_v16, %v4863_v4 }
 0xeab   :  { %2902 = vmatpush1.bf16.msra.mxu0 %v5090_v7  ;;  %2943 = vmatpush1.bf16.msra.mxu1 %v5093_v33  ;;  %v5354_v7 = vld [vmem:[#allocation34_spill] sm:$0xff] }
 0xeac   :  { %2903 = vmatprep.subr.bf16.mxu0 %v5096_v3  ;;  %2944 = vmatprep.subr.bf16.mxu1 %v5099_v59  ;;  %v1859_v33 = vadd.f32 %v5354_v7, %v4879_v43 }
 0xeaf   :  { %2904 = vmatpush1.bf16.msra.mxu0 %v5102_v31  ;;  %2945 = vmatpush1.bf16.msra.mxu1 %v5105_v32 }
 0xeb0   :  { %2905 = vmatprep.subr.bf16.mxu0 %v5108_v10  ;;  %2946 = vmatprep.subr.bf16.mxu1 %v5111_v25 }
 0xeb3   :  { %2906 = vmatpush1.bf16.msra.mxu0 %v5114_v46  ;;  %2947 = vmatpush1.bf16.msra.mxu1 %v5117_v37 }
 0xeb4   :  { %2907 = vmatprep.subr.bf16.mxu0 %v5120_v11  ;;  %2948 = vmatprep.subr.bf16.mxu1 %v5123_v34 }
 0xeb7   :  { %2908 = vmatpush1.bf16.msra.mxu0 %v5126_v41  ;;  %2949 = vmatpush1.bf16.msra.mxu1 %v5129_v14 }
 0xeb8   :  { %2909 = vmatprep.subr.bf16.mxu0 %v5132_v60  ;;  %2950 = vmatprep.subr.bf16.mxu1 %v5135_v54 }
 0xebb   :  { %2910 = vmatpush1.bf16.msra.mxu0 %v5138_v1  ;;  %2951 = vmatpush1.bf16.msra.mxu1 %v5141_v17 }
 0xebc   :  { %2911 = vmatprep.subr.bf16.mxu0 %v5144_v13  ;;  %2952 = vmatprep.subr.bf16.mxu1 %v5147_v35 }
 0xebf   :  { %2912 = vmatpush1.bf16.msra.mxu0 %v5150_v52  ;;  %2953 = vmatpush1.bf16.msra.mxu1 %v5153_v20 }
 0xec0   :  { %2913 = vmatprep.subr.bf16.mxu0 %v5156_v21  ;;  %2954 = vmatprep.subr.bf16.mxu1 %v5159_v22 }
 0xec3   :  { %2914 = vmatpush1.bf16.msra.mxu0 %v5162_v23  ;;  %2955 = vmatpush1.bf16.msra.mxu1 %v5165_v24 }
 0xec4   :  { %3322 = vmatprep.subr.bf16.mxu0 %v3934_v18 }
 0xf79   :  { %v2818_v3 = vpop.f32.mrb[88].mxu0  ;;  %v2859_v59 = vpop.f32.mrb[88].mxu1 }
 0xf7a   :  { %v2866_v31 = vadd.f32 %v2818_v3, %v1784_v9  ;;  %v2868_v32 = vadd.f32 %v2859_v59, %v1857_v8  ;;  %v2820_v10 = vpop.f32.mrb[89].mxu0  ;;  %v2861_v25 = vpop.f32.mrb[89].mxu1 }
 0xf7b   :  { %v2867_v46 = vadd.f32 %v2820_v10, %v1786_v0  ;;  %v2869_v37 = vadd.f32 %v2861_v25, %v1859_v33  ;;  %v2822_v11 = vpop.f32.mrb[90].mxu0  ;;  %v2863_v34 = vpop.f32.mrb[90].mxu1 }
 0xf7c   :  { %v3298_v41 = vmul.f32 -1.442695, %v2866_v31  ;;  %v2823_v14 = vpop.f32.mrb[91].mxu0  ;;  %v2864_v60 = vpop.f32.mrb[91].mxu1  ;;  %v3300_v1 = vmul.f32 -1.442695, %v2868_v32 }
 0xf7d   :  { %v3299_v54 = vmul.f32 -1.442695, %v2867_v46 }
 0xf7e   :  { %3735 = vpow2.f32 %v3298_v41 }
 0xf7f   :  { %3737 = vpow2.f32 %v3299_v54 }
 0xf80   :  { %3739 = vtanh.f32 %v2869_v37 }
 0xf81   :  { %3741 = vpow2.f32 %v3300_v1 }
 0xf88   :  { %v3736_v17 = vpop.eup %3735 }
 0xf89   :  { %v2879_v13 = vadd.f32 1.0, %v3736_v17  ;;  %v3738_v35 = vpop.eup %3737  ;;  %v3304_v17 = vld [vmem:[%s5254_s6] ss:$0 sm:$0xff] }
 0xf8a   :  { %v2880_v52 = vadd.f32 1.0, %v3738_v35  ;;  %v3740_v20 = vpop.eup %3739 }
 0xf8b   :  { %3743 = vrcp.f32 %v2879_v13  ;;  %v3742_v21 = vpop.eup %3741 }
 0xf8c   :  { %3745 = vrcp.f32 %v2880_v52  ;;  %v2881_v47 = vadd.f32 1.0, %v3742_v21 }
 0xf8e   :  { %3747 = vrcp.f32 %v2881_v47 }
 0xf95   :  { %v3744_v22 = vpop.eup %3743 }
 0xf96   :  { %v2890_v23 = vmul.f32 %v3744_v22, %v3740_v20  ;;  %v3746_v24 = vpop.eup %3745 }
 0xf97   :  { %v2889_v36 = vmul.f32 %v3746_v24, %v5177_v28  ;;  %v1863_v28 = vadd.f32 %v5358_v42, %v4879_v43 }
 0xf98   :  { %v3748_v39 = vpop.eup %3747 }
 0xf99   :  { %v5221_v38 = vadd.f32 %v2890_v23, %v2889_v36 }
 0xf9b   :  { %3749 = vtanh.f32 %v5221_v38 }
 0xfa5   :  { %v3750_v51 = vpop.eup %3749 }
 0xfa6   :  { %v2893_v56 = vmul.f32 %v3750_v51, %v3748_v39 }
 0xfa8   :  { %v2898_v57 = vpack.c.bf16 %v2893_v56, %v2893_v56 }
 0xfaa   :  { %2932 = vmatmul.mubr.bf16.vlgmr.msra.gmra.mrb[92].mxu0 %v2898_v57  ;;  %2973 = vmatmul.mubr.bf16.vlgmr.msra.gmra.mrb[92].mxu1 %v2898_v57 }
 0xfab   :  { %3323 = vmatpush3.bf16.msra.mxu0 %v3503_v58  ;;  %3338 = vmatprep.mubr.msk.bf16.mxu0 %vm3935_vm2, %v3934_v18 }
 0xfac   :  { %3324 = vmatprep.subr.bf16.mxu0 %v3934_v18 }
 0xfaf   :  { %3325 = vmatpush3.bf16.msra.mxu0 %v3504_v15 }
 0xfb0   :  { %3326 = vmatprep.subr.bf16.mxu0 %v3934_v18 }
 0xfb3   :  { %3327 = vmatpush3.bf16.msra.mxu0 %v3505_v63 }
 0xfb4   :  { %3328 = vmatprep.subr.bf16.mxu0 %v3934_v18 }
 0xfb7   :  { %3329 = vmatpush3.bf16.msra.mxu0 %v3506_v48 }
 0xfb8   :  { %3330 = vmatprep.subr.bf16.mxu0 %v3934_v18 }
 0xfbb   :  { %3331 = vmatpush3.bf16.msra.mxu0 %v3507_v61 }
 0xfbc   :  { %3332 = vmatprep.subr.bf16.mxu0 %v3934_v18 }
 0xfbf   :  { %3333 = vmatpush3.bf16.msra.mxu0 %v3508_v5 }
 0xfc0   :  { %3334 = vmatprep.subr.bf16.mxu0 %v3934_v18 }
 0xfc3   :  { %3335 = vmatpush3.bf16.msra.mxu0 %v3509_v19 }
 0xfc4   :  { %3336 = vmatprep.subr.bf16.mxu0 %v3934_v18 }
 0xfc7   :  { %3337 = vmatpush3.bf16.msra.mxu0 %v3510_v26 }
0x107d   :  { %v2933_v44 = vpop.f32.mrb[92].mxu0  ;;  %v2974_v29 = vpop.f32.mrb[92].mxu1 }
0x107e   :  { %v2981_v45 = vadd.f32 %v2933_v44, %v1788_v2  ;;  %v2983_v30 = vadd.f32 %v2974_v29, %v1861_v12  ;;  %v2935_v16 = vpop.f32.mrb[93].mxu0  ;;  %v2976_v9 = vpop.f32.mrb[93].mxu1 }
0x107f   :  { %v2982_v50 = vadd.f32 %v2935_v16, %v1790_v40  ;;  %v2984_v8 = vadd.f32 %v2976_v9, %v1863_v28  ;;  %v2937_v49 = vpop.f32.mrb[94].mxu0  ;;  %v2978_v0 = vpop.f32.mrb[94].mxu1 }
0x1080   :  { %v3301_v4 = vmul.f32 -1.442695, %v2981_v45  ;;  %v2938_v7 = vpop.f32.mrb[95].mxu0  ;;  %v2979_v33 = vpop.f32.mrb[95].mxu1  ;;  %v3303_v62 = vmul.f32 -1.442695, %v2983_v30 }
0x1081   :  { %v3302_v53 = vmul.f32 -1.442695, %v2982_v50 }
0x1082   :  { %3751 = vpow2.f32 %v3301_v4 }
0x1083   :  { %3753 = vpow2.f32 %v3302_v53 }
0x1084   :  { %3755 = vtanh.f32 %v2984_v8 }
0x1085   :  { %3757 = vpow2.f32 %v3303_v62 }
0x108c   :  { %v3752_v3 = vpop.eup %3751 }
0x108d   :  { %v2994_v59 = vadd.f32 1.0, %v3752_v3  ;;  %v3754_v43 = vpop.eup %3753 }
0x108e   :  { %v2995_v31 = vadd.f32 1.0, %v3754_v43  ;;  %v3756_v32 = vpop.eup %3755 }
0x108f   :  { %3759 = vrcp.f32 %v2994_v59  ;;  %v3758_v10 = vpop.eup %3757 }
0x1090   :  { %3761 = vrcp.f32 %v2995_v31  ;;  %v2996_v11 = vadd.f32 1.0, %v3758_v10 }
0x1092   :  { %3763 = vrcp.f32 %v2996_v11 }
0x1099   :  { %v3760_v25 = vpop.eup %3759 }
0x109a   :  { %v3005_v46 = vmul.f32 %v3760_v25, %v3756_v32  ;;  %v3762_v37 = vpop.eup %3761 }
0x109b   :  { %v3004_v34 = vmul.f32 %v3762_v37, %v5221_v38 }
0x109c   :  { %v3764_v14 = vpop.eup %3763 }
0x109d   :  { %v3006_v41 = vadd.f32 %v3005_v46, %v3004_v34 }
0x109f   :  { %3765 = vtanh.f32 %v3006_v41 }
0x10a9   :  { %v3766_v60 = vpop.eup %3765 }
0x10aa   :  { %v3008_v54 = vmul.f32 %v3766_v60, %v3764_v14 }
0x10ac   :  { %v3009_v1 = vpack.c.bf16 %v3008_v54, %v3008_v54 }
0x10ae   :  { %3339 = vmatmul.mubr.bf16.vlgmr.msra.gmra.mrb[96].mxu0 %v3009_v1 }
0x1181   :  { %v3115_v13 = vpop.f32.mrb[96].mxu0 }
0x1182   :  { %v3116_v35 = vadd.f32 %v3304_v17, %v3115_v13  ;;  %v3340_v52 = vpop.f32.mrb[97].mxu0 }
0x1183   :  { %v3118_v20 = vpop.f32.mrb[98].mxu0 }
0x1184   :  { %3121 = vst [vmem:[#allocation10] sm:$0xff] %v3116_v35  ;;  %v3341_v21 = vpop.f32.mrb[99].mxu0 }
0x1185   :  { %3908 = shalt.err (!%p3905_p0)
}
0x1186   :  { %s3909_s6 = scalar_lea.hbm %s5255_s7, 128 }
0x1187   :  { %p3910_p1 = scmp.ne.s32.totalorder %s5255_s7, %s3909_s6  ;;  %p3913_p2 = scmp.lt.u32.totalorder %s3909_s6, %s5255_s7 }
0x1189   :  { %p3915_p3 = pnand %p3913_p2, %p3910_p1 }
0x118b   :  { %3918 = shalt.err (!%p3915_p3)
}
0x118c   :  { %3131 = dma.vmem_to_hbm [thread:$0]  %s3129_s29, 128, %s5255_s7, [#allocation6]  }
0x118d   :  { %3923 = dma.done.wait [#allocation6], 128  }
0x118e   :  { %3924 = vsyncadd [#allocation6], 4294967168 }
0x118f   :  { %3135 = vsyncpa [#allocation5], 1 }
0x1190   :  { %3136 = vsyncpa [#allocation8], 1 }
0x1191   :  { %3137 = vsyncpa [#allocation6], 1 }

</bundles_post_ra>
